<compile_context>
chip_gen: v5e
topology: v5e:2x2
jax: 0.10.0
libtpu: 0.0.40
codegen_flags: <defaults>
</compile_context>

<pallas_src>
import functools

import jax
import jax.numpy as jnp
from jax import lax
from jax.experimental import pallas as pl
from jax.experimental.pallas import tpu as pltpu

# bf16 MXU operands (f32 accumulation via preferred_element_type) — ~2x MXU
# throughput on v6e/v7x.  Flip to jnp.float32 for a bit-tight reference check.
MXU_DTYPE = jnp.bfloat16
RECIP_APPROX = MXU_DTYPE != jnp.float32   # approx recip only when already low-prec
LANE = 128                                # TPU vreg lane width


def _vmem_limit_bytes():
    # ~7/8 of physical VMEM: ~56 MiB on v7x (64 MiB/TC), ~112 MiB on v5e/v6e
    # (128 MiB) — leaves headroom for compiler-internal scratch.
    try:
        cap = getattr(pltpu.get_tpu_info(), "vmem_capacity_bytes", None)
    except Exception:
        cap = None
    return int((cap or 64 * 1024 * 1024) * 7 // 8)


VMEM_LIMIT = _vmem_limit_bytes()


# ----------------------------- Pallas kernels ------------------------------


def _linear_kernel(x_ref, w_ref, b_ref, o_ref):
    """One row tile of y = x @ W^T + b (W passed pre-transposed, MXU dtype)."""
    o_ref[...] = (jnp.dot(x_ref[...].astype(w_ref.dtype), w_ref[...],
                          preferred_element_type=jnp.float32)
                  + b_ref[...]).astype(o_ref.dtype)


def _lstm_kernel(xg_ref, whh_ref, mask_ref, out_ref, h_scr, c_scr):
    """Tc timesteps of the LSTM recurrence per grid step.

    Grid = (batch_blocks, time_blocks); time is the inner ("arbitrary") axis so
    the h/c scratch is re-initialised whenever a new batch block starts.

    xg_ref:   (Bl, Tc, 4H)  precomputed x_t @ W_ih^T + (b_ih + b_hh)   (f32)
    whh_ref:  (H, 4H)       W_hh^T, PyTorch gate order (i, f, g, o), MXU dtype
    mask_ref: (Bl, Tc, 1)   1.0 where t < length else 0.0
    out_ref:  (Bl, Tc, H)   masked hidden states for this block
    h/c_scr:  (Bl, H)       recurrent state (f32), carried across time blocks
    """
    H = whh_ref.shape[0]
    Tc = xg_ref.shape[1]

    @pl.when(pl.program_id(1) == 0)
    def _():
        h_scr[...] = jnp.zeros_like(h_scr)
        c_scr[...] = jnp.zeros_like(c_scr)

    whh = whh_ref[...]
    h = h_scr[...]
    c = c_scr[...]
    # Static unroll over the in-block timesteps (Tc <= 32): indices stay static
    # and the scheduler sees the whole dependency chain.
    for j in range(Tc):
        gates = xg_ref[:, j, :] + jnp.dot(h.astype(whh.dtype), whh,
                                          preferred_element_type=jnp.float32)
        i = jax.nn.sigmoid(gates[:, 0:H])
        f = jax.nn.sigmoid(gates[:, H:2 * H])
        g = jnp.tanh(gates[:, 2 * H:3 * H])
        o = jax.nn.sigmoid(gates[:, 3 * H:4 * H])
        c = f * c + i * g
        h = o * jnp.tanh(c)
        out_ref[:, j, :] = (h * mask_ref[:, j, :]).astype(out_ref.dtype)
    h_scr[...] = h
    c_scr[...] = c


def _flash_attn_kernel(qids_ref, kids_ref, q_ref, k_ref, v_ref, wp_ref, bp_ref,
                       mask_ref, o_ref, m_scr, l_scr, acc_scr, *, fuse_head):
    """Flash-style causal attention over a lower-triangular (q,k) tile schedule.

    Grid = (batch_blocks, n_pairs).  The pair axis enumerates only the
    nq*(nq+1)/2 valid causal tiles (qids/kids prefetched into SMEM), so no grid
    step is wasted on an always-masked tile.  Online-softmax state (m, l, acc)
    lives in VMEM scratch; scores are unscaled like the PyTorch module.  When
    fuse_head=True the prediction head (Linear, output zero-padded to 128
    lanes) + length mask are applied in the finalize step so the context never
    round-trips through HBM.
    """
    p = pl.program_id(1)
    qi = qids_ref[p]
    ki = kids_ref[p]

    @pl.when(ki == 0)                 # first key tile of a new query tile
    def _():
        m_scr[...] = jnp.full_like(m_scr, -jnp.inf)
        l_scr[...] = jnp.zeros_like(l_scr)
        acc_scr[...] = jnp.zeros_like(acc_scr)

    def scores():
        return jnp.einsum("bqd,bkd->bqk",
                          q_ref[...].astype(MXU_DTYPE),
                          k_ref[...].astype(MXU_DTYPE),
                          preferred_element_type=jnp.float32)

    def accumulate(s):
        m_prev = m_scr[...]
        m_new = jnp.maximum(m_prev, jnp.max(s, axis=-1, keepdims=True))
        alpha = jnp.exp(m_prev - m_new)
        pw = jnp.exp(s - m_new)
        l_scr[...] = alpha * l_scr[...] + jnp.sum(pw, axis=-1, keepdims=True)
        acc_scr[...] = alpha * acc_scr[...] + jnp.einsum(
            "bqk,bkd->bqd", pw.astype(MXU_DTYPE),
            v_ref[...].astype(MXU_DTYPE), preferred_element_type=jnp.float32)
        m_scr[...] = m_new

    @pl.when(ki < qi)                 # strictly below the diagonal: no mask work
    def _():
        accumulate(scores())

    @pl.when(ki == qi)                # diagonal tile: mask, then finalize q tile
    def _():
        s = scores()
        row = lax.broadcasted_iota(jnp.int32, s.shape, 1)
        col = lax.broadcasted_iota(jnp.int32, s.shape, 2)
        accumulate(jnp.where(col <= row, s, -1e30))

        # Finalize: approx reciprocal runs on the EUP slot (essentially free).
        ctx = acc_scr[...] * pl.reciprocal(l_scr[...], approx=RECIP_APPROX)
        if fuse_head:
            for b in range(ctx.shape[0]):      # static, Bc <= 4
                y = (jnp.dot(ctx[b].astype(wp_ref.dtype), wp_ref[...],
                             preferred_element_type=jnp.float32) + bp_ref[0])
                o_ref[b] = (y * mask_ref[b]).astype(o_ref.dtype)
        else:
            o_ref[...] = ctx.astype(o_ref.dtype)


# ------------------------------ host wrappers -------------------------------


def _row_tile(m, candidates=(512, 256, 128, 64, 32, 16, 8)):
    for c in candidates:
        if m % c == 0:
            return c
    return m


def linear(x2d, w_T, b):
    """y = x2d @ w_T + b as one row-tiled Pallas matmul kernel (f32 output)."""
    M, d_in = x2d.shape
    d_out = w_T.shape[1]
    tm = _row_tile(M)
    return pl.pallas_call(
        _linear_kernel,
        out_shape=jax.ShapeDtypeStruct((M, d_out), jnp.float32),
        grid=(M // tm,),
        in_specs=[
            pl.BlockSpec((tm, d_in), lambda i: (i, 0)),
            pl.BlockSpec((d_in, d_out), lambda i: (0, 0)),
            pl.BlockSpec((1, d_out), lambda i: (0, 0)),
        ],
        out_specs=pl.BlockSpec((tm, d_out), lambda i: (i, 0)),
        compiler_params=pltpu.CompilerParams(
            dimension_semantics=("parallel",),
            vmem_limit_bytes=VMEM_LIMIT),
    )(x2d, w_T, b[None, :])


def run_lstm(x_pad, mask_pad, kp):
    B, Tp, D = x_pad.shape
    H = kp["w_hh_T"].shape[0]

    # Hoisted input projection: one lane-dense (B*Tp, D) x (D, 4H) MXU matmul
    # with the combined bias folded in.  (B, T, *) layout kept throughout — the
    # time axis is addressed by the BlockSpec index_map, no host transposes.
    xg = linear(x_pad.reshape(B * Tp, D), kp["w_ih_T"],
                kp["b_lstm"]).reshape(B, Tp, 4 * H)

    Tc = next(t for t in (32, 16, 8) if Tp % t == 0)   # Tp is a multiple of 8
    nB = 2 if B % 2 == 0 else 1       # 2 batch shards -> both v7x TensorCores
    Bl = B // nB

    return pl.pallas_call(
        _lstm_kernel,
        out_shape=jax.ShapeDtypeStruct((B, Tp, H), jnp.float32),
        grid=(nB, Tp // Tc),
        in_specs=[
            pl.BlockSpec((Bl, Tc, 4 * H), lambda b, t: (b, t, 0)),   # x-gates
            pl.BlockSpec((H, 4 * H), lambda b, t: (0, 0)),           # W_hh^T
            pl.BlockSpec((Bl, Tc, 1), lambda b, t: (b, t, 0)),       # mask
        ],
        out_specs=pl.BlockSpec((Bl, Tc, H), lambda b, t: (b, t, 0)),
        scratch_shapes=[pltpu.VMEM((Bl, H), jnp.float32),            # h
                        pltpu.VMEM((Bl, H), jnp.float32)],           # c
        compiler_params=pltpu.CompilerParams(
            dimension_semantics=("parallel", "arbitrary"),
            vmem_limit_bytes=VMEM_LIMIT),
    )(xg, kp["w_hh_T"], mask_pad[..., None])


def run_causal_attention(ctx, layer, mask_pad, head=None):
    """One CausalAttention layer; optionally fuses the prediction head + mask."""
    B, Tp, H = ctx.shape
    fuse_head = head is not None

    # Fused, pre-concatenated Q/K/V projection: one (B*Tp, H) x (H, 3H) matmul.
    qkv = linear(ctx.reshape(B * Tp, H), layer["wqkv_T"],
                 layer["bqkv"]).reshape(B, Tp, 3 * H)
    q, k, v = qkv[..., :H], qkv[..., H:2 * H], qkv[..., 2 * H:]

    ts = 128 if Tp % 128 == 0 else Tp        # Tp is already padded to this tile
    nq = Tp // ts

    # Lower-triangular (q-tile, k-tile) schedule, prefetched into SMEM.
    q_ids, k_ids = [], []
    for i in range(nq):
        for j in range(i + 1):
            q_ids.append(i)
            k_ids.append(j)
    q_ids = jnp.asarray(q_ids, jnp.int32)
    k_ids = jnp.asarray(k_ids, jnp.int32)
    n_pairs = int(q_ids.shape[0])

    Bc = next(c for c in (4, 2, 1) if B % c == 0)    # batch rows per grid step

    if fuse_head:
        wp, bp = head                          # (H, 128-padded), (128-padded,)
    else:                                      # dummies keep signature uniform
        wp = jnp.zeros((H, LANE), MXU_DTYPE)
        bp = jnp.zeros((LANE,), jnp.float32)
    out_dim = wp.shape[1] if fuse_head else H

    return pl.pallas_call(
        functools.partial(_flash_attn_kernel, fuse_head=fuse_head),
        out_shape=jax.ShapeDtypeStruct((B, Tp, out_dim), jnp.float32),
        grid_spec=pltpu.PrefetchScalarGridSpec(
            num_scalar_prefetch=2,
            grid=(B // Bc, n_pairs),
            in_specs=[
                pl.BlockSpec((Bc, ts, H), lambda b, p, qs, ks: (b, qs[p], 0)),
                pl.BlockSpec((Bc, ts, H), lambda b, p, qs, ks: (b, ks[p], 0)),
                pl.BlockSpec((Bc, ts, H), lambda b, p, qs, ks: (b, ks[p], 0)),
                pl.BlockSpec((H, wp.shape[1]), lambda b, p, qs, ks: (0, 0)),
                pl.BlockSpec((1, wp.shape[1]), lambda b, p, qs, ks: (0, 0)),
                pl.BlockSpec((Bc, ts, 1), lambda b, p, qs, ks: (b, qs[p], 0)),
            ],
            out_specs=pl.BlockSpec((Bc, ts, out_dim),
                                   lambda b, p, qs, ks: (b, qs[p], 0)),
            scratch_shapes=[pltpu.VMEM((Bc, ts, 1), jnp.float32),   # running max
                            pltpu.VMEM((Bc, ts, 1), jnp.float32),   # running sum
                            pltpu.VMEM((Bc, ts, H), jnp.float32)],  # accumulator
        ),
        compiler_params=pltpu.CompilerParams(
            dimension_semantics=("parallel", "arbitrary"),
            vmem_limit_bytes=VMEM_LIMIT),
    )(q_ids, k_ids, q, k, v, wp, bp[None, :], mask_pad[..., None])


def _padded_len(T):
    ts = 128 if T >= 128 else ((T + 7) // 8) * 8
    return ((T + ts - 1) // ts) * ts


@jax.jit
def lstm_attention_forward(x, lengths, kparams):
    """Equivalent of LSTMAttentionModel.forward(x, lengths)."""
    B, T, D = x.shape
    Tp = _padded_len(T)
    if Tp != T:          # padded rows are causally invisible to valid rows
        x = jnp.pad(x, ((0, 0), (0, Tp - T), (0, 0)))
    mask = (jnp.arange(Tp)[None, :] < lengths[:, None]).astype(jnp.float32)

    ctx = run_lstm(x, mask, kparams)
    n_layers = len(kparams["attn"])
    for idx, layer in enumerate(kparams["attn"]):
        head = (kparams["wp_T"], kparams["bp"]) if idx == n_layers - 1 else None
        ctx = run_causal_attention(ctx, layer, mask, head=head)
    return ctx[:, :T, :D]


# ------------------------------ params & reference --------------------------


def init_params(key, input_dim, hidden_dim, attn_layers=1):
    k = 1.0 / jnp.sqrt(hidden_dim)

    def u(key, shape):
        return jax.random.uniform(key, shape, jnp.float32, -k, k)

    keys = jax.random.split(key, 6 + 6 * attn_layers)
    params = {
        "w_ih_T": u(keys[0], (input_dim, 4 * hidden_dim)),
        "w_hh_T": u(keys[1], (hidden_dim, 4 * hidden_dim)),
        "b_ih": u(keys[2], (4 * hidden_dim,)),
        "b_hh": u(keys[3], (4 * hidden_dim,)),
        "wp_T": u(keys[4], (hidden_dim, input_dim)),
        "bp": u(keys[5], (input_dim,)),
        "attn": [],
    }
    for l in range(attn_layers):
        kk = keys[6 + 6 * l:12 + 6 * l]
        params["attn"].append({
            "wq_T": u(kk[0], (hidden_dim, hidden_dim)),
            "bq": u(kk[1], (hidden_dim,)),
            "wk_T": u(kk[2], (hidden_dim, hidden_dim)),
            "bk": u(kk[3], (hidden_dim,)),
            "wv_T": u(kk[4], (hidden_dim, hidden_dim)),
            "bv": u(kk[5], (hidden_dim,)),
        })
    return params


def prepare_kernel_params(params):
    """One-time host-side prep (hoisted out of the jitted forward): fuse QKV,
    pad the head output to a full 128-lane width, combine the LSTM biases and
    pre-cast all matmul weights to the MXU dtype."""
    H = params["w_hh_T"].shape[0]
    d_out = params["wp_T"].shape[1]
    dp = ((d_out + LANE - 1) // LANE) * LANE
    wp_pad = jnp.zeros((H, dp), jnp.float32).at[:, :d_out].set(params["wp_T"])
    bp_pad = jnp.zeros((dp,), jnp.float32).at[:d_out].set(params["bp"])
    kp = {
        "w_ih_T": params["w_ih_T"].astype(MXU_DTYPE),
        "w_hh_T": params["w_hh_T"].astype(MXU_DTYPE),
        "b_lstm": params["b_ih"] + params["b_hh"],
        "wp_T": wp_pad.astype(MXU_DTYPE),
        "bp": bp_pad,
        "attn": [],
    }
    for lp in params["attn"]:
        kp["attn"].append({
            "wqkv_T": jnp.concatenate(
                [lp["wq_T"], lp["wk_T"], lp["wv_T"]], axis=1).astype(MXU_DTYPE),
            "bqkv": jnp.concatenate([lp["bq"], lp["bk"], lp["bv"]]),
        })
    return kp


def reference_forward(x, lengths, params):
    """Pure-JAX f32 reference of the PyTorch forward (for correctness check)."""
    B, T, D = x.shape
    H = params["w_hh_T"].shape[0]
    mask = (jnp.arange(T)[None, :] < lengths[:, None]).astype(jnp.float32)

    def step(carry, x_t):
        h, c = carry
        gates = (x_t @ params["w_ih_T"] + h @ params["w_hh_T"]
                 + params["b_ih"] + params["b_hh"])
        i = jax.nn.sigmoid(gates[:, :H])
        f = jax.nn.sigmoid(gates[:, H:2 * H])
        g = jnp.tanh(gates[:, 2 * H:3 * H])
        o = jax.nn.sigmoid(gates[:, 3 * H:4 * H])
        c = f * c + i * g
        h = o * jnp.tanh(c)
        return (h, c), h

    init = (jnp.zeros((B, H), jnp.float32), jnp.zeros((B, H), jnp.float32))
    _, hs = jax.lax.scan(step, init, jnp.transpose(x, (1, 0, 2)))
    ctx = jnp.transpose(hs, (1, 0, 2)) * mask[..., None]

    causal = jnp.tril(jnp.ones((T, T), bool))
    for lp in params["attn"]:
        Q = ctx @ lp["wq_T"] + lp["bq"]
        K = ctx @ lp["wk_T"] + lp["bk"]
        V = ctx @ lp["wv_T"] + lp["bv"]
        scores = jnp.einsum("btd,bsd->bts", Q, K)
        scores = jnp.where(causal[None], scores, -1e30)
        w = jax.nn.softmax(scores, axis=-1)
        ctx = jnp.einsum("bts,bsd->btd", w, V)

    out = ctx @ params["wp_T"] + params["bp"]
    return out * mask[..., None]


# ----------------------------------- main -----------------------------------

if __name__ == "__main__":
    B, T, D, H = 2, 8, 4, 32
    key = jax.random.PRNGKey(0)
    k_param, k_x = jax.random.split(key)

    # attn_layers=2 exercises both the plain and the head-fused attention paths.
    params = init_params(k_param, input_dim=D, hidden_dim=H, attn_layers=2)
    kparams = prepare_kernel_params(params)
    x = jax.random.normal(k_x, (B, T, D), jnp.float32)
    lengths = jnp.array([8, 5], dtype=jnp.int32)

    out = lstm_attention_forward(x, lengths, kparams)
    out = jax.block_until_ready(out)

    ref = reference_forward(x, lengths, params)
    assert out.shape == (B, T, D)
    tol = 1e-3 if MXU_DTYPE == jnp.float32 else 3e-2   # bf16 MXU operands
    err = jnp.max(jnp.abs(out - ref))
    assert jnp.allclose(out, ref, atol=tol, rtol=tol), f"max abs err {err}"

    print("KERNEL_OK")
</pallas_src>

<mosaic_0001>
module attributes {stable_mosaic.version = 11 : i64} {
  func.func @_linear_kernel(%arg0: i32, %arg1: memref<16x4xf32, #tpu.memory_space<vmem>>, %arg2: memref<4x128xbf16, #tpu.memory_space<vmem>>, %arg3: memref<1x128xf32, #tpu.memory_space<vmem>>, %arg4: memref<16x128xf32, #tpu.memory_space<vmem>>) attributes {dimension_semantics = [#tpu.dimension_semantics<parallel>], iteration_bounds = array<i64: 1>, scalar_prefetch = 0 : i64, scratch_operands = 0 : i64, tpu.core_type = #tpu.core_type<tc>, window_params = [{transform_indices = @transform_0, window_bounds = array<i64: 16, 4>}, {pipeline_mode = #tpu.pipeline_mode<synchronous>, transform_indices = @transform_1, window_bounds = array<i64: 4, 128>}, {pipeline_mode = #tpu.pipeline_mode<synchronous>, transform_indices = @transform_2, window_bounds = array<i64: 1, 128>}, {transform_indices = @transform_3, window_bounds = array<i64: 16, 128>}]} {
    %c0 = arith.constant 0 : index
    %c0_0 = arith.constant 0 : index
    %0 = vector.load %arg1[%c0, %c0_0] : memref<16x4xf32, #tpu.memory_space<vmem>>, vector<16x4xf32>
    %1 = arith.truncf %0 : vector<16x4xf32> to vector<16x4xbf16>
    %c0_1 = arith.constant 0 : index
    %c0_2 = arith.constant 0 : index
    %2 = vector.load %arg2[%c0_1, %c0_2] : memref<4x128xbf16, #tpu.memory_space<vmem>>, vector<4x128xbf16>
    %cst = arith.constant dense<0.000000e+00> : vector<16x128xf32>
    %3 = tpu.matmul %1, %2, %cst {dimension_numbers = #tpu.dot_dimension_numbers<[1], [0], [0], [1], [0, 0, 1, 1], [], []>} : vector<16x4xbf16>, vector<4x128xbf16>, vector<16x128xf32> -> vector<16x128xf32>
    %c0_3 = arith.constant 0 : index
    %c0_4 = arith.constant 0 : index
    %4 = vector.load %arg3[%c0_3, %c0_4] : memref<1x128xf32, #tpu.memory_space<vmem>>, vector<1x128xf32>
    %5 = vector.broadcast %4 : vector<1x128xf32> to vector<16x128xf32>
    %6 = arith.addf %3, %5 : vector<16x128xf32>
    %c0_5 = arith.constant 0 : index
    %c0_6 = arith.constant 0 : index
    %7 = vector.load %arg4[%c0_5, %c0_6] : memref<16x128xf32, #tpu.memory_space<vmem>>, vector<16x128xf32>
    tpu.vector_store %arg4[%c0_5, %c0_6], %6 {strides = array<i32>} : memref<16x128xf32, #tpu.memory_space<vmem>>, vector<16x128xf32>,
    return
  }
  func.func @transform_0(%arg0: i32) -> (i32, i32) {
    %c0_i32 = arith.constant 0 : i32
    %c0_i32_0 = arith.constant 0 : i32
    return %arg0, %c0_i32 : i32, i32
  }
  func.func @transform_1(%arg0: i32) -> (i32, i32) {
    %c0_i32 = arith.constant 0 : i32
    %c0_i32_0 = arith.constant 0 : i32
    %c0_i32_1 = arith.constant 0 : i32
    return %c0_i32, %c0_i32_0 : i32, i32
  }
  func.func @transform_2(%arg0: i32) -> (i32, i32) {
    %c0_i32 = arith.constant 0 : i32
    %c0_i32_0 = arith.constant 0 : i32
    %c0_i32_1 = arith.constant 0 : i32
    return %c0_i32, %c0_i32_0 : i32, i32
  }
  func.func @transform_3(%arg0: i32) -> (i32, i32) {
    %c0_i32 = arith.constant 0 : i32
    %c0_i32_0 = arith.constant 0 : i32
    return %arg0, %c0_i32 : i32, i32
  }
}

module attributes {stable_mosaic.version = 11 : i64} {
  func.func @_lstm_kernel(%arg0: i32, %arg1: i32, %arg2: memref<1x8x128xf32, #tpu.memory_space<vmem>>, %arg3: memref<32x128xbf16, #tpu.memory_space<vmem>>, %arg4: memref<1x8x1xf32, #tpu.memory_space<vmem>>, %arg5: memref<1x8x32xf32, #tpu.memory_space<vmem>>, %arg6: memref<1x32xf32, #tpu.memory_space<vmem>>, %arg7: memref<1x32xf32, #tpu.memory_space<vmem>>) attributes {dimension_semantics = [#tpu.dimension_semantics<parallel>, #tpu.dimension_semantics<arbitrary>], iteration_bounds = array<i64: 2, 1>, scalar_prefetch = 0 : i64, scratch_operands = 2 : i64, tpu.core_type = #tpu.core_type<tc>, window_params = [{transform_indices = @transform_0, window_bounds = array<i64: 1, 8, 128>}, {pipeline_mode = #tpu.pipeline_mode<synchronous>, transform_indices = @transform_1, window_bounds = array<i64: 32, 128>}, {transform_indices = @transform_2, window_bounds = array<i64: 1, 8, 1>}, {transform_indices = @transform_3, window_bounds = array<i64: 1, 8, 32>}]} {
    %c0_i32 = arith.constant 0 : i32
    %0 = arith.cmpi eq, %arg1, %c0_i32 : i32
    %1 = arith.extui %0 : i1 to i32
    %c0_i32_0 = arith.constant 0 : i32
    %2 = arith.cmpi ne, %1, %c0_i32_0 : i32
    scf.if %2 {
      %cst_106 = arith.constant 0.000000e+00 : f32
      %304 = vector.broadcast %cst_106 : f32 to vector<1x32xf32>
      %c0_107 = arith.constant 0 : index
      %c0_108 = arith.constant 0 : index
      %305 = vector.load %arg6[%c0_107, %c0_108] : memref<1x32xf32, #tpu.memory_space<vmem>>, vector<1x32xf32>
      tpu.vector_store %arg6[%c0_107, %c0_108], %304 {strides = array<i32>} : memref<1x32xf32, #tpu.memory_space<vmem>>, vector<1x32xf32>,
      %cst_109 = arith.constant 0.000000e+00 : f32
      %306 = vector.broadcast %cst_109 : f32 to vector<1x32xf32>
      %c0_110 = arith.constant 0 : index
      %c0_111 = arith.constant 0 : index
      %307 = vector.load %arg7[%c0_110, %c0_111] : memref<1x32xf32, #tpu.memory_space<vmem>>, vector<1x32xf32>
      tpu.vector_store %arg7[%c0_110, %c0_111], %306 {strides = array<i32>} : memref<1x32xf32, #tpu.memory_space<vmem>>, vector<1x32xf32>,
    } else {
    }
    %c0 = arith.constant 0 : index
    %c0_1 = arith.constant 0 : index
    %3 = vector.load %arg3[%c0, %c0_1] : memref<32x128xbf16, #tpu.memory_space<vmem>>, vector<32x128xbf16>
    %c0_2 = arith.constant 0 : index
    %c0_3 = arith.constant 0 : index
    %4 = vector.load %arg6[%c0_2, %c0_3] : memref<1x32xf32, #tpu.memory_space<vmem>>, vector<1x32xf32>
    %c0_4 = arith.constant 0 : index
    %c0_5 = arith.constant 0 : index
    %5 = vector.load %arg7[%c0_4, %c0_5] : memref<1x32xf32, #tpu.memory_space<vmem>>, vector<1x32xf32>
    %c0_6 = arith.constant 0 : index
    %c0_7 = arith.constant 0 : index
    %c0_8 = arith.constant 0 : index
    %6 = vector.load %arg2[%c0_6, %c0_7, %c0_8] : memref<1x8x128xf32, #tpu.memory_space<vmem>>, vector<1x1x128xf32>
    %7 = vector.shape_cast %6 : vector<1x1x128xf32> to vector<1x128xf32>
    %8 = arith.truncf %4 : vector<1x32xf32> to vector<1x32xbf16>
    %cst = arith.constant dense<0.000000e+00> : vector<1x128xf32>
    %9 = tpu.matmul %8, %3, %cst {dimension_numbers = #tpu.dot_dimension_numbers<[1], [0], [0], [1], [0, 0, 1, 1], [], []>} : vector<1x32xbf16>, vector<32x128xbf16>, vector<1x128xf32> -> vector<1x128xf32>
    %10 = arith.addf %7, %9 : vector<1x128xf32>
    %11 = vector.extract_strided_slice %10 {offsets = [0, 0], sizes = [1, 32], strides = [1, 1]} : vector<1x128xf32> to vector<1x32xf32>
    %12 = arith.negf %11 : vector<1x32xf32>
    %13 = math.exp %12 : vector<1x32xf32>
    %cst_9 = arith.constant 1.000000e+00 : f32
    %14 = vector.broadcast %cst_9 : f32 to vector<1x32xf32>
    %15 = arith.addf %14, %13 : vector<1x32xf32>
    %16 = arith.divf %14, %15 : vector<1x32xf32>
    %17 = vector.extract_strided_slice %10 {offsets = [0, 32], sizes = [1, 32], strides = [1, 1]} : vector<1x128xf32> to vector<1x32xf32>
    %18 = arith.negf %17 : vector<1x32xf32>
    %19 = math.exp %18 : vector<1x32xf32>
    %cst_10 = arith.constant 1.000000e+00 : f32
    %20 = vector.broadcast %cst_10 : f32 to vector<1x32xf32>
    %21 = arith.addf %20, %19 : vector<1x32xf32>
    %22 = arith.divf %20, %21 : vector<1x32xf32>
    %23 = vector.extract_strided_slice %10 {offsets = [0, 64], sizes = [1, 32], strides = [1, 1]} : vector<1x128xf32> to vector<1x32xf32>
    %24 = math.tanh %23 : vector<1x32xf32>
    %25 = vector.extract_strided_slice %10 {offsets = [0, 96], sizes = [1, 32], strides = [1, 1]} : vector<1x128xf32> to vector<1x32xf32>
    %26 = arith.negf %25 : vector<1x32xf32>
    %27 = math.exp %26 : vector<1x32xf32>
    %cst_11 = arith.constant 1.000000e+00 : f32
    %28 = vector.broadcast %cst_11 : f32 to vector<1x32xf32>
    %29 = arith.addf %28, %27 : vector<1x32xf32>
    %30 = arith.divf %28, %29 : vector<1x32xf32>
    %31 = arith.mulf %22, %5 : vector<1x32xf32>
    %32 = arith.mulf %16, %24 : vector<1x32xf32>
    %33 = arith.addf %31, %32 : vector<1x32xf32>
    %34 = math.tanh %33 : vector<1x32xf32>
    %35 = arith.mulf %30, %34 : vector<1x32xf32>
    %c0_12 = arith.constant 0 : index
    %c0_13 = arith.constant 0 : index
    %c0_14 = arith.constant 0 : index
    %36 = vector.load %arg4[%c0_12, %c0_13, %c0_14] : memref<1x8x1xf32, #tpu.memory_space<vmem>>, vector<1x1x1xf32>
    %37 = vector.shape_cast %36 : vector<1x1x1xf32> to vector<1x1xf32>
    %38 = vector.broadcast %37 : vector<1x1xf32> to vector<1x32xf32>
    %39 = arith.mulf %35, %38 : vector<1x32xf32>
    %c0_15 = arith.constant 0 : index
    %c0_16 = arith.constant 0 : index
    %c0_17 = arith.constant 0 : index
    %40 = vector.load %arg5[%c0_15, %c0_16, %c0_17] : memref<1x8x32xf32, #tpu.memory_space<vmem>>, vector<1x1x32xf32>
    %41 = vector.shape_cast %40 : vector<1x1x32xf32> to vector<1x32xf32>
    %42 = vector.shape_cast %39 : vector<1x32xf32> to vector<1x1x32xf32>
    tpu.vector_store %arg5[%c0_15, %c0_16, %c0_17], %42 {strides = array<i32>} : memref<1x8x32xf32, #tpu.memory_space<vmem>>, vector<1x1x32xf32>,
    %c0_18 = arith.constant 0 : index
    %c1 = arith.constant 1 : index
    %c0_19 = arith.constant 0 : index
    %43 = vector.load %arg2[%c0_18, %c1, %c0_19] : memref<1x8x128xf32, #tpu.memory_space<vmem>>, vector<1x1x128xf32>
    %44 = vector.shape_cast %43 : vector<1x1x128xf32> to vector<1x128xf32>
    %45 = arith.truncf %35 : vector<1x32xf32> to vector<1x32xbf16>
    %cst_20 = arith.constant dense<0.000000e+00> : vector<1x128xf32>
    %46 = tpu.matmul %45, %3, %cst_20 {dimension_numbers = #tpu.dot_dimension_numbers<[1], [0], [0], [1], [0, 0, 1, 1], [], []>} : vector<1x32xbf16>, vector<32x128xbf16>, vector<1x128xf32> -> vector<1x128xf32>
    %47 = arith.addf %44, %46 : vector<1x128xf32>
    %48 = vector.extract_strided_slice %47 {offsets = [0, 0], sizes = [1, 32], strides = [1, 1]} : vector<1x128xf32> to vector<1x32xf32>
    %49 = arith.negf %48 : vector<1x32xf32>
    %50 = math.exp %49 : vector<1x32xf32>
    %cst_21 = arith.constant 1.000000e+00 : f32
    %51 = vector.broadcast %cst_21 : f32 to vector<1x32xf32>
    %52 = arith.addf %51, %50 : vector<1x32xf32>
    %53 = arith.divf %51, %52 : vector<1x32xf32>
    %54 = vector.extract_strided_slice %47 {offsets = [0, 32], sizes = [1, 32], strides = [1, 1]} : vector<1x128xf32> to vector<1x32xf32>
    %55 = arith.negf %54 : vector<1x32xf32>
    %56 = math.exp %55 : vector<1x32xf32>
    %cst_22 = arith.constant 1.000000e+00 : f32
    %57 = vector.broadcast %cst_22 : f32 to vector<1x32xf32>
    %58 = arith.addf %57, %56 : vector<1x32xf32>
    %59 = arith.divf %57, %58 : vector<1x32xf32>
    %60 = vector.extract_strided_slice %47 {offsets = [0, 64], sizes = [1, 32], strides = [1, 1]} : vector<1x128xf32> to vector<1x32xf32>
    %61 = math.tanh %60 : vector<1x32xf32>
    %62 = vector.extract_strided_slice %47 {offsets = [0, 96], sizes = [1, 32], strides = [1, 1]} : vector<1x128xf32> to vector<1x32xf32>
    %63 = arith.negf %62 : vector<1x32xf32>
    %64 = math.exp %63 : vector<1x32xf32>
    %cst_23 = arith.constant 1.000000e+00 : f32
    %65 = vector.broadcast %cst_23 : f32 to vector<1x32xf32>
    %66 = arith.addf %65, %64 : vector<1x32xf32>
    %67 = arith.divf %65, %66 : vector<1x32xf32>
    %68 = arith.mulf %59, %33 : vector<1x32xf32>
    %69 = arith.mulf %53, %61 : vector<1x32xf32>
    %70 = arith.addf %68, %69 : vector<1x32xf32>
    %71 = math.tanh %70 : vector<1x32xf32>
    %72 = arith.mulf %67, %71 : vector<1x32xf32>
    %c0_24 = arith.constant 0 : index
    %c1_25 = arith.constant 1 : index
    %c0_26 = arith.constant 0 : index
    %73 = vector.load %arg4[%c0_24, %c1_25, %c0_26] : memref<1x8x1xf32, #tpu.memory_space<vmem>>, vector<1x1x1xf32>
    %74 = vector.shape_cast %73 : vector<1x1x1xf32> to vector<1x1xf32>
    %75 = vector.broadcast %74 : vector<1x1xf32> to vector<1x32xf32>
    %76 = arith.mulf %72, %75 : vector<1x32xf32>
    %c0_27 = arith.constant 0 : index
    %c1_28 = arith.constant 1 : index
    %c0_29 = arith.constant 0 : index
    %77 = vector.load %arg5[%c0_27, %c1_28, %c0_29] : memref<1x8x32xf32, #tpu.memory_space<vmem>>, vector<1x1x32xf32>
    %78 = vector.shape_cast %77 : vector<1x1x32xf32> to vector<1x32xf32>
    %79 = vector.shape_cast %76 : vector<1x32xf32> to vector<1x1x32xf32>
    tpu.vector_store %arg5[%c0_27, %c1_28, %c0_29], %79 {strides = array<i32>} : memref<1x8x32xf32, #tpu.memory_space<vmem>>, vector<1x1x32xf32>,
    %c0_30 = arith.constant 0 : index
    %c2 = arith.constant 2 : index
    %c0_31 = arith.constant 0 : index
    %80 = vector.load %arg2[%c0_30, %c2, %c0_31] : memref<1x8x128xf32, #tpu.memory_space<vmem>>, vector<1x1x128xf32>
    %81 = vector.shape_cast %80 : vector<1x1x128xf32> to vector<1x128xf32>
    %82 = arith.truncf %72 : vector<1x32xf32> to vector<1x32xbf16>
    %cst_32 = arith.constant dense<0.000000e+00> : vector<1x128xf32>
    %83 = tpu.matmul %82, %3, %cst_32 {dimension_numbers = #tpu.dot_dimension_numbers<[1], [0], [0], [1], [0, 0, 1, 1], [], []>} : vector<1x32xbf16>, vector<32x128xbf16>, vector<1x128xf32> -> vector<1x128xf32>
    %84 = arith.addf %81, %83 : vector<1x128xf32>
    %85 = vector.extract_strided_slice %84 {offsets = [0, 0], sizes = [1, 32], strides = [1, 1]} : vector<1x128xf32> to vector<1x32xf32>
    %86 = arith.negf %85 : vector<1x32xf32>
    %87 = math.exp %86 : vector<1x32xf32>
    %cst_33 = arith.constant 1.000000e+00 : f32
    %88 = vector.broadcast %cst_33 : f32 to vector<1x32xf32>
    %89 = arith.addf %88, %87 : vector<1x32xf32>
    %90 = arith.divf %88, %89 : vector<1x32xf32>
    %91 = vector.extract_strided_slice %84 {offsets = [0, 32], sizes = [1, 32], strides = [1, 1]} : vector<1x128xf32> to vector<1x32xf32>
    %92 = arith.negf %91 : vector<1x32xf32>
    %93 = math.exp %92 : vector<1x32xf32>
    %cst_34 = arith.constant 1.000000e+00 : f32
    %94 = vector.broadcast %cst_34 : f32 to vector<1x32xf32>
    %95 = arith.addf %94, %93 : vector<1x32xf32>
    %96 = arith.divf %94, %95 : vector<1x32xf32>
    %97 = vector.extract_strided_slice %84 {offsets = [0, 64], sizes = [1, 32], strides = [1, 1]} : vector<1x128xf32> to vector<1x32xf32>
    %98 = math.tanh %97 : vector<1x32xf32>
    %99 = vector.extract_strided_slice %84 {offsets = [0, 96], sizes = [1, 32], strides = [1, 1]} : vector<1x128xf32> to vector<1x32xf32>
    %100 = arith.negf %99 : vector<1x32xf32>
    %101 = math.exp %100 : vector<1x32xf32>
    %cst_35 = arith.constant 1.000000e+00 : f32
    %102 = vector.broadcast %cst_35 : f32 to vector<1x32xf32>
    %103 = arith.addf %102, %101 : vector<1x32xf32>
    %104 = arith.divf %102, %103 : vector<1x32xf32>
    %105 = arith.mulf %96, %70 : vector<1x32xf32>
    %106 = arith.mulf %90, %98 : vector<1x32xf32>
    %107 = arith.addf %105, %106 : vector<1x32xf32>
    %108 = math.tanh %107 : vector<1x32xf32>
    %109 = arith.mulf %104, %108 : vector<1x32xf32>
    %c0_36 = arith.constant 0 : index
    %c2_37 = arith.constant 2 : index
    %c0_38 = arith.constant 0 : index
    %110 = vector.load %arg4[%c0_36, %c2_37, %c0_38] : memref<1x8x1xf32, #tpu.memory_space<vmem>>, vector<1x1x1xf32>
    %111 = vector.shape_cast %110 : vector<1x1x1xf32> to vector<1x1xf32>
    %112 = vector.broadcast %111 : vector<1x1xf32> to vector<1x32xf32>
    %113 = arith.mulf %109, %112 : vector<1x32xf32>
    %c0_39 = arith.constant 0 : index
    %c2_40 = arith.constant 2 : index
    %c0_41 = arith.constant 0 : index
    %114 = vector.load %arg5[%c0_39, %c2_40, %c0_41] : memref<1x8x32xf32, #tpu.memory_space<vmem>>, vector<1x1x32xf32>
    %115 = vector.shape_cast %114 : vector<1x1x32xf32> to vector<1x32xf32>
    %116 = vector.shape_cast %113 : vector<1x32xf32> to vector<1x1x32xf32>
    tpu.vector_store %arg5[%c0_39, %c2_40, %c0_41], %116 {strides = array<i32>} : memref<1x8x32xf32, #tpu.memory_space<vmem>>, vector<1x1x32xf32>,
    %c0_42 = arith.constant 0 : index
    %c3 = arith.constant 3 : index
    %c0_43 = arith.constant 0 : index
    %117 = vector.load %arg2[%c0_42, %c3, %c0_43] : memref<1x8x128xf32, #tpu.memory_space<vmem>>, vector<1x1x128xf32>
    %118 = vector.shape_cast %117 : vector<1x1x128xf32> to vector<1x128xf32>
    %119 = arith.truncf %109 : vector<1x32xf32> to vector<1x32xbf16>
    %cst_44 = arith.constant dense<0.000000e+00> : vector<1x128xf32>
    %120 = tpu.matmul %119, %3, %cst_44 {dimension_numbers = #tpu.dot_dimension_numbers<[1], [0], [0], [1], [0, 0, 1, 1], [], []>} : vector<1x32xbf16>, vector<32x128xbf16>, vector<1x128xf32> -> vector<1x128xf32>
    %121 = arith.addf %118, %120 : vector<1x128xf32>
    %122 = vector.extract_strided_slice %121 {offsets = [0, 0], sizes = [1, 32], strides = [1, 1]} : vector<1x128xf32> to vector<1x32xf32>
    %123 = arith.negf %122 : vector<1x32xf32>
    %124 = math.exp %123 : vector<1x32xf32>
    %cst_45 = arith.constant 1.000000e+00 : f32
    %125 = vector.broadcast %cst_45 : f32 to vector<1x32xf32>
    %126 = arith.addf %125, %124 : vector<1x32xf32>
    %127 = arith.divf %125, %126 : vector<1x32xf32>
    %128 = vector.extract_strided_slice %121 {offsets = [0, 32], sizes = [1, 32], strides = [1, 1]} : vector<1x128xf32> to vector<1x32xf32>
    %129 = arith.negf %128 : vector<1x32xf32>
    %130 = math.exp %129 : vector<1x32xf32>
    %cst_46 = arith.constant 1.000000e+00 : f32
    %131 = vector.broadcast %cst_46 : f32 to vector<1x32xf32>
    %132 = arith.addf %131, %130 : vector<1x32xf32>
    %133 = arith.divf %131, %132 : vector<1x32xf32>
    %134 = vector.extract_strided_slice %121 {offsets = [0, 64], sizes = [1, 32], strides = [1, 1]} : vector<1x128xf32> to vector<1x32xf32>
    %135 = math.tanh %134 : vector<1x32xf32>
    %136 = vector.extract_strided_slice %121 {offsets = [0, 96], sizes = [1, 32], strides = [1, 1]} : vector<1x128xf32> to vector<1x32xf32>
    %137 = arith.negf %136 : vector<1x32xf32>
    %138 = math.exp %137 : vector<1x32xf32>
    %cst_47 = arith.constant 1.000000e+00 : f32
    %139 = vector.broadcast %cst_47 : f32 to vector<1x32xf32>
    %140 = arith.addf %139, %138 : vector<1x32xf32>
    %141 = arith.divf %139, %140 : vector<1x32xf32>
    %142 = arith.mulf %133, %107 : vector<1x32xf32>
    %143 = arith.mulf %127, %135 : vector<1x32xf32>
    %144 = arith.addf %142, %143 : vector<1x32xf32>
    %145 = math.tanh %144 : vector<1x32xf32>
    %146 = arith.mulf %141, %145 : vector<1x32xf32>
    %c0_48 = arith.constant 0 : index
    %c3_49 = arith.constant 3 : index
    %c0_50 = arith.constant 0 : index
    %147 = vector.load %arg4[%c0_48, %c3_49, %c0_50] : memref<1x8x1xf32, #tpu.memory_space<vmem>>, vector<1x1x1xf32>
    %148 = vector.shape_cast %147 : vector<1x1x1xf32> to vector<1x1xf32>
    %149 = vector.broadcast %148 : vector<1x1xf32> to vector<1x32xf32>
    %150 = arith.mulf %146, %149 : vector<1x32xf32>
    %c0_51 = arith.constant 0 : index
    %c3_52 = arith.constant 3 : index
    %c0_53 = arith.constant 0 : index
    %151 = vector.load %arg5[%c0_51, %c3_52, %c0_53] : memref<1x8x32xf32, #tpu.memory_space<vmem>>, vector<1x1x32xf32>
    %152 = vector.shape_cast %151 : vector<1x1x32xf32> to vector<1x32xf32>
    %153 = vector.shape_cast %150 : vector<1x32xf32> to vector<1x1x32xf32>
    tpu.vector_store %arg5[%c0_51, %c3_52, %c0_53], %153 {strides = array<i32>} : memref<1x8x32xf32, #tpu.memory_space<vmem>>, vector<1x1x32xf32>,
    %c0_54 = arith.constant 0 : index
    %c4 = arith.constant 4 : index
    %c0_55 = arith.constant 0 : index
    %154 = vector.load %arg2[%c0_54, %c4, %c0_55] : memref<1x8x128xf32, #tpu.memory_space<vmem>>, vector<1x1x128xf32>
    %155 = vector.shape_cast %154 : vector<1x1x128xf32> to vector<1x128xf32>
    %156 = arith.truncf %146 : vector<1x32xf32> to vector<1x32xbf16>
    %cst_56 = arith.constant dense<0.000000e+00> : vector<1x128xf32>
    %157 = tpu.matmul %156, %3, %cst_56 {dimension_numbers = #tpu.dot_dimension_numbers<[1], [0], [0], [1], [0, 0, 1, 1], [], []>} : vector<1x32xbf16>, vector<32x128xbf16>, vector<1x128xf32> -> vector<1x128xf32>
    %158 = arith.addf %155, %157 : vector<1x128xf32>
    %159 = vector.extract_strided_slice %158 {offsets = [0, 0], sizes = [1, 32], strides = [1, 1]} : vector<1x128xf32> to vector<1x32xf32>
    %160 = arith.negf %159 : vector<1x32xf32>
    %161 = math.exp %160 : vector<1x32xf32>
    %cst_57 = arith.constant 1.000000e+00 : f32
    %162 = vector.broadcast %cst_57 : f32 to vector<1x32xf32>
    %163 = arith.addf %162, %161 : vector<1x32xf32>
    %164 = arith.divf %162, %163 : vector<1x32xf32>
    %165 = vector.extract_strided_slice %158 {offsets = [0, 32], sizes = [1, 32], strides = [1, 1]} : vector<1x128xf32> to vector<1x32xf32>
    %166 = arith.negf %165 : vector<1x32xf32>
    %167 = math.exp %166 : vector<1x32xf32>
    %cst_58 = arith.constant 1.000000e+00 : f32
    %168 = vector.broadcast %cst_58 : f32 to vector<1x32xf32>
    %169 = arith.addf %168, %167 : vector<1x32xf32>
    %170 = arith.divf %168, %169 : vector<1x32xf32>
    %171 = vector.extract_strided_slice %158 {offsets = [0, 64], sizes = [1, 32], strides = [1, 1]} : vector<1x128xf32> to vector<1x32xf32>
    %172 = math.tanh %171 : vector<1x32xf32>
    %173 = vector.extract_strided_slice %158 {offsets = [0, 96], sizes = [1, 32], strides = [1, 1]} : vector<1x128xf32> to vector<1x32xf32>
    %174 = arith.negf %173 : vector<1x32xf32>
    %175 = math.exp %174 : vector<1x32xf32>
    %cst_59 = arith.constant 1.000000e+00 : f32
    %176 = vector.broadcast %cst_59 : f32 to vector<1x32xf32>
    %177 = arith.addf %176, %175 : vector<1x32xf32>
    %178 = arith.divf %176, %177 : vector<1x32xf32>
    %179 = arith.mulf %170, %144 : vector<1x32xf32>
    %180 = arith.mulf %164, %172 : vector<1x32xf32>
    %181 = arith.addf %179, %180 : vector<1x32xf32>
    %182 = math.tanh %181 : vector<1x32xf32>
    %183 = arith.mulf %178, %182 : vector<1x32xf32>
    %c0_60 = arith.constant 0 : index
    %c4_61 = arith.constant 4 : index
    %c0_62 = arith.constant 0 : index
    %184 = vector.load %arg4[%c0_60, %c4_61, %c0_62] : memref<1x8x1xf32, #tpu.memory_space<vmem>>, vector<1x1x1xf32>
    %185 = vector.shape_cast %184 : vector<1x1x1xf32> to vector<1x1xf32>
    %186 = vector.broadcast %185 : vector<1x1xf32> to vector<1x32xf32>
    %187 = arith.mulf %183, %186 : vector<1x32xf32>
    %c0_63 = arith.constant 0 : index
    %c4_64 = arith.constant 4 : index
    %c0_65 = arith.constant 0 : index
    %188 = vector.load %arg5[%c0_63, %c4_64, %c0_65] : memref<1x8x32xf32, #tpu.memory_space<vmem>>, vector<1x1x32xf32>
    %189 = vector.shape_cast %188 : vector<1x1x32xf32> to vector<1x32xf32>
    %190 = vector.shape_cast %187 : vector<1x32xf32> to vector<1x1x32xf32>
    tpu.vector_store %arg5[%c0_63, %c4_64, %c0_65], %190 {strides = array<i32>} : memref<1x8x32xf32, #tpu.memory_space<vmem>>, vector<1x1x32xf32>,
    %c0_66 = arith.constant 0 : index
    %c5 = arith.constant 5 : index
    %c0_67 = arith.constant 0 : index
    %191 = vector.load %arg2[%c0_66, %c5, %c0_67] : memref<1x8x128xf32, #tpu.memory_space<vmem>>, vector<1x1x128xf32>
    %192 = vector.shape_cast %191 : vector<1x1x128xf32> to vector<1x128xf32>
    %193 = arith.truncf %183 : vector<1x32xf32> to vector<1x32xbf16>
    %cst_68 = arith.constant dense<0.000000e+00> : vector<1x128xf32>
    %194 = tpu.matmul %193, %3, %cst_68 {dimension_numbers = #tpu.dot_dimension_numbers<[1], [0], [0], [1], [0, 0, 1, 1], [], []>} : vector<1x32xbf16>, vector<32x128xbf16>, vector<1x128xf32> -> vector<1x128xf32>
    %195 = arith.addf %192, %194 : vector<1x128xf32>
    %196 = vector.extract_strided_slice %195 {offsets = [0, 0], sizes = [1, 32], strides = [1, 1]} : vector<1x128xf32> to vector<1x32xf32>
    %197 = arith.negf %196 : vector<1x32xf32>
    %198 = math.exp %197 : vector<1x32xf32>
    %cst_69 = arith.constant 1.000000e+00 : f32
    %199 = vector.broadcast %cst_69 : f32 to vector<1x32xf32>
    %200 = arith.addf %199, %198 : vector<1x32xf32>
    %201 = arith.divf %199, %200 : vector<1x32xf32>
    %202 = vector.extract_strided_slice %195 {offsets = [0, 32], sizes = [1, 32], strides = [1, 1]} : vector<1x128xf32> to vector<1x32xf32>
    %203 = arith.negf %202 : vector<1x32xf32>
    %204 = math.exp %203 : vector<1x32xf32>
    %cst_70 = arith.constant 1.000000e+00 : f32
    %205 = vector.broadcast %cst_70 : f32 to vector<1x32xf32>
    %206 = arith.addf %205, %204 : vector<1x32xf32>
    %207 = arith.divf %205, %206 : vector<1x32xf32>
    %208 = vector.extract_strided_slice %195 {offsets = [0, 64], sizes = [1, 32], strides = [1, 1]} : vector<1x128xf32> to vector<1x32xf32>
    %209 = math.tanh %208 : vector<1x32xf32>
    %210 = vector.extract_strided_slice %195 {offsets = [0, 96], sizes = [1, 32], strides = [1, 1]} : vector<1x128xf32> to vector<1x32xf32>
    %211 = arith.negf %210 : vector<1x32xf32>
    %212 = math.exp %211 : vector<1x32xf32>
    %cst_71 = arith.constant 1.000000e+00 : f32
    %213 = vector.broadcast %cst_71 : f32 to vector<1x32xf32>
    %214 = arith.addf %213, %212 : vector<1x32xf32>
    %215 = arith.divf %213, %214 : vector<1x32xf32>
    %216 = arith.mulf %207, %181 : vector<1x32xf32>
    %217 = arith.mulf %201, %209 : vector<1x32xf32>
    %218 = arith.addf %216, %217 : vector<1x32xf32>
    %219 = math.tanh %218 : vector<1x32xf32>
    %220 = arith.mulf %215, %219 : vector<1x32xf32>
    %c0_72 = arith.constant 0 : index
    %c5_73 = arith.constant 5 : index
    %c0_74 = arith.constant 0 : index
    %221 = vector.load %arg4[%c0_72, %c5_73, %c0_74] : memref<1x8x1xf32, #tpu.memory_space<vmem>>, vector<1x1x1xf32>
    %222 = vector.shape_cast %221 : vector<1x1x1xf32> to vector<1x1xf32>
    %223 = vector.broadcast %222 : vector<1x1xf32> to vector<1x32xf32>
    %224 = arith.mulf %220, %223 : vector<1x32xf32>
    %c0_75 = arith.constant 0 : index
    %c5_76 = arith.constant 5 : index
    %c0_77 = arith.constant 0 : index
    %225 = vector.load %arg5[%c0_75, %c5_76, %c0_77] : memref<1x8x32xf32, #tpu.memory_space<vmem>>, vector<1x1x32xf32>
    %226 = vector.shape_cast %225 : vector<1x1x32xf32> to vector<1x32xf32>
    %227 = vector.shape_cast %224 : vector<1x32xf32> to vector<1x1x32xf32>
    tpu.vector_store %arg5[%c0_75, %c5_76, %c0_77], %227 {strides = array<i32>} : memref<1x8x32xf32, #tpu.memory_space<vmem>>, vector<1x1x32xf32>,
    %c0_78 = arith.constant 0 : index
    %c6 = arith.constant 6 : index
    %c0_79 = arith.constant 0 : index
    %228 = vector.load %arg2[%c0_78, %c6, %c0_79] : memref<1x8x128xf32, #tpu.memory_space<vmem>>, vector<1x1x128xf32>
    %229 = vector.shape_cast %228 : vector<1x1x128xf32> to vector<1x128xf32>
    %230 = arith.truncf %220 : vector<1x32xf32> to vector<1x32xbf16>
    %cst_80 = arith.constant dense<0.000000e+00> : vector<1x128xf32>
    %231 = tpu.matmul %230, %3, %cst_80 {dimension_numbers = #tpu.dot_dimension_numbers<[1], [0], [0], [1], [0, 0, 1, 1], [], []>} : vector<1x32xbf16>, vector<32x128xbf16>, vector<1x128xf32> -> vector<1x128xf32>
    %232 = arith.addf %229, %231 : vector<1x128xf32>
    %233 = vector.extract_strided_slice %232 {offsets = [0, 0], sizes = [1, 32], strides = [1, 1]} : vector<1x128xf32> to vector<1x32xf32>
    %234 = arith.negf %233 : vector<1x32xf32>
    %235 = math.exp %234 : vector<1x32xf32>
    %cst_81 = arith.constant 1.000000e+00 : f32
    %236 = vector.broadcast %cst_81 : f32 to vector<1x32xf32>
    %237 = arith.addf %236, %235 : vector<1x32xf32>
    %238 = arith.divf %236, %237 : vector<1x32xf32>
    %239 = vector.extract_strided_slice %232 {offsets = [0, 32], sizes = [1, 32], strides = [1, 1]} : vector<1x128xf32> to vector<1x32xf32>
    %240 = arith.negf %239 : vector<1x32xf32>
    %241 = math.exp %240 : vector<1x32xf32>
    %cst_82 = arith.constant 1.000000e+00 : f32
    %242 = vector.broadcast %cst_82 : f32 to vector<1x32xf32>
    %243 = arith.addf %242, %241 : vector<1x32xf32>
    %244 = arith.divf %242, %243 : vector<1x32xf32>
    %245 = vector.extract_strided_slice %232 {offsets = [0, 64], sizes = [1, 32], strides = [1, 1]} : vector<1x128xf32> to vector<1x32xf32>
    %246 = math.tanh %245 : vector<1x32xf32>
    %247 = vector.extract_strided_slice %232 {offsets = [0, 96], sizes = [1, 32], strides = [1, 1]} : vector<1x128xf32> to vector<1x32xf32>
    %248 = arith.negf %247 : vector<1x32xf32>
    %249 = math.exp %248 : vector<1x32xf32>
    %cst_83 = arith.constant 1.000000e+00 : f32
    %250 = vector.broadcast %cst_83 : f32 to vector<1x32xf32>
    %251 = arith.addf %250, %249 : vector<1x32xf32>
    %252 = arith.divf %250, %251 : vector<1x32xf32>
    %253 = arith.mulf %244, %218 : vector<1x32xf32>
    %254 = arith.mulf %238, %246 : vector<1x32xf32>
    %255 = arith.addf %253, %254 : vector<1x32xf32>
    %256 = math.tanh %255 : vector<1x32xf32>
    %257 = arith.mulf %252, %256 : vector<1x32xf32>
    %c0_84 = arith.constant 0 : index
    %c6_85 = arith.constant 6 : index
    %c0_86 = arith.constant 0 : index
    %258 = vector.load %arg4[%c0_84, %c6_85, %c0_86] : memref<1x8x1xf32, #tpu.memory_space<vmem>>, vector<1x1x1xf32>
    %259 = vector.shape_cast %258 : vector<1x1x1xf32> to vector<1x1xf32>
    %260 = vector.broadcast %259 : vector<1x1xf32> to vector<1x32xf32>
    %261 = arith.mulf %257, %260 : vector<1x32xf32>
    %c0_87 = arith.constant 0 : index
    %c6_88 = arith.constant 6 : index
    %c0_89 = arith.constant 0 : index
    %262 = vector.load %arg5[%c0_87, %c6_88, %c0_89] : memref<1x8x32xf32, #tpu.memory_space<vmem>>, vector<1x1x32xf32>
    %263 = vector.shape_cast %262 : vector<1x1x32xf32> to vector<1x32xf32>
    %264 = vector.shape_cast %261 : vector<1x32xf32> to vector<1x1x32xf32>
    tpu.vector_store %arg5[%c0_87, %c6_88, %c0_89], %264 {strides = array<i32>} : memref<1x8x32xf32, #tpu.memory_space<vmem>>, vector<1x1x32xf32>,
    %c0_90 = arith.constant 0 : index
    %c7 = arith.constant 7 : index
    %c0_91 = arith.constant 0 : index
    %265 = vector.load %arg2[%c0_90, %c7, %c0_91] : memref<1x8x128xf32, #tpu.memory_space<vmem>>, vector<1x1x128xf32>
    %266 = vector.shape_cast %265 : vector<1x1x128xf32> to vector<1x128xf32>
    %267 = arith.truncf %257 : vector<1x32xf32> to vector<1x32xbf16>
    %cst_92 = arith.constant dense<0.000000e+00> : vector<1x128xf32>
    %268 = tpu.matmul %267, %3, %cst_92 {dimension_numbers = #tpu.dot_dimension_numbers<[1], [0], [0], [1], [0, 0, 1, 1], [], []>} : vector<1x32xbf16>, vector<32x128xbf16>, vector<1x128xf32> -> vector<1x128xf32>
    %269 = arith.addf %266, %268 : vector<1x128xf32>
    %270 = vector.extract_strided_slice %269 {offsets = [0, 0], sizes = [1, 32], strides = [1, 1]} : vector<1x128xf32> to vector<1x32xf32>
    %271 = arith.negf %270 : vector<1x32xf32>
    %272 = math.exp %271 : vector<1x32xf32>
    %cst_93 = arith.constant 1.000000e+00 : f32
    %273 = vector.broadcast %cst_93 : f32 to vector<1x32xf32>
    %274 = arith.addf %273, %272 : vector<1x32xf32>
    %275 = arith.divf %273, %274 : vector<1x32xf32>
    %276 = vector.extract_strided_slice %269 {offsets = [0, 32], sizes = [1, 32], strides = [1, 1]} : vector<1x128xf32> to vector<1x32xf32>
    %277 = arith.negf %276 : vector<1x32xf32>
    %278 = math.exp %277 : vector<1x32xf32>
    %cst_94 = arith.constant 1.000000e+00 : f32
    %279 = vector.broadcast %cst_94 : f32 to vector<1x32xf32>
    %280 = arith.addf %279, %278 : vector<1x32xf32>
    %281 = arith.divf %279, %280 : vector<1x32xf32>
    %282 = vector.extract_strided_slice %269 {offsets = [0, 64], sizes = [1, 32], strides = [1, 1]} : vector<1x128xf32> to vector<1x32xf32>
    %283 = math.tanh %282 : vector<1x32xf32>
    %284 = vector.extract_strided_slice %269 {offsets = [0, 96], sizes = [1, 32], strides = [1, 1]} : vector<1x128xf32> to vector<1x32xf32>
    %285 = arith.negf %284 : vector<1x32xf32>
    %286 = math.exp %285 : vector<1x32xf32>
    %cst_95 = arith.constant 1.000000e+00 : f32
    %287 = vector.broadcast %cst_95 : f32 to vector<1x32xf32>
    %288 = arith.addf %287, %286 : vector<1x32xf32>
    %289 = arith.divf %287, %288 : vector<1x32xf32>
    %290 = arith.mulf %281, %255 : vector<1x32xf32>
    %291 = arith.mulf %275, %283 : vector<1x32xf32>
    %292 = arith.addf %290, %291 : vector<1x32xf32>
    %293 = math.tanh %292 : vector<1x32xf32>
    %294 = arith.mulf %289, %293 : vector<1x32xf32>
    %c0_96 = arith.constant 0 : index
    %c7_97 = arith.constant 7 : index
    %c0_98 = arith.constant 0 : index
    %295 = vector.load %arg4[%c0_96, %c7_97, %c0_98] : memref<1x8x1xf32, #tpu.memory_space<vmem>>, vector<1x1x1xf32>
    %296 = vector.shape_cast %295 : vector<1x1x1xf32> to vector<1x1xf32>
    %297 = vector.broadcast %296 : vector<1x1xf32> to vector<1x32xf32>
    %298 = arith.mulf %294, %297 : vector<1x32xf32>
    %c0_99 = arith.constant 0 : index
    %c7_100 = arith.constant 7 : index
    %c0_101 = arith.constant 0 : index
    %299 = vector.load %arg5[%c0_99, %c7_100, %c0_101] : memref<1x8x32xf32, #tpu.memory_space<vmem>>, vector<1x1x32xf32>
    %300 = vector.shape_cast %299 : vector<1x1x32xf32> to vector<1x32xf32>
    %301 = vector.shape_cast %298 : vector<1x32xf32> to vector<1x1x32xf32>
    tpu.vector_store %arg5[%c0_99, %c7_100, %c0_101], %301 {strides = array<i32>} : memref<1x8x32xf32, #tpu.memory_space<vmem>>, vector<1x1x32xf32>,
    %c0_102 = arith.constant 0 : index
    %c0_103 = arith.constant 0 : index
    %302 = vector.load %arg6[%c0_102, %c0_103] : memref<1x32xf32, #tpu.memory_space<vmem>>, vector<1x32xf32>
    tpu.vector_store %arg6[%c0_102, %c0_103], %294 {strides = array<i32>} : memref<1x32xf32, #tpu.memory_space<vmem>>, vector<1x32xf32>,
    %c0_104 = arith.constant 0 : index
    %c0_105 = arith.constant 0 : index
    %303 = vector.load %arg7[%c0_104, %c0_105] : memref<1x32xf32, #tpu.memory_space<vmem>>, vector<1x32xf32>
    tpu.vector_store %arg7[%c0_104, %c0_105], %292 {strides = array<i32>} : memref<1x32xf32, #tpu.memory_space<vmem>>, vector<1x32xf32>,
    return
  }
  func.func @transform_0(%arg0: i32, %arg1: i32) -> (i32, i32, i32) {
    %c0_i32 = arith.constant 0 : i32
    %c0_i32_0 = arith.constant 0 : i32
    return %arg0, %arg1, %c0_i32 : i32, i32, i32
  }
  func.func @transform_1(%arg0: i32, %arg1: i32) -> (i32, i32) {
    %c0_i32 = arith.constant 0 : i32
    %c0_i32_0 = arith.constant 0 : i32
    %c0_i32_1 = arith.constant 0 : i32
    return %c0_i32, %c0_i32_0 : i32, i32
  }
  func.func @transform_2(%arg0: i32, %arg1: i32) -> (i32, i32, i32) {
    %c0_i32 = arith.constant 0 : i32
    %c0_i32_0 = arith.constant 0 : i32
    return %arg0, %arg1, %c0_i32 : i32, i32, i32
  }
  func.func @transform_3(%arg0: i32, %arg1: i32) -> (i32, i32, i32) {
    %c0_i32 = arith.constant 0 : i32
    %c0_i32_0 = arith.constant 0 : i32
    return %arg0, %arg1, %c0_i32 : i32, i32, i32
  }
}

module attributes {stable_mosaic.version = 11 : i64} {
  func.func @_linear_kernel(%arg0: i32, %arg1: memref<16x32xf32, #tpu.memory_space<vmem>>, %arg2: memref<32x96xbf16, #tpu.memory_space<vmem>>, %arg3: memref<1x96xf32, #tpu.memory_space<vmem>>, %arg4: memref<16x96xf32, #tpu.memory_space<vmem>>) attributes {dimension_semantics = [#tpu.dimension_semantics<parallel>], iteration_bounds = array<i64: 1>, scalar_prefetch = 0 : i64, scratch_operands = 0 : i64, tpu.core_type = #tpu.core_type<tc>, window_params = [{transform_indices = @transform_0, window_bounds = array<i64: 16, 32>}, {pipeline_mode = #tpu.pipeline_mode<synchronous>, transform_indices = @transform_1, window_bounds = array<i64: 32, 96>}, {pipeline_mode = #tpu.pipeline_mode<synchronous>, transform_indices = @transform_2, window_bounds = array<i64: 1, 96>}, {transform_indices = @transform_3, window_bounds = array<i64: 16, 96>}]} {
    %c0 = arith.constant 0 : index
    %c0_0 = arith.constant 0 : index
    %0 = vector.load %arg1[%c0, %c0_0] : memref<16x32xf32, #tpu.memory_space<vmem>>, vector<16x32xf32>
    %1 = arith.truncf %0 : vector<16x32xf32> to vector<16x32xbf16>
    %c0_1 = arith.constant 0 : index
    %c0_2 = arith.constant 0 : index
    %2 = vector.load %arg2[%c0_1, %c0_2] : memref<32x96xbf16, #tpu.memory_space<vmem>>, vector<32x96xbf16>
    %cst = arith.constant dense<0.000000e+00> : vector<16x96xf32>
    %3 = tpu.matmul %1, %2, %cst {dimension_numbers = #tpu.dot_dimension_numbers<[1], [0], [0], [1], [0, 0, 1, 1], [], []>} : vector<16x32xbf16>, vector<32x96xbf16>, vector<16x96xf32> -> vector<16x96xf32>
    %c0_3 = arith.constant 0 : index
    %c0_4 = arith.constant 0 : index
    %4 = vector.load %arg3[%c0_3, %c0_4] : memref<1x96xf32, #tpu.memory_space<vmem>>, vector<1x96xf32>
    %5 = vector.broadcast %4 : vector<1x96xf32> to vector<16x96xf32>
    %6 = arith.addf %3, %5 : vector<16x96xf32>
    %c0_5 = arith.constant 0 : index
    %c0_6 = arith.constant 0 : index
    %7 = vector.load %arg4[%c0_5, %c0_6] : memref<16x96xf32, #tpu.memory_space<vmem>>, vector<16x96xf32>
    tpu.vector_store %arg4[%c0_5, %c0_6], %6 {strides = array<i32>} : memref<16x96xf32, #tpu.memory_space<vmem>>, vector<16x96xf32>,
    return
  }
  func.func @transform_0(%arg0: i32) -> (i32, i32) {
    %c0_i32 = arith.constant 0 : i32
    %c0_i32_0 = arith.constant 0 : i32
    return %arg0, %c0_i32 : i32, i32
  }
  func.func @transform_1(%arg0: i32) -> (i32, i32) {
    %c0_i32 = arith.constant 0 : i32
    %c0_i32_0 = arith.constant 0 : i32
    %c0_i32_1 = arith.constant 0 : i32
    return %c0_i32, %c0_i32_0 : i32, i32
  }
  func.func @transform_2(%arg0: i32) -> (i32, i32) {
    %c0_i32 = arith.constant 0 : i32
    %c0_i32_0 = arith.constant 0 : i32
    %c0_i32_1 = arith.constant 0 : i32
    return %c0_i32, %c0_i32_0 : i32, i32
  }
  func.func @transform_3(%arg0: i32) -> (i32, i32) {
    %c0_i32 = arith.constant 0 : i32
    %c0_i32_0 = arith.constant 0 : i32
    return %arg0, %c0_i32 : i32, i32
  }
}

module attributes {stable_mosaic.version = 11 : i64} {
  func.func @_flash_attn_kernel(%arg0: i32, %arg1: i32, %arg2: memref<1xi32, #tpu.memory_space<smem>>, %arg3: memref<1xi32, #tpu.memory_space<smem>>, %arg4: memref<2x8x32xf32, #tpu.memory_space<vmem>>, %arg5: memref<2x8x32xf32, #tpu.memory_space<vmem>>, %arg6: memref<2x8x32xf32, #tpu.memory_space<vmem>>, %arg7: memref<32x128xbf16, #tpu.memory_space<vmem>>, %arg8: memref<1x128xf32, #tpu.memory_space<vmem>>, %arg9: memref<2x8x1xf32, #tpu.memory_space<vmem>>, %arg10: memref<2x8x128xf32, #tpu.memory_space<vmem>>, %arg11: memref<2x8x1xf32, #tpu.memory_space<vmem>>, %arg12: memref<2x8x1xf32, #tpu.memory_space<vmem>>, %arg13: memref<2x8x32xf32, #tpu.memory_space<vmem>>) attributes {dimension_semantics = [#tpu.dimension_semantics<parallel>, #tpu.dimension_semantics<arbitrary>], iteration_bounds = array<i64: 1, 1>, scalar_prefetch = 2 : i64, scratch_operands = 3 : i64, tpu.core_type = #tpu.core_type<tc>, window_params = [{transform_indices = @transform_0, window_bounds = array<i64: 2, 8, 32>}, {transform_indices = @transform_1, window_bounds = array<i64: 2, 8, 32>}, {transform_indices = @transform_2, window_bounds = array<i64: 2, 8, 32>}, {pipeline_mode = #tpu.pipeline_mode<synchronous>, transform_indices = @transform_3, window_bounds = array<i64: 32, 128>}, {pipeline_mode = #tpu.pipeline_mode<synchronous>, transform_indices = @transform_4, window_bounds = array<i64: 1, 128>}, {transform_indices = @transform_5, window_bounds = array<i64: 2, 8, 1>}, {transform_indices = @transform_6, window_bounds = array<i64: 2, 8, 128>}]} {
    %0 = arith.index_cast %arg1 : i32 to index
    %1 = memref.load %arg2[%0] : memref<1xi32, #tpu.memory_space<smem>>
    %2 = arith.index_cast %arg1 : i32 to index
    %3 = memref.load %arg3[%2] : memref<1xi32, #tpu.memory_space<smem>>
    %c0_i32 = arith.constant 0 : i32
    %4 = arith.cmpi eq, %3, %c0_i32 : i32
    %5 = arith.extui %4 : i1 to i32
    %c0_i32_0 = arith.constant 0 : i32
    %6 = arith.cmpi ne, %5, %c0_i32_0 : i32
    scf.if %6 {
      %cst = arith.constant 0xFF800000 : f32
      %13 = vector.broadcast %cst : f32 to vector<2x8x1xf32>
      %c0 = arith.constant 0 : index
      %c0_3 = arith.constant 0 : index
      %c0_4 = arith.constant 0 : index
      %14 = vector.load %arg11[%c0, %c0_3, %c0_4] : memref<2x8x1xf32, #tpu.memory_space<vmem>>, vector<2x8x1xf32>
      tpu.vector_store %arg11[%c0, %c0_3, %c0_4], %13 {strides = array<i32>} : memref<2x8x1xf32, #tpu.memory_space<vmem>>, vector<2x8x1xf32>,
      %cst_5 = arith.constant 0.000000e+00 : f32
      %15 = vector.broadcast %cst_5 : f32 to vector<2x8x1xf32>
      %c0_6 = arith.constant 0 : index
      %c0_7 = arith.constant 0 : index
      %c0_8 = arith.constant 0 : index
      %16 = vector.load %arg12[%c0_6, %c0_7, %c0_8] : memref<2x8x1xf32, #tpu.memory_space<vmem>>, vector<2x8x1xf32>
      tpu.vector_store %arg12[%c0_6, %c0_7, %c0_8], %15 {strides = array<i32>} : memref<2x8x1xf32, #tpu.memory_space<vmem>>, vector<2x8x1xf32>,
      %cst_9 = arith.constant 0.000000e+00 : f32
      %17 = vector.broadcast %cst_9 : f32 to vector<2x8x32xf32>
      %c0_10 = arith.constant 0 : index
      %c0_11 = arith.constant 0 : index
      %c0_12 = arith.constant 0 : index
      %18 = vector.load %arg13[%c0_10, %c0_11, %c0_12] : memref<2x8x32xf32, #tpu.memory_space<vmem>>, vector<2x8x32xf32>
      tpu.vector_store %arg13[%c0_10, %c0_11, %c0_12], %17 {strides = array<i32>} : memref<2x8x32xf32, #tpu.memory_space<vmem>>, vector<2x8x32xf32>,
    } else {
    }
    %7 = arith.cmpi slt, %3, %1 : i32
    %8 = arith.extui %7 : i1 to i32
    %c0_i32_1 = arith.constant 0 : i32
    %9 = arith.cmpi ne, %8, %c0_i32_1 : i32
    scf.if %9 {
      %c0 = arith.constant 0 : index
      %c0_3 = arith.constant 0 : index
      %c0_4 = arith.constant 0 : index
      %13 = vector.load %arg4[%c0, %c0_3, %c0_4] : memref<2x8x32xf32, #tpu.memory_space<vmem>>, vector<2x8x32xf32>
      %14 = arith.truncf %13 : vector<2x8x32xf32> to vector<2x8x32xbf16>
      %c0_5 = arith.constant 0 : index
      %c0_6 = arith.constant 0 : index
      %c0_7 = arith.constant 0 : index
      %15 = vector.load %arg5[%c0_5, %c0_6, %c0_7] : memref<2x8x32xf32, #tpu.memory_space<vmem>>, vector<2x8x32xf32>
      %16 = arith.truncf %15 : vector<2x8x32xf32> to vector<2x8x32xbf16>
      "tpu.trace_start"() <{level = 10 : i32, message = "bqd,bkd->bqk"}> : () -> ()
      %cst = arith.constant dense<0.000000e+00> : vector<2x8x8xf32>
      %17 = tpu.matmul %14, %16, %cst {dimension_numbers = #tpu.dot_dimension_numbers<[2], [2], [1], [1], [0, 0, 0, 1, 1, 1], [0], [0]>} : vector<2x8x32xbf16>, vector<2x8x32xbf16>, vector<2x8x8xf32> -> vector<2x8x8xf32>
      "tpu.trace_stop"() : () -> ()
      %c0_8 = arith.constant 0 : index
      %c0_9 = arith.constant 0 : index
      %c0_10 = arith.constant 0 : index
      %18 = vector.load %arg11[%c0_8, %c0_9, %c0_10] : memref<2x8x1xf32, #tpu.memory_space<vmem>>, vector<2x8x1xf32>
      %cst_11 = arith.constant dense<0xFF800000> : vector<2x8xf32>
      %19 = vector.multi_reduction <maximumf>, %17, %cst_11 [2] : vector<2x8x8xf32> to vector<2x8xf32>
      %20 = vector.shape_cast %19 : vector<2x8xf32> to vector<2x8x1xf32>
      %21 = arith.maximumf %18, %20 : vector<2x8x1xf32>
      %22 = arith.subf %18, %21 : vector<2x8x1xf32>
      %23 = math.exp %22 : vector<2x8x1xf32>
      %24 = vector.broadcast %21 : vector<2x8x1xf32> to vector<2x8x8xf32>
      %25 = arith.subf %17, %24 : vector<2x8x8xf32>
      %26 = math.exp %25 : vector<2x8x8xf32>
      %c0_12 = arith.constant 0 : index
      %c0_13 = arith.constant 0 : index
      %c0_14 = arith.constant 0 : index
      %27 = vector.load %arg12[%c0_12, %c0_13, %c0_14] : memref<2x8x1xf32, #tpu.memory_space<vmem>>, vector<2x8x1xf32>
      %28 = arith.mulf %23, %27 : vector<2x8x1xf32>
      %cst_15 = arith.constant dense<0.000000e+00> : vector<2x8xf32>
      %29 = vector.multi_reduction <add>, %26, %cst_15 [2] : vector<2x8x8xf32> to vector<2x8xf32>
      %30 = vector.shape_cast %29 : vector<2x8xf32> to vector<2x8x1xf32>
      %31 = arith.addf %28, %30 : vector<2x8x1xf32>
      %c0_16 = arith.constant 0 : index
      %c0_17 = arith.constant 0 : index
      %c0_18 = arith.constant 0 : index
      %32 = vector.load %arg12[%c0_16, %c0_17, %c0_18] : memref<2x8x1xf32, #tpu.memory_space<vmem>>, vector<2x8x1xf32>
      tpu.vector_store %arg12[%c0_16, %c0_17, %c0_18], %31 {strides = array<i32>} : memref<2x8x1xf32, #tpu.memory_space<vmem>>, vector<2x8x1xf32>,
      %c0_19 = arith.constant 0 : index
      %c0_20 = arith.constant 0 : index
      %c0_21 = arith.constant 0 : index
      %33 = vector.load %arg13[%c0_19, %c0_20, %c0_21] : memref<2x8x32xf32, #tpu.memory_space<vmem>>, vector<2x8x32xf32>
      %34 = vector.broadcast %23 : vector<2x8x1xf32> to vector<2x8x32xf32>
      %35 = arith.mulf %34, %33 : vector<2x8x32xf32>
      %36 = arith.truncf %26 : vector<2x8x8xf32> to vector<2x8x8xbf16>
      %c0_22 = arith.constant 0 : index
      %c0_23 = arith.constant 0 : index
      %c0_24 = arith.constant 0 : index
      %37 = vector.load %arg6[%c0_22, %c0_23, %c0_24] : memref<2x8x32xf32, #tpu.memory_space<vmem>>, vector<2x8x32xf32>
      %38 = arith.truncf %37 : vector<2x8x32xf32> to vector<2x8x32xbf16>
      "tpu.trace_start"() <{level = 10 : i32, message = "bqk,bkd->bqd"}> : () -> ()
      %cst_25 = arith.constant dense<0.000000e+00> : vector<2x8x32xf32>
      %39 = tpu.matmul %36, %38, %cst_25 {dimension_numbers = #tpu.dot_dimension_numbers<[2], [1], [1], [2], [0, 0, 0, 1, 1, 2], [0], [0]>} : vector<2x8x8xbf16>, vector<2x8x32xbf16>, vector<2x8x32xf32> -> vector<2x8x32xf32>
      "tpu.trace_stop"() : () -> ()
      %40 = arith.addf %35, %39 : vector<2x8x32xf32>
      %c0_26 = arith.constant 0 : index
      %c0_27 = arith.constant 0 : index
      %c0_28 = arith.constant 0 : index
      %41 = vector.load %arg13[%c0_26, %c0_27, %c0_28] : memref<2x8x32xf32, #tpu.memory_space<vmem>>, vector<2x8x32xf32>
      tpu.vector_store %arg13[%c0_26, %c0_27, %c0_28], %40 {strides = array<i32>} : memref<2x8x32xf32, #tpu.memory_space<vmem>>, vector<2x8x32xf32>,
      %c0_29 = arith.constant 0 : index
      %c0_30 = arith.constant 0 : index
      %c0_31 = arith.constant 0 : index
      %42 = vector.load %arg11[%c0_29, %c0_30, %c0_31] : memref<2x8x1xf32, #tpu.memory_space<vmem>>, vector<2x8x1xf32>
      tpu.vector_store %arg11[%c0_29, %c0_30, %c0_31], %21 {strides = array<i32>} : memref<2x8x1xf32, #tpu.memory_space<vmem>>, vector<2x8x1xf32>,
    } else {
    }
    %10 = arith.cmpi eq, %3, %1 : i32
    %11 = arith.extui %10 : i1 to i32
    %c0_i32_2 = arith.constant 0 : i32
    %12 = arith.cmpi ne, %11, %c0_i32_2 : i32
    scf.if %12 {
      %c0 = arith.constant 0 : index
      %c0_3 = arith.constant 0 : index
      %c0_4 = arith.constant 0 : index
      %13 = vector.load %arg4[%c0, %c0_3, %c0_4] : memref<2x8x32xf32, #tpu.memory_space<vmem>>, vector<2x8x32xf32>
      %14 = arith.truncf %13 : vector<2x8x32xf32> to vector<2x8x32xbf16>
      %c0_5 = arith.constant 0 : index
      %c0_6 = arith.constant 0 : index
      %c0_7 = arith.constant 0 : index
      %15 = vector.load %arg5[%c0_5, %c0_6, %c0_7] : memref<2x8x32xf32, #tpu.memory_space<vmem>>, vector<2x8x32xf32>
      %16 = arith.truncf %15 : vector<2x8x32xf32> to vector<2x8x32xbf16>
      "tpu.trace_start"() <{level = 10 : i32, message = "bqd,bkd->bqk"}> : () -> ()
      %cst = arith.constant dense<0.000000e+00> : vector<2x8x8xf32>
      %17 = tpu.matmul %14, %16, %cst {dimension_numbers = #tpu.dot_dimension_numbers<[2], [2], [1], [1], [0, 0, 0, 1, 1, 1], [0], [0]>} : vector<2x8x32xbf16>, vector<2x8x32xbf16>, vector<2x8x8xf32> -> vector<2x8x8xf32>
      "tpu.trace_stop"() : () -> ()
      %18 = tpu.iota {dimensions = array<i32: 1>} : vector<2x8x8xi32>
      %19 = tpu.iota {dimensions = array<i32: 2>} : vector<2x8x8xi32>
      %20 = arith.cmpi sle, %19, %18 : vector<2x8x8xi32>
      %cst_8 = arith.constant -1.000000e+30 : f32
      %21 = vector.broadcast %cst_8 : f32 to vector<2x8x8xf32>
      %22 = arith.select %20, %17, %21 : vector<2x8x8xi1>, vector<2x8x8xf32>
      %c0_9 = arith.constant 0 : index
      %c0_10 = arith.constant 0 : index
      %c0_11 = arith.constant 0 : index
      %23 = vector.load %arg11[%c0_9, %c0_10, %c0_11] : memref<2x8x1xf32, #tpu.memory_space<vmem>>, vector<2x8x1xf32>
      %cst_12 = arith.constant dense<0xFF800000> : vector<2x8xf32>
      %24 = vector.multi_reduction <maximumf>, %22, %cst_12 [2] : vector<2x8x8xf32> to vector<2x8xf32>
      %25 = vector.shape_cast %24 : vector<2x8xf32> to vector<2x8x1xf32>
      %26 = arith.maximumf %23, %25 : vector<2x8x1xf32>
      %27 = arith.subf %23, %26 : vector<2x8x1xf32>
      %28 = math.exp %27 : vector<2x8x1xf32>
      %29 = vector.broadcast %26 : vector<2x8x1xf32> to vector<2x8x8xf32>
      %30 = arith.subf %22, %29 : vector<2x8x8xf32>
      %31 = math.exp %30 : vector<2x8x8xf32>
      %c0_13 = arith.constant 0 : index
      %c0_14 = arith.constant 0 : index
      %c0_15 = arith.constant 0 : index
      %32 = vector.load %arg12[%c0_13, %c0_14, %c0_15] : memref<2x8x1xf32, #tpu.memory_space<vmem>>, vector<2x8x1xf32>
      %33 = arith.mulf %28, %32 : vector<2x8x1xf32>
      %cst_16 = arith.constant dense<0.000000e+00> : vector<2x8xf32>
      %34 = vector.multi_reduction <add>, %31, %cst_16 [2] : vector<2x8x8xf32> to vector<2x8xf32>
      %35 = vector.shape_cast %34 : vector<2x8xf32> to vector<2x8x1xf32>
      %36 = arith.addf %33, %35 : vector<2x8x1xf32>
      %c0_17 = arith.constant 0 : index
      %c0_18 = arith.constant 0 : index
      %c0_19 = arith.constant 0 : index
      %37 = vector.load %arg12[%c0_17, %c0_18, %c0_19] : memref<2x8x1xf32, #tpu.memory_space<vmem>>, vector<2x8x1xf32>
      tpu.vector_store %arg12[%c0_17, %c0_18, %c0_19], %36 {strides = array<i32>} : memref<2x8x1xf32, #tpu.memory_space<vmem>>, vector<2x8x1xf32>,
      %c0_20 = arith.constant 0 : index
      %c0_21 = arith.constant 0 : index
      %c0_22 = arith.constant 0 : index
      %38 = vector.load %arg13[%c0_20, %c0_21, %c0_22] : memref<2x8x32xf32, #tpu.memory_space<vmem>>, vector<2x8x32xf32>
      %39 = vector.broadcast %28 : vector<2x8x1xf32> to vector<2x8x32xf32>
      %40 = arith.mulf %39, %38 : vector<2x8x32xf32>
      %41 = arith.truncf %31 : vector<2x8x8xf32> to vector<2x8x8xbf16>
      %c0_23 = arith.constant 0 : index
      %c0_24 = arith.constant 0 : index
      %c0_25 = arith.constant 0 : index
      %42 = vector.load %arg6[%c0_23, %c0_24, %c0_25] : memref<2x8x32xf32, #tpu.memory_space<vmem>>, vector<2x8x32xf32>
      %43 = arith.truncf %42 : vector<2x8x32xf32> to vector<2x8x32xbf16>
      "tpu.trace_start"() <{level = 10 : i32, message = "bqk,bkd->bqd"}> : () -> ()
      %cst_26 = arith.constant dense<0.000000e+00> : vector<2x8x32xf32>
      %44 = tpu.matmul %41, %43, %cst_26 {dimension_numbers = #tpu.dot_dimension_numbers<[2], [1], [1], [2], [0, 0, 0, 1, 1, 2], [0], [0]>} : vector<2x8x8xbf16>, vector<2x8x32xbf16>, vector<2x8x32xf32> -> vector<2x8x32xf32>
      "tpu.trace_stop"() : () -> ()
      %45 = arith.addf %40, %44 : vector<2x8x32xf32>
      %c0_27 = arith.constant 0 : index
      %c0_28 = arith.constant 0 : index
      %c0_29 = arith.constant 0 : index
      %46 = vector.load %arg13[%c0_27, %c0_28, %c0_29] : memref<2x8x32xf32, #tpu.memory_space<vmem>>, vector<2x8x32xf32>
      tpu.vector_store %arg13[%c0_27, %c0_28, %c0_29], %45 {strides = array<i32>} : memref<2x8x32xf32, #tpu.memory_space<vmem>>, vector<2x8x32xf32>,
      %c0_30 = arith.constant 0 : index
      %c0_31 = arith.constant 0 : index
      %c0_32 = arith.constant 0 : index
      %47 = vector.load %arg11[%c0_30, %c0_31, %c0_32] : memref<2x8x1xf32, #tpu.memory_space<vmem>>, vector<2x8x1xf32>
      tpu.vector_store %arg11[%c0_30, %c0_31, %c0_32], %26 {strides = array<i32>} : memref<2x8x1xf32, #tpu.memory_space<vmem>>, vector<2x8x1xf32>,
      %c0_33 = arith.constant 0 : index
      %c0_34 = arith.constant 0 : index
      %c0_35 = arith.constant 0 : index
      %48 = vector.load %arg13[%c0_33, %c0_34, %c0_35] : memref<2x8x32xf32, #tpu.memory_space<vmem>>, vector<2x8x32xf32>
      %c0_36 = arith.constant 0 : index
      %c0_37 = arith.constant 0 : index
      %c0_38 = arith.constant 0 : index
      %49 = vector.load %arg12[%c0_36, %c0_37, %c0_38] : memref<2x8x1xf32, #tpu.memory_space<vmem>>, vector<2x8x1xf32>
      %50 = tpu.reciprocal %49 {approx = true} : vector<2x8x1xf32> -> vector<2x8x1xf32>
      %51 = vector.broadcast %50 : vector<2x8x1xf32> to vector<2x8x32xf32>
      %52 = arith.mulf %48, %51 : vector<2x8x32xf32>
      %53 = vector.extract_strided_slice %52 {offsets = [0, 0, 0], sizes = [1, 8, 32], strides = [1, 1, 1]} : vector<2x8x32xf32> to vector<1x8x32xf32>
      %54 = vector.shape_cast %53 : vector<1x8x32xf32> to vector<8x32xf32>
      %55 = arith.truncf %54 : vector<8x32xf32> to vector<8x32xbf16>
      %c0_39 = arith.constant 0 : index
      %c0_40 = arith.constant 0 : index
      %56 = vector.load %arg7[%c0_39, %c0_40] : memref<32x128xbf16, #tpu.memory_space<vmem>>, vector<32x128xbf16>
      %cst_41 = arith.constant dense<0.000000e+00> : vector<8x128xf32>
      %57 = tpu.matmul %55, %56, %cst_41 {dimension_numbers = #tpu.dot_dimension_numbers<[1], [0], [0], [1], [0, 0, 1, 1], [], []>} : vector<8x32xbf16>, vector<32x128xbf16>, vector<8x128xf32> -> vector<8x128xf32>
      %c0_42 = arith.constant 0 : index
      %c0_43 = arith.constant 0 : index
      %58 = vector.load %arg8[%c0_42, %c0_43] : memref<1x128xf32, #tpu.memory_space<vmem>>, vector<1x128xf32>
      %59 = vector.shape_cast %58 : vector<1x128xf32> to vector<128xf32>
      %60 = vector.shape_cast %59 : vector<128xf32> to vector<1x128xf32>
      %61 = vector.broadcast %60 : vector<1x128xf32> to vector<8x128xf32>
      %62 = arith.addf %57, %61 : vector<8x128xf32>
      %c0_44 = arith.constant 0 : index
      %c0_45 = arith.constant 0 : index
      %c0_46 = arith.constant 0 : index
      %63 = vector.load %arg9[%c0_44, %c0_45, %c0_46] : memref<2x8x1xf32, #tpu.memory_space<vmem>>, vector<1x8x1xf32>
      %64 = vector.shape_cast %63 : vector<1x8x1xf32> to vector<8x1xf32>
      %65 = vector.broadcast %64 : vector<8x1xf32> to vector<8x128xf32>
      %66 = arith.mulf %62, %65 : vector<8x128xf32>
      %c0_47 = arith.constant 0 : index
      %c0_48 = arith.constant 0 : index
      %c0_49 = arith.constant 0 : index
      %67 = vector.load %arg10[%c0_47, %c0_48, %c0_49] : memref<2x8x128xf32, #tpu.memory_space<vmem>>, vector<1x8x128xf32>
      %68 = vector.shape_cast %67 : vector<1x8x128xf32> to vector<8x128xf32>
      %69 = vector.shape_cast %66 : vector<8x128xf32> to vector<1x8x128xf32>
      tpu.vector_store %arg10[%c0_47, %c0_48, %c0_49], %69 {strides = array<i32>} : memref<2x8x128xf32, #tpu.memory_space<vmem>>, vector<1x8x128xf32>,
      %70 = vector.extract_strided_slice %52 {offsets = [1, 0, 0], sizes = [1, 8, 32], strides = [1, 1, 1]} : vector<2x8x32xf32> to vector<1x8x32xf32>
      %71 = vector.shape_cast %70 : vector<1x8x32xf32> to vector<8x32xf32>
      %72 = arith.truncf %71 : vector<8x32xf32> to vector<8x32xbf16>
      %c0_50 = arith.constant 0 : index
      %c0_51 = arith.constant 0 : index
      %73 = vector.load %arg7[%c0_50, %c0_51] : memref<32x128xbf16, #tpu.memory_space<vmem>>, vector<32x128xbf16>
      %cst_52 = arith.constant dense<0.000000e+00> : vector<8x128xf32>
      %74 = tpu.matmul %72, %73, %cst_52 {dimension_numbers = #tpu.dot_dimension_numbers<[1], [0], [0], [1], [0, 0, 1, 1], [], []>} : vector<8x32xbf16>, vector<32x128xbf16>, vector<8x128xf32> -> vector<8x128xf32>
      %c0_53 = arith.constant 0 : index
      %c0_54 = arith.constant 0 : index
      %75 = vector.load %arg8[%c0_53, %c0_54] : memref<1x128xf32, #tpu.memory_space<vmem>>, vector<1x128xf32>
      %76 = vector.shape_cast %75 : vector<1x128xf32> to vector<128xf32>
      %77 = vector.shape_cast %76 : vector<128xf32> to vector<1x128xf32>
      %78 = vector.broadcast %77 : vector<1x128xf32> to vector<8x128xf32>
      %79 = arith.addf %74, %78 : vector<8x128xf32>
      %c1 = arith.constant 1 : index
      %c0_55 = arith.constant 0 : index
      %c0_56 = arith.constant 0 : index
      %80 = vector.load %arg9[%c1, %c0_55, %c0_56] : memref<2x8x1xf32, #tpu.memory_space<vmem>>, vector<1x8x1xf32>
      %81 = vector.shape_cast %80 : vector<1x8x1xf32> to vector<8x1xf32>
      %82 = vector.broadcast %81 : vector<8x1xf32> to vector<8x128xf32>
      %83 = arith.mulf %79, %82 : vector<8x128xf32>
      %c1_57 = arith.constant 1 : index
      %c0_58 = arith.constant 0 : index
      %c0_59 = arith.constant 0 : index
      %84 = vector.load %arg10[%c1_57, %c0_58, %c0_59] : memref<2x8x128xf32, #tpu.memory_space<vmem>>, vector<1x8x128xf32>
      %85 = vector.shape_cast %84 : vector<1x8x128xf32> to vector<8x128xf32>
      %86 = vector.shape_cast %83 : vector<8x128xf32> to vector<1x8x128xf32>
      tpu.vector_store %arg10[%c1_57, %c0_58, %c0_59], %86 {strides = array<i32>} : memref<2x8x128xf32, #tpu.memory_space<vmem>>, vector<1x8x128xf32>,
    } else {
    }
    return
  }
  func.func @transform_0(%arg0: i32, %arg1: i32, %arg2: memref<1xi32, #tpu.memory_space<smem>>, %arg3: memref<1xi32, #tpu.memory_space<smem>>) -> (i32, i32, i32) {
    %0 = arith.index_cast %arg1 : i32 to index
    %1 = memref.load %arg2[%0] : memref<1xi32, #tpu.memory_space<smem>>
    %c0_i32 = arith.constant 0 : i32
    %c0_i32_0 = arith.constant 0 : i32
    return %arg0, %1, %c0_i32 : i32, i32, i32
  }
  func.func @transform_1(%arg0: i32, %arg1: i32, %arg2: memref<1xi32, #tpu.memory_space<smem>>, %arg3: memref<1xi32, #tpu.memory_space<smem>>) -> (i32, i32, i32) {
    %0 = arith.index_cast %arg1 : i32 to index
    %1 = memref.load %arg3[%0] : memref<1xi32, #tpu.memory_space<smem>>
    %c0_i32 = arith.constant 0 : i32
    %c0_i32_0 = arith.constant 0 : i32
    return %arg0, %1, %c0_i32 : i32, i32, i32
  }
  func.func @transform_2(%arg0: i32, %arg1: i32, %arg2: memref<1xi32, #tpu.memory_space<smem>>, %arg3: memref<1xi32, #tpu.memory_space<smem>>) -> (i32, i32, i32) {
    %0 = arith.index_cast %arg1 : i32 to index
    %1 = memref.load %arg3[%0] : memref<1xi32, #tpu.memory_space<smem>>
    %c0_i32 = arith.constant 0 : i32
    %c0_i32_0 = arith.constant 0 : i32
    return %arg0, %1, %c0_i32 : i32, i32, i32
  }
  func.func @transform_3(%arg0: i32, %arg1: i32, %arg2: memref<1xi32, #tpu.memory_space<smem>>, %arg3: memref<1xi32, #tpu.memory_space<smem>>) -> (i32, i32) {
    %c0_i32 = arith.constant 0 : i32
    %c0_i32_0 = arith.constant 0 : i32
    %c0_i32_1 = arith.constant 0 : i32
    return %c0_i32, %c0_i32_0 : i32, i32
  }
  func.func @transform_4(%arg0: i32, %arg1: i32, %arg2: memref<1xi32, #tpu.memory_space<smem>>, %arg3: memref<1xi32, #tpu.memory_space<smem>>) -> (i32, i32) {
    %c0_i32 = arith.constant 0 : i32
    %c0_i32_0 = arith.constant 0 : i32
    %c0_i32_1 = arith.constant 0 : i32
    return %c0_i32, %c0_i32_0 : i32, i32
  }
  func.func @transform_5(%arg0: i32, %arg1: i32, %arg2: memref<1xi32, #tpu.memory_space<smem>>, %arg3: memref<1xi32, #tpu.memory_space<smem>>) -> (i32, i32, i32) {
    %0 = arith.index_cast %arg1 : i32 to index
    %1 = memref.load %arg2[%0] : memref<1xi32, #tpu.memory_space<smem>>
    %c0_i32 = arith.constant 0 : i32
    %c0_i32_0 = arith.constant 0 : i32
    return %arg0, %1, %c0_i32 : i32, i32, i32
  }
  func.func @transform_6(%arg0: i32, %arg1: i32, %arg2: memref<1xi32, #tpu.memory_space<smem>>, %arg3: memref<1xi32, #tpu.memory_space<smem>>) -> (i32, i32, i32) {
    %0 = arith.index_cast %arg1 : i32 to index
    %1 = memref.load %arg2[%0] : memref<1xi32, #tpu.memory_space<smem>>
    %c0_i32 = arith.constant 0 : i32
    %c0_i32_0 = arith.constant 0 : i32
    return %arg0, %1, %c0_i32 : i32, i32, i32
  }
}

module attributes {stable_mosaic.version = 11 : i64} {
  func.func @_flash_attn_kernel(%arg0: i32, %arg1: i32, %arg2: memref<1xi32, #tpu.memory_space<smem>>, %arg3: memref<1xi32, #tpu.memory_space<smem>>, %arg4: memref<2x8x32xf32, #tpu.memory_space<vmem>>, %arg5: memref<2x8x32xf32, #tpu.memory_space<vmem>>, %arg6: memref<2x8x32xf32, #tpu.memory_space<vmem>>, %arg7: memref<32x128xbf16, #tpu.memory_space<vmem>>, %arg8: memref<1x128xf32, #tpu.memory_space<vmem>>, %arg9: memref<2x8x1xf32, #tpu.memory_space<vmem>>, %arg10: memref<2x8x32xf32, #tpu.memory_space<vmem>>, %arg11: memref<2x8x1xf32, #tpu.memory_space<vmem>>, %arg12: memref<2x8x1xf32, #tpu.memory_space<vmem>>, %arg13: memref<2x8x32xf32, #tpu.memory_space<vmem>>) attributes {dimension_semantics = [#tpu.dimension_semantics<parallel>, #tpu.dimension_semantics<arbitrary>], iteration_bounds = array<i64: 1, 1>, scalar_prefetch = 2 : i64, scratch_operands = 3 : i64, tpu.core_type = #tpu.core_type<tc>, window_params = [{transform_indices = @transform_0, window_bounds = array<i64: 2, 8, 32>}, {transform_indices = @transform_1, window_bounds = array<i64: 2, 8, 32>}, {transform_indices = @transform_2, window_bounds = array<i64: 2, 8, 32>}, {pipeline_mode = #tpu.pipeline_mode<synchronous>, transform_indices = @transform_3, window_bounds = array<i64: 32, 128>}, {pipeline_mode = #tpu.pipeline_mode<synchronous>, transform_indices = @transform_4, window_bounds = array<i64: 1, 128>}, {transform_indices = @transform_5, window_bounds = array<i64: 2, 8, 1>}, {transform_indices = @transform_6, window_bounds = array<i64: 2, 8, 32>}]} {
    %0 = arith.index_cast %arg1 : i32 to index
    %1 = memref.load %arg2[%0] : memref<1xi32, #tpu.memory_space<smem>>
    %2 = arith.index_cast %arg1 : i32 to index
    %3 = memref.load %arg3[%2] : memref<1xi32, #tpu.memory_space<smem>>
    %c0_i32 = arith.constant 0 : i32
    %4 = arith.cmpi eq, %3, %c0_i32 : i32
    %5 = arith.extui %4 : i1 to i32
    %c0_i32_0 = arith.constant 0 : i32
    %6 = arith.cmpi ne, %5, %c0_i32_0 : i32
    scf.if %6 {
      %cst = arith.constant 0xFF800000 : f32
      %13 = vector.broadcast %cst : f32 to vector<2x8x1xf32>
      %c0 = arith.constant 0 : index
      %c0_3 = arith.constant 0 : index
      %c0_4 = arith.constant 0 : index
      %14 = vector.load %arg11[%c0, %c0_3, %c0_4] : memref<2x8x1xf32, #tpu.memory_space<vmem>>, vector<2x8x1xf32>
      tpu.vector_store %arg11[%c0, %c0_3, %c0_4], %13 {strides = array<i32>} : memref<2x8x1xf32, #tpu.memory_space<vmem>>, vector<2x8x1xf32>,
      %cst_5 = arith.constant 0.000000e+00 : f32
      %15 = vector.broadcast %cst_5 : f32 to vector<2x8x1xf32>
      %c0_6 = arith.constant 0 : index
      %c0_7 = arith.constant 0 : index
      %c0_8 = arith.constant 0 : index
      %16 = vector.load %arg12[%c0_6, %c0_7, %c0_8] : memref<2x8x1xf32, #tpu.memory_space<vmem>>, vector<2x8x1xf32>
      tpu.vector_store %arg12[%c0_6, %c0_7, %c0_8], %15 {strides = array<i32>} : memref<2x8x1xf32, #tpu.memory_space<vmem>>, vector<2x8x1xf32>,
      %cst_9 = arith.constant 0.000000e+00 : f32
      %17 = vector.broadcast %cst_9 : f32 to vector<2x8x32xf32>
      %c0_10 = arith.constant 0 : index
      %c0_11 = arith.constant 0 : index
      %c0_12 = arith.constant 0 : index
      %18 = vector.load %arg13[%c0_10, %c0_11, %c0_12] : memref<2x8x32xf32, #tpu.memory_space<vmem>>, vector<2x8x32xf32>
      tpu.vector_store %arg13[%c0_10, %c0_11, %c0_12], %17 {strides = array<i32>} : memref<2x8x32xf32, #tpu.memory_space<vmem>>, vector<2x8x32xf32>,
    } else {
    }
    %7 = arith.cmpi slt, %3, %1 : i32
    %8 = arith.extui %7 : i1 to i32
    %c0_i32_1 = arith.constant 0 : i32
    %9 = arith.cmpi ne, %8, %c0_i32_1 : i32
    scf.if %9 {
      %c0 = arith.constant 0 : index
      %c0_3 = arith.constant 0 : index
      %c0_4 = arith.constant 0 : index
      %13 = vector.load %arg4[%c0, %c0_3, %c0_4] : memref<2x8x32xf32, #tpu.memory_space<vmem>>, vector<2x8x32xf32>
      %14 = arith.truncf %13 : vector<2x8x32xf32> to vector<2x8x32xbf16>
      %c0_5 = arith.constant 0 : index
      %c0_6 = arith.constant 0 : index
      %c0_7 = arith.constant 0 : index
      %15 = vector.load %arg5[%c0_5, %c0_6, %c0_7] : memref<2x8x32xf32, #tpu.memory_space<vmem>>, vector<2x8x32xf32>
      %16 = arith.truncf %15 : vector<2x8x32xf32> to vector<2x8x32xbf16>
      "tpu.trace_start"() <{level = 10 : i32, message = "bqd,bkd->bqk"}> : () -> ()
      %cst = arith.constant dense<0.000000e+00> : vector<2x8x8xf32>
      %17 = tpu.matmul %14, %16, %cst {dimension_numbers = #tpu.dot_dimension_numbers<[2], [2], [1], [1], [0, 0, 0, 1, 1, 1], [0], [0]>} : vector<2x8x32xbf16>, vector<2x8x32xbf16>, vector<2x8x8xf32> -> vector<2x8x8xf32>
      "tpu.trace_stop"() : () -> ()
      %c0_8 = arith.constant 0 : index
      %c0_9 = arith.constant 0 : index
      %c0_10 = arith.constant 0 : index
      %18 = vector.load %arg11[%c0_8, %c0_9, %c0_10] : memref<2x8x1xf32, #tpu.memory_space<vmem>>, vector<2x8x1xf32>
      %cst_11 = arith.constant dense<0xFF800000> : vector<2x8xf32>
      %19 = vector.multi_reduction <maximumf>, %17, %cst_11 [2] : vector<2x8x8xf32> to vector<2x8xf32>
      %20 = vector.shape_cast %19 : vector<2x8xf32> to vector<2x8x1xf32>
      %21 = arith.maximumf %18, %20 : vector<2x8x1xf32>
      %22 = arith.subf %18, %21 : vector<2x8x1xf32>
      %23 = math.exp %22 : vector<2x8x1xf32>
      %24 = vector.broadcast %21 : vector<2x8x1xf32> to vector<2x8x8xf32>
      %25 = arith.subf %17, %24 : vector<2x8x8xf32>
      %26 = math.exp %25 : vector<2x8x8xf32>
      %c0_12 = arith.constant 0 : index
      %c0_13 = arith.constant 0 : index
      %c0_14 = arith.constant 0 : index
      %27 = vector.load %arg12[%c0_12, %c0_13, %c0_14] : memref<2x8x1xf32, #tpu.memory_space<vmem>>, vector<2x8x1xf32>
      %28 = arith.mulf %23, %27 : vector<2x8x1xf32>
      %cst_15 = arith.constant dense<0.000000e+00> : vector<2x8xf32>
      %29 = vector.multi_reduction <add>, %26, %cst_15 [2] : vector<2x8x8xf32> to vector<2x8xf32>
      %30 = vector.shape_cast %29 : vector<2x8xf32> to vector<2x8x1xf32>
      %31 = arith.addf %28, %30 : vector<2x8x1xf32>
      %c0_16 = arith.constant 0 : index
      %c0_17 = arith.constant 0 : index
      %c0_18 = arith.constant 0 : index
      %32 = vector.load %arg12[%c0_16, %c0_17, %c0_18] : memref<2x8x1xf32, #tpu.memory_space<vmem>>, vector<2x8x1xf32>
      tpu.vector_store %arg12[%c0_16, %c0_17, %c0_18], %31 {strides = array<i32>} : memref<2x8x1xf32, #tpu.memory_space<vmem>>, vector<2x8x1xf32>,
      %c0_19 = arith.constant 0 : index
      %c0_20 = arith.constant 0 : index
      %c0_21 = arith.constant 0 : index
      %33 = vector.load %arg13[%c0_19, %c0_20, %c0_21] : memref<2x8x32xf32, #tpu.memory_space<vmem>>, vector<2x8x32xf32>
      %34 = vector.broadcast %23 : vector<2x8x1xf32> to vector<2x8x32xf32>
      %35 = arith.mulf %34, %33 : vector<2x8x32xf32>
      %36 = arith.truncf %26 : vector<2x8x8xf32> to vector<2x8x8xbf16>
      %c0_22 = arith.constant 0 : index
      %c0_23 = arith.constant 0 : index
      %c0_24 = arith.constant 0 : index
      %37 = vector.load %arg6[%c0_22, %c0_23, %c0_24] : memref<2x8x32xf32, #tpu.memory_space<vmem>>, vector<2x8x32xf32>
      %38 = arith.truncf %37 : vector<2x8x32xf32> to vector<2x8x32xbf16>
      "tpu.trace_start"() <{level = 10 : i32, message = "bqk,bkd->bqd"}> : () -> ()
      %cst_25 = arith.constant dense<0.000000e+00> : vector<2x8x32xf32>
      %39 = tpu.matmul %36, %38, %cst_25 {dimension_numbers = #tpu.dot_dimension_numbers<[2], [1], [1], [2], [0, 0, 0, 1, 1, 2], [0], [0]>} : vector<2x8x8xbf16>, vector<2x8x32xbf16>, vector<2x8x32xf32> -> vector<2x8x32xf32>
      "tpu.trace_stop"() : () -> ()
      %40 = arith.addf %35, %39 : vector<2x8x32xf32>
      %c0_26 = arith.constant 0 : index
      %c0_27 = arith.constant 0 : index
      %c0_28 = arith.constant 0 : index
      %41 = vector.load %arg13[%c0_26, %c0_27, %c0_28] : memref<2x8x32xf32, #tpu.memory_space<vmem>>, vector<2x8x32xf32>
      tpu.vector_store %arg13[%c0_26, %c0_27, %c0_28], %40 {strides = array<i32>} : memref<2x8x32xf32, #tpu.memory_space<vmem>>, vector<2x8x32xf32>,
      %c0_29 = arith.constant 0 : index
      %c0_30 = arith.constant 0 : index
      %c0_31 = arith.constant 0 : index
      %42 = vector.load %arg11[%c0_29, %c0_30, %c0_31] : memref<2x8x1xf32, #tpu.memory_space<vmem>>, vector<2x8x1xf32>
      tpu.vector_store %arg11[%c0_29, %c0_30, %c0_31], %21 {strides = array<i32>} : memref<2x8x1xf32, #tpu.memory_space<vmem>>, vector<2x8x1xf32>,
    } else {
    }
    %10 = arith.cmpi eq, %3, %1 : i32
    %11 = arith.extui %10 : i1 to i32
    %c0_i32_2 = arith.constant 0 : i32
    %12 = arith.cmpi ne, %11, %c0_i32_2 : i32
    scf.if %12 {
      %c0 = arith.constant 0 : index
      %c0_3 = arith.constant 0 : index
      %c0_4 = arith.constant 0 : index
      %13 = vector.load %arg4[%c0, %c0_3, %c0_4] : memref<2x8x32xf32, #tpu.memory_space<vmem>>, vector<2x8x32xf32>
      %14 = arith.truncf %13 : vector<2x8x32xf32> to vector<2x8x32xbf16>
      %c0_5 = arith.constant 0 : index
      %c0_6 = arith.constant 0 : index
      %c0_7 = arith.constant 0 : index
      %15 = vector.load %arg5[%c0_5, %c0_6, %c0_7] : memref<2x8x32xf32, #tpu.memory_space<vmem>>, vector<2x8x32xf32>
      %16 = arith.truncf %15 : vector<2x8x32xf32> to vector<2x8x32xbf16>
      "tpu.trace_start"() <{level = 10 : i32, message = "bqd,bkd->bqk"}> : () -> ()
      %cst = arith.constant dense<0.000000e+00> : vector<2x8x8xf32>
      %17 = tpu.matmul %14, %16, %cst {dimension_numbers = #tpu.dot_dimension_numbers<[2], [2], [1], [1], [0, 0, 0, 1, 1, 1], [0], [0]>} : vector<2x8x32xbf16>, vector<2x8x32xbf16>, vector<2x8x8xf32> -> vector<2x8x8xf32>
      "tpu.trace_stop"() : () -> ()
      %18 = tpu.iota {dimensions = array<i32: 1>} : vector<2x8x8xi32>
      %19 = tpu.iota {dimensions = array<i32: 2>} : vector<2x8x8xi32>
      %20 = arith.cmpi sle, %19, %18 : vector<2x8x8xi32>
      %cst_8 = arith.constant -1.000000e+30 : f32
      %21 = vector.broadcast %cst_8 : f32 to vector<2x8x8xf32>
      %22 = arith.select %20, %17, %21 : vector<2x8x8xi1>, vector<2x8x8xf32>
      %c0_9 = arith.constant 0 : index
      %c0_10 = arith.constant 0 : index
      %c0_11 = arith.constant 0 : index
      %23 = vector.load %arg11[%c0_9, %c0_10, %c0_11] : memref<2x8x1xf32, #tpu.memory_space<vmem>>, vector<2x8x1xf32>
      %cst_12 = arith.constant dense<0xFF800000> : vector<2x8xf32>
      %24 = vector.multi_reduction <maximumf>, %22, %cst_12 [2] : vector<2x8x8xf32> to vector<2x8xf32>
      %25 = vector.shape_cast %24 : vector<2x8xf32> to vector<2x8x1xf32>
      %26 = arith.maximumf %23, %25 : vector<2x8x1xf32>
      %27 = arith.subf %23, %26 : vector<2x8x1xf32>
      %28 = math.exp %27 : vector<2x8x1xf32>
      %29 = vector.broadcast %26 : vector<2x8x1xf32> to vector<2x8x8xf32>
      %30 = arith.subf %22, %29 : vector<2x8x8xf32>
      %31 = math.exp %30 : vector<2x8x8xf32>
      %c0_13 = arith.constant 0 : index
      %c0_14 = arith.constant 0 : index
      %c0_15 = arith.constant 0 : index
      %32 = vector.load %arg12[%c0_13, %c0_14, %c0_15] : memref<2x8x1xf32, #tpu.memory_space<vmem>>, vector<2x8x1xf32>
      %33 = arith.mulf %28, %32 : vector<2x8x1xf32>
      %cst_16 = arith.constant dense<0.000000e+00> : vector<2x8xf32>
      %34 = vector.multi_reduction <add>, %31, %cst_16 [2] : vector<2x8x8xf32> to vector<2x8xf32>
      %35 = vector.shape_cast %34 : vector<2x8xf32> to vector<2x8x1xf32>
      %36 = arith.addf %33, %35 : vector<2x8x1xf32>
      %c0_17 = arith.constant 0 : index
      %c0_18 = arith.constant 0 : index
      %c0_19 = arith.constant 0 : index
      %37 = vector.load %arg12[%c0_17, %c0_18, %c0_19] : memref<2x8x1xf32, #tpu.memory_space<vmem>>, vector<2x8x1xf32>
      tpu.vector_store %arg12[%c0_17, %c0_18, %c0_19], %36 {strides = array<i32>} : memref<2x8x1xf32, #tpu.memory_space<vmem>>, vector<2x8x1xf32>,
      %c0_20 = arith.constant 0 : index
      %c0_21 = arith.constant 0 : index
      %c0_22 = arith.constant 0 : index
      %38 = vector.load %arg13[%c0_20, %c0_21, %c0_22] : memref<2x8x32xf32, #tpu.memory_space<vmem>>, vector<2x8x32xf32>
      %39 = vector.broadcast %28 : vector<2x8x1xf32> to vector<2x8x32xf32>
      %40 = arith.mulf %39, %38 : vector<2x8x32xf32>
      %41 = arith.truncf %31 : vector<2x8x8xf32> to vector<2x8x8xbf16>
      %c0_23 = arith.constant 0 : index
      %c0_24 = arith.constant 0 : index
      %c0_25 = arith.constant 0 : index
      %42 = vector.load %arg6[%c0_23, %c0_24, %c0_25] : memref<2x8x32xf32, #tpu.memory_space<vmem>>, vector<2x8x32xf32>
      %43 = arith.truncf %42 : vector<2x8x32xf32> to vector<2x8x32xbf16>
      "tpu.trace_start"() <{level = 10 : i32, message = "bqk,bkd->bqd"}> : () -> ()
      %cst_26 = arith.constant dense<0.000000e+00> : vector<2x8x32xf32>
      %44 = tpu.matmul %41, %43, %cst_26 {dimension_numbers = #tpu.dot_dimension_numbers<[2], [1], [1], [2], [0, 0, 0, 1, 1, 2], [0], [0]>} : vector<2x8x8xbf16>, vector<2x8x32xbf16>, vector<2x8x32xf32> -> vector<2x8x32xf32>
      "tpu.trace_stop"() : () -> ()
      %45 = arith.addf %40, %44 : vector<2x8x32xf32>
      %c0_27 = arith.constant 0 : index
      %c0_28 = arith.constant 0 : index
      %c0_29 = arith.constant 0 : index
      %46 = vector.load %arg13[%c0_27, %c0_28, %c0_29] : memref<2x8x32xf32, #tpu.memory_space<vmem>>, vector<2x8x32xf32>
      tpu.vector_store %arg13[%c0_27, %c0_28, %c0_29], %45 {strides = array<i32>} : memref<2x8x32xf32, #tpu.memory_space<vmem>>, vector<2x8x32xf32>,
      %c0_30 = arith.constant 0 : index
      %c0_31 = arith.constant 0 : index
      %c0_32 = arith.constant 0 : index
      %47 = vector.load %arg11[%c0_30, %c0_31, %c0_32] : memref<2x8x1xf32, #tpu.memory_space<vmem>>, vector<2x8x1xf32>
      tpu.vector_store %arg11[%c0_30, %c0_31, %c0_32], %26 {strides = array<i32>} : memref<2x8x1xf32, #tpu.memory_space<vmem>>, vector<2x8x1xf32>,
      %c0_33 = arith.constant 0 : index
      %c0_34 = arith.constant 0 : index
      %c0_35 = arith.constant 0 : index
      %48 = vector.load %arg13[%c0_33, %c0_34, %c0_35] : memref<2x8x32xf32, #tpu.memory_space<vmem>>, vector<2x8x32xf32>
      %c0_36 = arith.constant 0 : index
      %c0_37 = arith.constant 0 : index
      %c0_38 = arith.constant 0 : index
      %49 = vector.load %arg12[%c0_36, %c0_37, %c0_38] : memref<2x8x1xf32, #tpu.memory_space<vmem>>, vector<2x8x1xf32>
      %50 = tpu.reciprocal %49 {approx = true} : vector<2x8x1xf32> -> vector<2x8x1xf32>
      %51 = vector.broadcast %50 : vector<2x8x1xf32> to vector<2x8x32xf32>
      %52 = arith.mulf %48, %51 : vector<2x8x32xf32>
      %c0_39 = arith.constant 0 : index
      %c0_40 = arith.constant 0 : index
      %c0_41 = arith.constant 0 : index
      %53 = vector.load %arg10[%c0_39, %c0_40, %c0_41] : memref<2x8x32xf32, #tpu.memory_space<vmem>>, vector<2x8x32xf32>
      tpu.vector_store %arg10[%c0_39, %c0_40, %c0_41], %52 {strides = array<i32>} : memref<2x8x32xf32, #tpu.memory_space<vmem>>, vector<2x8x32xf32>,
    } else {
    }
    return
  }
  func.func @transform_0(%arg0: i32, %arg1: i32, %arg2: memref<1xi32, #tpu.memory_space<smem>>, %arg3: memref<1xi32, #tpu.memory_space<smem>>) -> (i32, i32, i32) {
    %0 = arith.index_cast %arg1 : i32 to index
    %1 = memref.load %arg2[%0] : memref<1xi32, #tpu.memory_space<smem>>
    %c0_i32 = arith.constant 0 : i32
    %c0_i32_0 = arith.constant 0 : i32
    return %arg0, %1, %c0_i32 : i32, i32, i32
  }
  func.func @transform_1(%arg0: i32, %arg1: i32, %arg2: memref<1xi32, #tpu.memory_space<smem>>, %arg3: memref<1xi32, #tpu.memory_space<smem>>) -> (i32, i32, i32) {
    %0 = arith.index_cast %arg1 : i32 to index
    %1 = memref.load %arg3[%0] : memref<1xi32, #tpu.memory_space<smem>>
    %c0_i32 = arith.constant 0 : i32
    %c0_i32_0 = arith.constant 0 : i32
    return %arg0, %1, %c0_i32 : i32, i32, i32
  }
  func.func @transform_2(%arg0: i32, %arg1: i32, %arg2: memref<1xi32, #tpu.memory_space<smem>>, %arg3: memref<1xi32, #tpu.memory_space<smem>>) -> (i32, i32, i32) {
    %0 = arith.index_cast %arg1 : i32 to index
    %1 = memref.load %arg3[%0] : memref<1xi32, #tpu.memory_space<smem>>
    %c0_i32 = arith.constant 0 : i32
    %c0_i32_0 = arith.constant 0 : i32
    return %arg0, %1, %c0_i32 : i32, i32, i32
  }
  func.func @transform_3(%arg0: i32, %arg1: i32, %arg2: memref<1xi32, #tpu.memory_space<smem>>, %arg3: memref<1xi32, #tpu.memory_space<smem>>) -> (i32, i32) {
    %c0_i32 = arith.constant 0 : i32
    %c0_i32_0 = arith.constant 0 : i32
    %c0_i32_1 = arith.constant 0 : i32
    return %c0_i32, %c0_i32_0 : i32, i32
  }
  func.func @transform_4(%arg0: i32, %arg1: i32, %arg2: memref<1xi32, #tpu.memory_space<smem>>, %arg3: memref<1xi32, #tpu.memory_space<smem>>) -> (i32, i32) {
    %c0_i32 = arith.constant 0 : i32
    %c0_i32_0 = arith.constant 0 : i32
    %c0_i32_1 = arith.constant 0 : i32
    return %c0_i32, %c0_i32_0 : i32, i32
  }
  func.func @transform_5(%arg0: i32, %arg1: i32, %arg2: memref<1xi32, #tpu.memory_space<smem>>, %arg3: memref<1xi32, #tpu.memory_space<smem>>) -> (i32, i32, i32) {
    %0 = arith.index_cast %arg1 : i32 to index
    %1 = memref.load %arg2[%0] : memref<1xi32, #tpu.memory_space<smem>>
    %c0_i32 = arith.constant 0 : i32
    %c0_i32_0 = arith.constant 0 : i32
    return %arg0, %1, %c0_i32 : i32, i32, i32
  }
  func.func @transform_6(%arg0: i32, %arg1: i32, %arg2: memref<1xi32, #tpu.memory_space<smem>>, %arg3: memref<1xi32, #tpu.memory_space<smem>>) -> (i32, i32, i32) {
    %0 = arith.index_cast %arg1 : i32 to index
    %1 = memref.load %arg2[%0] : memref<1xi32, #tpu.memory_space<smem>>
    %c0_i32 = arith.constant 0 : i32
    %c0_i32_0 = arith.constant 0 : i32
    return %arg0, %1, %c0_i32 : i32, i32, i32
  }
}

</mosaic_0001>

<bundles_post_ra>
// kernel: lstm_attention_forward.6
= control target key start
LH: loop header
LB: loop body
LE: loop exit
PB: predicated region body
PF: predicated region fallthrough
CT: control target
= control target key end

     0   :  { %vm27_vm0 = vcmask 1041408   ;;  %vm23_vm1 = vcmask 31744   ;;  %s91_s1 = inlined_call_operand.vmem [shape: bf16[4,128], index: 1, kind: input, shape index: {}]   ;;  %s92_s0 = inlined_call_operand.vmem [shape: f32[16,4], index: 0, kind: input, shape index: {}]   ;;  %s93_s2 = inlined_call_operand.vmem [shape: f32[1,128], index: 2, kind: input, shape index: {}]   ;;  %s94_s3 = inlined_call_operand.vmem [shape: f32[16,128], index: 3, kind: output, shape index: {}]  }
   0x1   :  { %v18_v0 = vld [vmem:[%s91_s1] sm:$0x3]  ;;  %v16_v2 = vld [vmem:[%s92_s0 + $0x8] sm:$0xff] }
   0x2   :  { %v15_v1 = vld [vmem:[%s92_s0] sm:$0xff]  ;;  %v29_v3 = vsel %vm27_vm0, %v18_v0, 0 }
   0x3   :  { %v17_v4 = vpack.c.bf16 %v16_v2, %v15_v1  ;;  %38 = vmatpush.bf16.msra.mxu0 %v29_v3  ;;  %v52_v5 = vld [vmem:[%s93_s2] ss:$0 sm:$0xff] }
   0x6   :  { %51 = vmatmul.msk.bf16.vlgmr.msra.gmra.mxu0 %vm23_vm1, %v17_v4 }
  0x83   :  { %v40_v6 = vpop.f32.mrf.mxu0 }
  0x84   :  { %v41_v7 = vadd.f32 %v52_v5, %v40_v6 }
  0x86   :  { %45 = vst [vmem:[%s94_s3] sm:$0xff] %v41_v7 }
  0x8b   :  { %v42_v8 = vpop.f32.mrf.mxu0 }
  0x8c   :  { %v43_v9 = vadd.f32 %v52_v5, %v42_v8 }
  0x8e   :  { %46 = vst [vmem:[%s94_s3 + $0x8] sm:$0xff] %v43_v9 }

// kernel: lstm_attention_forward.8
= control target key start
LH: loop header
LB: loop body
LE: loop exit
PB: predicated region body
PF: predicated region fallthrough
CT: control target
= control target key end

     0   :  { %vm38_vm0 = vcmask 261120   ;;  %vm56_vm1 = vcmask 785408   ;;  %s116_s1 = inlined_call_operand.vmem [shape: bf16[32,96], index: 1, kind: input, shape index: {}]   ;;  %s117_s0 = inlined_call_operand.vmem [shape: f32[16,32], index: 0, kind: input, shape index: {}]   ;;  %s118_s2 = inlined_call_operand.vmem [shape: f32[1,96], index: 2, kind: input, shape index: {}]   ;;  %s119_s3 = inlined_call_operand.vmem [shape: f32[16,96], index: 3, kind: output, shape index: {}]  }
   0x1   :  { %v73_v0 = vld [vmem:[%s116_s1 + $0x8] sm:$0xff]  ;;  %v72_v1 = vld [vmem:[%s116_s1] sm:$0xff] }
   0x2   :  { %48 = vmatpush.bf16.msra.mxu0 %v73_v0  ;;  %v15_v2 = vld [vmem:[%s117_s0] sm:$0xff]  ;;  %v16_v3 = vld [vmem:[%s117_s0 + $0x8] sm:$0xff] }
   0x3   :  { %v17_v4 = vpack.c.bf16 %v16_v3, %v15_v2  ;;  %v74_v5 = vld [vmem:[%s118_s2] ss:$0 sm:$0xff] }
   0x6   :  { %49 = vmatpush.bf16.msra.mxu0 %v72_v1 }
   0x9   :  { %71 = vmatmul.msk.bf16.vlgmr.msra.gmra.mxu0 %vm38_vm0, %v17_v4 }
  0x86   :  { %v51_v6 = vpop.f32.mrf.mxu0 }
  0x87   :  { %v52_v7 = vadd.f32 %v74_v5, %v51_v6 }
  0x89   :  { %57 = vst.msk [vmem:[%s119_s3] sm:$0xff] %vm56_vm1, %v52_v7 }
  0x8e   :  { %v53_v8 = vpop.f32.mrf.mxu0 }
  0x8f   :  { %v54_v9 = vadd.f32 %v74_v5, %v53_v8 }
  0x91   :  { %58 = vst.msk [vmem:[%s119_s3 + $0x8] sm:$0xff] %vm56_vm1, %v54_v9 }

// kernel: lstm_attention_forward.7
= control target key start
LH: loop header
LB: loop body
LE: loop exit
PB: predicated region body
PF: predicated region fallthrough
CT: control target
= control target key end

     0   :  { %s1104_s12 = smov 0   ;;  %s1106_s13 = smov 0   ;;  %s1285_s0 = inlined_call_operand.vmem [shape: f32[2,8,128], index: 0, kind: input, shape index: {}]   ;;  %s1286_s1 = inlined_call_operand.vmem [shape: bf16[32,128], index: 1, kind: input, shape index: {}]   ;;  %s1287_s2 = inlined_call_operand.vmem [shape: f32[2,8,1], index: 2, kind: input, shape index: {}]   ;;  %s1288_s3 = inlined_call_operand.vmem [shape: f32[2,8,32], index: 3, kind: output, shape index: {}]  }
   0x1   :  { %s1108_s14 = smov 0  }
   0x2 LB: > { %s25_s15 = sadd.s32 1, %s1073_s13  ;;  %p926_p0 = scmp.ge.s32.totalorder %s1077_s14, 1  ;;  %s1077_s14 = sphi %s1108_s14, %s13_s14   ;;  %s1073_s13 = sphi %s1106_s13, %s1290_s13   ;;  %s1069_s12 = sphi %s1104_s12, %s1289_s12  }
   0x3   : > { %p27_p1 = scmp.ge.s32.totalorder %s25_s15, 2  ;;  %p169_p2 = scmp.lt.s32.totalorder %s1077_s14, 3 }
   0x5   : > { %s1292_s15 = smov (%p27_p1, %s25_s15), 0  ;;  %p170_p3 = pnand %p926_p0, %p169_p2 }
   0x6   : > { %p204_p4 = scmp.lt.s32.totalorder (!%p170_p3), %s1069_s12, 1  ;;  %s1080_s24 = smov (!%p170_p3), 64  }
   0x7   : > { %173 = sbr.rel (%p170_p3) target bundleno = 4694 (0x1256), region = 32  ;;  %s1081_s25 = smov (!%p170_p3), 32  }
   0x8   : > { %s1083_s5 = smov (!%p170_p3), 96  }
   0xc   : > { %v957_v0 = vld [vmem:[%s1286_s1 + $0x8] sm:$0xff]  ;;  %vm230_vm0 = vcmask 253952   ;;  %v1079_v1 = vmov 0.0   ;;  %v956_v2 = vld [vmem:[%s1286_s1] sm:$0xff]  ;;  %vm253_vm1 = vcmask 261120   ;;  %s1294_s12 = smov (!%p204_p4, %s1069_s12), 1 }
   0xd   : > { %231 = vst.msk [vmem:[#allocation2] sm:$0x1] %vm230_vm0, %v1079_v1  ;;  %263 = vmatpush.bf16.msra.mxu0 %v957_v0  ;;  %340 = vmatpush.bf16.msra.mxu1 %v957_v0  ;;  %s1135_s20 = sshll.u32 %s1294_s12, 3 }
   0xe   : > { %232 = vst.msk [vmem:[#allocation3] sm:$0x1] %vm230_vm0, %v1079_v1  ;;  %411 = vmatpush.bf16.msra.mxu2 %v957_v0  ;;  %482 = vmatpush.bf16.msra.mxu3 %v957_v0  ;;  %s1141_s23 = scalar_lea.vmem %s1285_s0, %s1135_s20  ;;  %s1220_s28 = scalar_lea.vmem %s1287_s2, %s1135_s20 }
   0xf   : > { %v239_v5 = vld [vmem:[%s1141_s23] sm:$0x1]  ;;  %v326_v35 = vld [vmem:[%s1141_s23 + $0x1] sm:$0x1]  ;;  %v397_v63 = vld [vmem:[%s1141_s23 + $0x2] sm:$0x1]  ;;  %s1241_s4 = scalar_lea.vmem %s1288_s3, %s1135_s20 }
  0x11   : > { %264 = vmatpush.bf16.msra.mxu0 %v956_v2  ;;  %341 = vmatpush.bf16.msra.mxu1 %v956_v2 }
  0x12   : > { %412 = vmatpush.bf16.msra.mxu2 %v956_v2  ;;  %483 = vmatpush.bf16.msra.mxu3 %v956_v2 }
  0x14   : > { %v237_v3 = vld [vmem:[#allocation2] sm:$0x1] }
  0x15   : > { %553 = vmatpush.bf16.msrb.mxu0 %v957_v0  ;;  %624 = vmatpush.bf16.msrb.mxu1 %v957_v0  ;;  %v240_v4 = vpack.c.bf16 %v237_v3, %v237_v3  ;;  %v990_v10 = vld [vmem:[#allocation3] ss:$0 sm:$0xff] }
  0x16   : > { %695 = vmatpush.bf16.msrb.mxu2 %v957_v0  ;;  %766 = vmatpush.bf16.msrb.mxu3 %v957_v0 }
  0x17   : > { %938 = vmatmul.msk.bf16.vlgmr.msra.gmra.mxu0 %vm253_vm1, %v240_v4 }
  0x19   : > { %554 = vmatpush.bf16.msrb.mxu0 %v956_v2  ;;  %625 = vmatpush.bf16.msrb.mxu1 %v956_v2 }
  0x1a   : > { %696 = vmatpush.bf16.msrb.mxu2 %v956_v2  ;;  %767 = vmatpush.bf16.msrb.mxu3 %v956_v2 }
  0x94   : > { %v266_v6 = vpop.f32.mrf.mxu0 }
  0x95   : > { %v270_v7 = vadd.f32 %v266_v6, %v239_v5 }
  0x97   : > { %991 = vtanh.f32 %v270_v7  ;;  %v939_v11 = vmul.f32 -1.442695, %v270_v7 }
  0x99   : > { %993 = vpow2.f32 %v939_v11 }
  0x9c   : > { %v268_v8 = vpop.f32.mrf.mxu0 }
  0x9d   : > { %v992_v9 = vpop.eup %991 }
  0x9e   : > { %298 = vrot.lane.b32.xlu0 %v992_v9, %s1080_s24 }
  0x9f   : > { %v994_v12 = vpop.eup %993 }
  0xa0   : > { %v274_v13 = vadd.f32 1.0, %v994_v12 }
  0xa2   : > { %995 = vrcp.f32 %v274_v13  ;;  %v286_v19 = vand.u32 2147483648, %v274_v13  ;;  %vm280_vm3 = vweird.f32 %v274_v13  ;;  %v284_v20 = vand.u32 2147483647, %v274_v13 }
  0xa4   : > { %v287_v22 = vor.u32 1.1754944e-38, %v286_v19  ;;  %vm285_vm5 = vcmp.eq.f32.partialorder %v284_v20, 8.507059e+37 }
  0xa6   : > { %293 = vrot.lane.b32.xlu0 %v990_v10, %s1081_s25 }
  0xa8   : > { %v996_v14 = vpop.eup %995 }
  0xa9   : > { %v276_v15 = vmul.f32 %v996_v14, %v274_v13  ;;  %vm281_vm2 = vweird.f32 %v996_v14 }
  0xaa   : > { %vm282_vm4 = vmor %vm280_vm3, %vm281_vm2 }
  0xab   : > { %v277_v16 = vsub.f32 1.0, %v276_v15 }
  0xad   : > { %v278_v17 = vmul.f32 %v996_v14, %v277_v16 }
  0xaf   : > { %v279_v18 = vadd.f32 %v996_v14, %v278_v17 }
  0xb1   : > { %v283_v21 = vsel %vm282_vm4, %v996_v14, %v279_v18 }
  0xb2   : > { %v288_v24 = vsel %vm285_vm5, %v287_v22, %v283_v21 }
 0x110   : > { %v299_v23 = vpop.permute.xlu0 %298 }
 0x111   : > { %v301_v25 = vmul.f32 %v299_v23, %v288_v24 }
 0x113   : > { %303 = vrot.lane.b32.xlu1 %v301_v25, %s1081_s25 }
 0x118   : > { %v294_v26 = vpop.permute.xlu0 %293 }
 0x119   : > { %v296_v27 = vmul.f32 %v294_v26, %v288_v24 }
 0x185   : > { %v304_v28 = vpop.permute.xlu1 %303 }
 0x186   : > { %v306_v29 = vadd.f32 %v304_v28, %v296_v27  ;;  %v468_v27 = vld [vmem:[%s1141_s23 + $0x3] sm:$0x1] }
 0x188   : > { %997 = vtanh.f32 %v306_v29 }
 0x18e   : > { %v998_v30 = vpop.eup %997 }
 0x18f   : > { %309 = vrot.lane.b32.xlu1 %v998_v30, %s1080_s24 }
 0x201   : > { %v310_v31 = vpop.permute.xlu1 %309 }
 0x202   : > { %v1148_v32 = vmul.f32 %v310_v31, %v288_v24 }
 0x204   : > { %v327_v33 = vpack.c.bf16 %v1148_v32, %v1148_v32 }
 0x206   : > { %329 = vrot.lane.b32.xlu2 %v327_v33, %s1081_s25 }
 0x260   : > { %v330_v34 = vpop.permute.xlu2 %329 }
 0x261   : > { %940 = vmatmul.msk.bf16.vlgmr.msra.gmra.mxu1 %vm253_vm1, %v330_v34 }
 0x2de   : > { %v343_v36 = vpop.f32.mrf.mxu1 }
 0x2df   : > { %v347_v37 = vadd.f32 %v343_v36, %v326_v35 }
 0x2e1   : > { %999 = vtanh.f32 %v347_v37  ;;  %v941_v40 = vmul.f32 -1.442695, %v347_v37 }
 0x2e3   : > { %1001 = vpow2.f32 %v941_v40 }
 0x2e6   : > { %v345_v38 = vpop.f32.mrf.mxu1 }
 0x2e7   : > { %v1000_v39 = vpop.eup %999 }
 0x2e8   : > { %370 = vrot.lane.b32.xlu2 %v1000_v39, %s1080_s24 }
 0x2e9   : > { %v1002_v41 = vpop.eup %1001 }
 0x2ea   : > { %v351_v42 = vadd.f32 1.0, %v1002_v41 }
 0x2ec   : > { %1003 = vrcp.f32 %v351_v42  ;;  %v363_v48 = vand.u32 2147483648, %v351_v42  ;;  %vm357_vm7 = vweird.f32 %v351_v42  ;;  %v361_v49 = vand.u32 2147483647, %v351_v42 }
 0x2ee   : > { %v364_v51 = vor.u32 1.1754944e-38, %v363_v48  ;;  %vm362_vm9 = vcmp.eq.f32.partialorder %v361_v49, 8.507059e+37 }
 0x2f2   : > { %v1004_v43 = vpop.eup %1003 }
 0x2f3   : > { %v353_v44 = vmul.f32 %v1004_v43, %v351_v42  ;;  %vm358_vm6 = vweird.f32 %v1004_v43 }
 0x2f4   : > { %vm359_vm8 = vmor %vm357_vm7, %vm358_vm6 }
 0x2f5   : > { %v354_v45 = vsub.f32 1.0, %v353_v44 }
 0x2f7   : > { %v355_v46 = vmul.f32 %v1004_v43, %v354_v45 }
 0x2f9   : > { %v356_v47 = vadd.f32 %v1004_v43, %v355_v46 }
 0x2fb   : > { %v360_v50 = vsel %vm359_vm8, %v1004_v43, %v356_v47 }
 0x2fc   : > { %v365_v53 = vsel %vm362_vm9, %v364_v51, %v360_v50 }
 0x2fd   : > { %v368_v55 = vmul.f32 %v365_v53, %v306_v29 }
 0x342   : > { %v371_v52 = vpop.permute.xlu2 %370 }
 0x343   : > { %v373_v54 = vmul.f32 %v371_v52, %v365_v53 }
 0x345   : > { %375 = vrot.lane.b32.xlu0 %v373_v54, %s1081_s25 }
 0x3b7   : > { %v376_v56 = vpop.permute.xlu0 %375 }
 0x3b8   : > { %v378_v57 = vadd.f32 %v376_v56, %v368_v55  ;;  %v539_v56 = vld [vmem:[%s1141_s23 + $0x4] sm:$0x1] }
 0x3ba   : > { %1005 = vtanh.f32 %v378_v57 }
 0x3c0   : > { %v1006_v58 = vpop.eup %1005 }
 0x3c1   : > { %381 = vrot.lane.b32.xlu1 %v1006_v58, %s1080_s24 }
 0x433   : > { %v382_v59 = vpop.permute.xlu1 %381 }
 0x434   : > { %v1158_v60 = vmul.f32 %v382_v59, %v365_v53 }
 0x436   : > { %v398_v61 = vpack.c.bf16 %v1158_v60, %v1158_v60 }
 0x438   : > { %400 = vrot.lane.b32.xlu2 %v398_v61, %s1081_s25 }
 0x492   : > { %v401_v62 = vpop.permute.xlu2 %400 }
 0x493   : > { %942 = vmatmul.msk.bf16.vlgmr.msra.gmra.mxu2 %vm253_vm1, %v401_v62 }
 0x516   : > { %v414_v0 = vpop.f32.mrf.mxu2 }
 0x517   : > { %v418_v1 = vadd.f32 %v414_v0, %v397_v63 }
 0x519   : > { %1007 = vtanh.f32 %v418_v1  ;;  %v943_v4 = vmul.f32 -1.442695, %v418_v1 }
 0x51b   : > { %1009 = vpow2.f32 %v943_v4 }
 0x51e   : > { %v416_v2 = vpop.f32.mrf.mxu2 }
 0x51f   : > { %v1008_v3 = vpop.eup %1007 }
 0x520   : > { %441 = vrot.lane.b32.xlu0 %v1008_v3, %s1080_s24 }
 0x521   : > { %v1010_v5 = vpop.eup %1009 }
 0x522   : > { %v422_v6 = vadd.f32 1.0, %v1010_v5 }
 0x524   : > { %1011 = vrcp.f32 %v422_v6  ;;  %v434_v12 = vand.u32 2147483648, %v422_v6  ;;  %vm428_vm11 = vweird.f32 %v422_v6  ;;  %v432_v13 = vand.u32 2147483647, %v422_v6 }
 0x526   : > { %v435_v15 = vor.u32 1.1754944e-38, %v434_v12  ;;  %vm433_vm13 = vcmp.eq.f32.partialorder %v432_v13, 8.507059e+37 }
 0x52a   : > { %v1012_v7 = vpop.eup %1011 }
 0x52b   : > { %v424_v8 = vmul.f32 %v1012_v7, %v422_v6  ;;  %vm429_vm10 = vweird.f32 %v1012_v7 }
 0x52c   : > { %vm430_vm12 = vmor %vm428_vm11, %vm429_vm10 }
 0x52d   : > { %v425_v9 = vsub.f32 1.0, %v424_v8 }
 0x52f   : > { %v426_v10 = vmul.f32 %v1012_v7, %v425_v9 }
 0x531   : > { %v427_v11 = vadd.f32 %v1012_v7, %v426_v10 }
 0x533   : > { %v431_v14 = vsel %vm430_vm12, %v1012_v7, %v427_v11 }
 0x534   : > { %v436_v17 = vsel %vm433_vm13, %v435_v15, %v431_v14 }
 0x535   : > { %v439_v19 = vmul.f32 %v436_v17, %v378_v57 }
 0x592   : > { %v442_v16 = vpop.permute.xlu0 %441 }
 0x593   : > { %v444_v18 = vmul.f32 %v442_v16, %v436_v17 }
 0x595   : > { %446 = vrot.lane.b32.xlu1 %v444_v18, %s1081_s25 }
 0x607   : > { %v447_v20 = vpop.permute.xlu1 %446 }
 0x608   : > { %v449_v21 = vadd.f32 %v447_v20, %v439_v19 }
 0x60a   : > { %1013 = vtanh.f32 %v449_v21 }
 0x610   : > { %v1014_v22 = vpop.eup %1013 }
 0x611   : > { %452 = vrot.lane.b32.xlu2 %v1014_v22, %s1080_s24 }
 0x66b   : > { %v453_v23 = vpop.permute.xlu2 %452 }
 0x66c   : > { %v1168_v24 = vmul.f32 %v453_v23, %v436_v17 }
 0x66e   : > { %v469_v25 = vpack.c.bf16 %v1168_v24, %v1168_v24 }
 0x670   : > { %471 = vrot.lane.b32.xlu0 %v469_v25, %s1081_s25 }
 0x6e2   : > { %v472_v26 = vpop.permute.xlu0 %471 }
 0x6e3   : > { %944 = vmatmul.msk.bf16.vlgmr.msra.gmra.mxu3 %vm253_vm1, %v472_v26 }
 0x766   : > { %v485_v28 = vpop.f32.mrf.mxu3 }
 0x767   : > { %v489_v29 = vadd.f32 %v485_v28, %v468_v27 }
 0x769   : > { %1015 = vtanh.f32 %v489_v29  ;;  %v945_v33 = vmul.f32 -1.442695, %v489_v29 }
 0x76b   : > { %1017 = vpow2.f32 %v945_v33 }
 0x76e   : > { %v487_v30 = vpop.f32.mrf.mxu3 }
 0x76f   : > { %v1016_v31 = vpop.eup %1015 }
 0x770   : > { %512 = vrot.lane.b32.xlu1 %v1016_v31, %s1080_s24 }
 0x771   : > { %v1018_v34 = vpop.eup %1017 }
 0x772   : > { %v493_v35 = vadd.f32 1.0, %v1018_v34 }
 0x774   : > { %1019 = vrcp.f32 %v493_v35  ;;  %v505_v41 = vand.u32 2147483648, %v493_v35  ;;  %vm499_vm15 = vweird.f32 %v493_v35  ;;  %v503_v42 = vand.u32 2147483647, %v493_v35 }
 0x776   : > { %v506_v44 = vor.u32 1.1754944e-38, %v505_v41  ;;  %vm504_vm3 = vcmp.eq.f32.partialorder %v503_v42, 8.507059e+37 }
 0x77a   : > { %v1020_v36 = vpop.eup %1019 }
 0x77b   : > { %v495_v37 = vmul.f32 %v1020_v36, %v493_v35  ;;  %vm500_vm14 = vweird.f32 %v1020_v36 }
 0x77c   : > { %vm501_vm2 = vmor %vm499_vm15, %vm500_vm14 }
 0x77d   : > { %v496_v38 = vsub.f32 1.0, %v495_v37 }
 0x77f   : > { %v497_v39 = vmul.f32 %v1020_v36, %v496_v38 }
 0x781   : > { %v498_v40 = vadd.f32 %v1020_v36, %v497_v39 }
 0x783   : > { %v502_v43 = vsel %vm501_vm2, %v1020_v36, %v498_v40 }
 0x784   : > { %v507_v46 = vsel %vm504_vm3, %v506_v44, %v502_v43 }
 0x785   : > { %v510_v48 = vmul.f32 %v507_v46, %v449_v21  ;;  %v610_v21 = vld [vmem:[%s1141_s23 + $0x5] sm:$0x1] }
 0x7e2   : > { %v513_v45 = vpop.permute.xlu1 %512 }
 0x7e3   : > { %v515_v47 = vmul.f32 %v513_v45, %v507_v46 }
 0x7e5   : > { %517 = vrot.lane.b32.xlu2 %v515_v47, %s1081_s25 }
 0x83f   : > { %v518_v49 = vpop.permute.xlu2 %517 }
 0x840   : > { %v520_v50 = vadd.f32 %v518_v49, %v510_v48 }
 0x842   : > { %1021 = vtanh.f32 %v520_v50 }
 0x848   : > { %v1022_v51 = vpop.eup %1021 }
 0x849   : > { %523 = vrot.lane.b32.xlu0 %v1022_v51, %s1080_s24  ;;  %v681_v51 = vld [vmem:[%s1141_s23 + $0x6] sm:$0x1] }
 0x8bb   : > { %v524_v52 = vpop.permute.xlu0 %523 }
 0x8bc   : > { %v1178_v53 = vmul.f32 %v524_v52, %v507_v46 }
 0x8be   : > { %v540_v54 = vpack.c.bf16 %v1178_v53, %v1178_v53 }
 0x8c0   : > { %542 = vrot.lane.b32.xlu1 %v540_v54, %s1081_s25 }
 0x932   : > { %v543_v55 = vpop.permute.xlu1 %542 }
 0x933   : > { %946 = vmatmul.msk.bf16.vlgmr.msrb.gmra.mxu0 %vm253_vm1, %v543_v55 }
 0x9b0   : > { %v556_v57 = vpop.f32.mrf.mxu0 }
 0x9b1   : > { %v560_v58 = vadd.f32 %v556_v57, %v539_v56 }
 0x9b3   : > { %1023 = vtanh.f32 %v560_v58  ;;  %v947_v62 = vmul.f32 -1.442695, %v560_v58 }
 0x9b5   : > { %1025 = vpow2.f32 %v947_v62 }
 0x9b8   : > { %v558_v59 = vpop.f32.mrf.mxu0 }
 0x9b9   : > { %v1024_v61 = vpop.eup %1023 }
 0x9ba   : > { %583 = vrot.lane.b32.xlu2 %v1024_v61, %s1080_s24 }
 0x9bb   : > { %v1026_v63 = vpop.eup %1025 }
 0x9bc   : > { %v564_v0 = vadd.f32 1.0, %v1026_v63 }
 0x9be   : > { %1027 = vrcp.f32 %v564_v0  ;;  %v576_v6 = vand.u32 2147483648, %v564_v0  ;;  %vm570_vm5 = vweird.f32 %v564_v0  ;;  %v574_v7 = vand.u32 2147483647, %v564_v0 }
 0x9c0   : > { %v577_v9 = vor.u32 1.1754944e-38, %v576_v6  ;;  %vm575_vm7 = vcmp.eq.f32.partialorder %v574_v7, 8.507059e+37 }
 0x9c4   : > { %v1028_v1 = vpop.eup %1027 }
 0x9c5   : > { %v566_v2 = vmul.f32 %v1028_v1, %v564_v0  ;;  %vm571_vm4 = vweird.f32 %v1028_v1 }
 0x9c6   : > { %vm572_vm6 = vmor %vm570_vm5, %vm571_vm4 }
 0x9c7   : > { %v567_v3 = vsub.f32 1.0, %v566_v2 }
 0x9c9   : > { %v568_v4 = vmul.f32 %v1028_v1, %v567_v3 }
 0x9cb   : > { %v569_v5 = vadd.f32 %v1028_v1, %v568_v4 }
 0x9cd   : > { %v573_v8 = vsel %vm572_vm6, %v1028_v1, %v569_v5 }
 0x9ce   : > { %v578_v11 = vsel %vm575_vm7, %v577_v9, %v573_v8 }
 0x9cf   : > { %v581_v13 = vmul.f32 %v578_v11, %v520_v50 }
 0xa14   : > { %v584_v10 = vpop.permute.xlu2 %583 }
 0xa15   : > { %v586_v12 = vmul.f32 %v584_v10, %v578_v11 }
 0xa17   : > { %588 = vrot.lane.b32.xlu0 %v586_v12, %s1081_s25 }
 0xa89   : > { %v589_v14 = vpop.permute.xlu0 %588 }
 0xa8a   : > { %v591_v15 = vadd.f32 %v589_v14, %v581_v13  ;;  %v1082_v13 = vmov 0  }
 0xa8b   : > { %989 = vset.pattern.permute.xlu1 %v1082_v13  ;;  %987 = vset.pattern.permute.xlu2 %v1082_v13 }
 0xa8c   : > { %1029 = vtanh.f32 %v591_v15  ;;  %988 = vset.pattern.permute.xlu0 %v1082_v13 }
 0xa92   : > { %v1030_v16 = vpop.eup %1029 }
 0xa93   : > { %594 = vrot.lane.b32.xlu1 %v1030_v16, %s1080_s24 }
 0xb05   : > { %v595_v17 = vpop.permute.xlu1 %594 }
 0xb06   : > { %v1188_v18 = vmul.f32 %v595_v17, %v578_v11  ;;  %v456_v17 = vld [vmem:[%s1220_s28 + $0x2] sm:$0x1] }
 0xb08   : > { %v611_v19 = vpack.c.bf16 %v1188_v18, %v1188_v18 }
 0xb0a   : > { %613 = vrot.lane.b32.xlu2 %v611_v19, %s1081_s25  ;;  %v598_v19 = vld [vmem:[%s1220_s28 + $0x4] sm:$0x1] }
 0xb64   : > { %v614_v20 = vpop.permute.xlu2 %613 }
 0xb65   : > { %948 = vmatmul.msk.bf16.vlgmr.msrb.gmra.mxu1 %vm253_vm1, %v614_v20 }
 0xbe2   : > { %v627_v22 = vpop.f32.mrf.mxu1 }
 0xbe3   : > { %v631_v23 = vadd.f32 %v627_v22, %v610_v21  ;;  %v752_v21 = vld [vmem:[%s1141_s23 + $0x7] sm:$0x1] }
 0xbe5   : > { %1031 = vtanh.f32 %v631_v23  ;;  %v949_v27 = vmul.f32 -1.442695, %v631_v23 }
 0xbe7   : > { %1033 = vpow2.f32 %v949_v27  ;;  %v313_v27 = vld [vmem:[%s1220_s28] sm:$0x1] }
 0xbea   : > { %v629_v25 = vpop.f32.mrf.mxu1 }
 0xbeb   : > { %v1032_v26 = vpop.eup %1031 }
 0xbec   : > { %654 = vrot.lane.b32.xlu0 %v1032_v26, %s1080_s24 }
 0xbed   : > { %v1034_v28 = vpop.eup %1033 }
 0xbee   : > { %v635_v29 = vadd.f32 1.0, %v1034_v28  ;;  %v527_v28 = vld [vmem:[%s1220_s28 + $0x3] sm:$0x1] }
 0xbf0   : > { %1035 = vrcp.f32 %v635_v29  ;;  %v647_v36 = vand.u32 2147483648, %v635_v29  ;;  %vm641_vm9 = vweird.f32 %v635_v29  ;;  %v645_v37 = vand.u32 2147483647, %v635_v29 }
 0xbf2   : > { %v648_v39 = vor.u32 1.1754944e-38, %v647_v36  ;;  %vm646_vm11 = vcmp.eq.f32.partialorder %v645_v37, 8.507059e+37 }
 0xbf6   : > { %v1036_v30 = vpop.eup %1035 }
 0xbf7   : > { %v637_v31 = vmul.f32 %v1036_v30, %v635_v29  ;;  %vm642_vm8 = vweird.f32 %v1036_v30  ;;  %v669_v29 = vld [vmem:[%s1220_s28 + $0x5] sm:$0x1] }
 0xbf8   : > { %vm643_vm10 = vmor %vm641_vm9, %vm642_vm8 }
 0xbf9   : > { %v638_v33 = vsub.f32 1.0, %v637_v31 }
 0xbfb   : > { %v639_v34 = vmul.f32 %v1036_v30, %v638_v33 }
 0xbfd   : > { %v640_v35 = vadd.f32 %v1036_v30, %v639_v34 }
 0xbff   : > { %v644_v38 = vsel %vm643_vm10, %v1036_v30, %v640_v35 }
 0xc00   : > { %v649_v41 = vsel %vm646_vm11, %v648_v39, %v644_v38 }
 0xc01   : > { %v652_v43 = vmul.f32 %v649_v41, %v591_v15 }
 0xc5e   : > { %v655_v40 = vpop.permute.xlu0 %654 }
 0xc5f   : > { %v657_v42 = vmul.f32 %v655_v40, %v649_v41 }
 0xc61   : > { %659 = vrot.lane.b32.xlu1 %v657_v42, %s1081_s25 }
 0xcd3   : > { %v660_v44 = vpop.permute.xlu1 %659 }
 0xcd4   : > { %v662_v45 = vadd.f32 %v660_v44, %v652_v43 }
 0xcd6   : > { %1037 = vtanh.f32 %v662_v45 }
 0xcdc   : > { %v1038_v46 = vpop.eup %1037 }
 0xcdd   : > { %665 = vrot.lane.b32.xlu2 %v1038_v46, %s1080_s24 }
 0xd37   : > { %v666_v47 = vpop.permute.xlu2 %665 }
 0xd38   : > { %v1198_v48 = vmul.f32 %v666_v47, %v649_v41  ;;  %v385_v47 = vld [vmem:[%s1220_s28 + $0x1] sm:$0x1] }
 0xd3a   : > { %v682_v49 = vpack.c.bf16 %v1198_v48, %v1198_v48 }
 0xd3c   : > { %684 = vrot.lane.b32.xlu0 %v682_v49, %s1081_s25 }
 0xdae   : > { %v685_v50 = vpop.permute.xlu0 %684 }
 0xdaf   : > { %950 = vmatmul.msk.bf16.vlgmr.msrb.gmra.mxu2 %vm253_vm1, %v685_v50 }
 0xe32   : > { %v698_v52 = vpop.f32.mrf.mxu2 }
 0xe33   : > { %v702_v54 = vadd.f32 %v698_v52, %v681_v51  ;;  %v740_v51 = vld [vmem:[%s1220_s28 + $0x6] sm:$0x1] }
 0xe35   : > { %1039 = vtanh.f32 %v702_v54  ;;  %v951_v57 = vmul.f32 -1.442695, %v702_v54 }
 0xe37   : > { %1041 = vpow2.f32 %v951_v57 }
 0xe3a   : > { %v700_v55 = vpop.f32.mrf.mxu2 }
 0xe3b   : > { %v1040_v56 = vpop.eup %1039 }
 0xe3c   : > { %725 = vrot.lane.b32.xlu1 %v1040_v56, %s1080_s24 }
 0xe3d   : > { %v1042_v58 = vpop.eup %1041 }
 0xe3e   : > { %v706_v59 = vadd.f32 1.0, %v1042_v58 }
 0xe40   : > { %1043 = vrcp.f32 %v706_v59  ;;  %v718_v2 = vand.u32 2147483648, %v706_v59  ;;  %vm712_vm13 = vweird.f32 %v706_v59  ;;  %v716_v3 = vand.u32 2147483647, %v706_v59 }
 0xe42   : > { %v719_v5 = vor.u32 1.1754944e-38, %v718_v2  ;;  %vm717_vm15 = vcmp.eq.f32.partialorder %v716_v3, 8.507059e+37 }
 0xe46   : > { %v1044_v61 = vpop.eup %1043 }
 0xe47   : > { %v708_v62 = vmul.f32 %v1044_v61, %v706_v59  ;;  %vm713_vm12 = vweird.f32 %v1044_v61 }
 0xe48   : > { %vm714_vm14 = vmor %vm712_vm13, %vm713_vm12 }
 0xe49   : > { %v709_v63 = vsub.f32 1.0, %v708_v62 }
 0xe4b   : > { %v710_v0 = vmul.f32 %v1044_v61, %v709_v63 }
 0xe4d   : > { %v711_v1 = vadd.f32 %v1044_v61, %v710_v0  ;;  %v811_v0 = vld [vmem:[%s1220_s28 + $0x7] sm:$0x1] }
 0xe4f   : > { %v715_v4 = vsel %vm714_vm14, %v1044_v61, %v711_v1 }
 0xe50   : > { %v720_v7 = vsel %vm717_vm15, %v719_v5, %v715_v4 }
 0xe51   : > { %v723_v9 = vmul.f32 %v720_v7, %v662_v45 }
 0xeae   : > { %v726_v6 = vpop.permute.xlu1 %725 }
 0xeaf   : > { %v728_v8 = vmul.f32 %v726_v6, %v720_v7 }
 0xeb1   : > { %730 = vrot.lane.b32.xlu2 %v728_v8, %s1081_s25 }
 0xf0b   : > { %v731_v10 = vpop.permute.xlu2 %730 }
 0xf0c   : > { %v1207_v11 = vadd.f32 %v731_v10, %v723_v9 }
 0xf0e   : > { %1045 = vtanh.f32 %v1207_v11 }
 0xf14   : > { %v1046_v12 = vpop.eup %1045 }
 0xf15   : > { %736 = vrot.lane.b32.xlu0 %v1046_v12, %s1080_s24 }
 0xf87   : > { %v737_v14 = vpop.permute.xlu0 %736 }
 0xf88   : > { %v1211_v15 = vmul.f32 %v737_v14, %v720_v7 }
 0xf8a   : > { %v753_v16 = vpack.c.bf16 %v1211_v15, %v1211_v15 }
 0xf8c   : > { %755 = vrot.lane.b32.xlu1 %v753_v16, %s1081_s25 }
 0xf94   : > { %459 = vperm.xlu1 %989, %v456_v17  }
 0xf9c   : > { %601 = vperm.xlu1 %989, %v598_v19  }
 0xffe   : > { %v756_v20 = vpop.permute.xlu1 %755 }
 0xfff   : > { %952 = vmatmul.msk.bf16.vlgmr.msrb.gmra.mxu3 %vm253_vm1, %v756_v20 }
0x1006   : > { %v460_v58 = vpop.permute.xlu1 %459 }
0x100e   : > { %v602_v63 = vpop.permute.xlu1 %601 }
0x100f   : > { %v604_v2 = vmul.f32 %v602_v63, %v1188_v18 }
0x1082   : > { %v769_v22 = vpop.f32.mrf.mxu3 }
0x1083   : > { %v773_v23 = vadd.f32 %v769_v22, %v752_v21 }
0x1085   : > { %1047 = vtanh.f32 %v773_v23  ;;  %v953_v30 = vmul.f32 -1.442695, %v773_v23 }
0x1087   : > { %1049 = vpow2.f32 %v953_v30 }
0x108a   : > { %v771_v25 = vpop.f32.mrf.mxu3 }
0x108b   : > { %v1048_v26 = vpop.eup %1047 }
0x108c   : > { %796 = vrot.lane.b32.xlu2 %v1048_v26, %s1080_s24 }
0x108d   : > { %v1050_v31 = vpop.eup %1049 }
0x108e   : > { %v777_v33 = vadd.f32 1.0, %v1050_v31 }
0x1090   : > { %1051 = vrcp.f32 %v777_v33  ;;  %v789_v39 = vand.u32 2147483648, %v777_v33  ;;  %vm783_vm2 = vweird.f32 %v777_v33  ;;  %v787_v40 = vand.u32 2147483647, %v777_v33 }
0x1092   : > { %v790_v42 = vor.u32 1.1754944e-38, %v789_v39  ;;  %vm788_vm4 = vcmp.eq.f32.partialorder %v787_v40, 8.507059e+37 }
0x1094   : > { %316 = vperm.xlu2 %987, %v313_v27  }
0x1096   : > { %v1052_v34 = vpop.eup %1051 }
0x1097   : > { %v779_v35 = vmul.f32 %v1052_v34, %v777_v33  ;;  %vm784_vm1 = vweird.f32 %v1052_v34 }
0x1098   : > { %vm785_vm3 = vmor %vm783_vm2, %vm784_vm1 }
0x1099   : > { %v780_v36 = vsub.f32 1.0, %v779_v35 }
0x109b   : > { %v781_v37 = vmul.f32 %v1052_v34, %v780_v36 }
0x109c   : > { %530 = vperm.xlu2 %987, %v527_v28  }
0x109d   : > { %v782_v38 = vadd.f32 %v1052_v34, %v781_v37 }
0x109f   : > { %v786_v41 = vsel %vm785_vm3, %v1052_v34, %v782_v38 }
0x10a0   : > { %v791_v44 = vsel %vm788_vm4, %v790_v42, %v786_v41 }
0x10a4   : > { %672 = vperm.xlu2 %987, %v669_v29  }
0x10e6   : > { %v797_v43 = vpop.permute.xlu2 %796 }
0x10e7   : > { %v799_v45 = vmul.f32 %v797_v43, %v791_v44 }
0x10e9   : > { %801 = vrot.lane.b32.xlu0 %v799_v45, %s1081_s25 }
0x10ee   : > { %v317_v46 = vpop.permute.xlu2 %316 }
0x10ef   : > { %v319_v49 = vmul.f32 %v317_v46, %v1148_v32 }
0x10f1   : > { %321 = vrot.lane.b32.xlu2 %v319_v49, %s1081_s25  ;;  %388 = vperm.xlu0 %988, %v385_v47  }
0x10f6   : > { %v531_v50 = vpop.permute.xlu2 %530 }
0x10f7   : > { %v533_v52 = vmul.f32 %v531_v50, %v1178_v53  ;;  %v794_v53 = vmul.f32 %v791_v44, %v1207_v11 }
0x10f9   : > { %535 = vrot.lane.b32.xlu2 %v533_v52, %s1081_s25  ;;  %743 = vperm.xlu0 %988, %v740_v51  }
0x10fe   : > { %v673_v54 = vpop.permute.xlu2 %672 }
0x10ff   : > { %v675_v4 = vmul.f32 %v673_v54, %v1198_v48 }
0x114b   : > { %v322_v32 = vpop.permute.xlu2 %321 }
0x114c   : > { %325 = vst.msk [vmem:[%s1241_s4] sm:$0x1] %vm230_vm0, %v322_v32 }
0x1153   : > { %v536_v55 = vpop.permute.xlu2 %535 }
0x1154   : > { %538 = vst.msk [vmem:[%s1241_s4 + $0x3] sm:$0x1] %vm230_vm0, %v536_v55 }
0x115b   : > { %v802_v56 = vpop.permute.xlu0 %801 }
0x115c   : > { %v804_v57 = vadd.f32 %v802_v56, %v794_v53 }
0x115e   : > { %1053 = vtanh.f32 %v804_v57 }
0x1163   : > { %v389_v59 = vpop.permute.xlu0 %388 }
0x1164   : > { %v1054_v61 = vpop.eup %1053  ;;  %v391_v62 = vmul.f32 %v389_v59, %v1158_v60  ;;  %v462_v60 = vmul.f32 %v460_v58, %v1168_v24 }
0x1165   : > { %807 = vrot.lane.b32.xlu1 %v1054_v61, %s1080_s24 }
0x1166   : > { %393 = vrot.lane.b32.xlu0 %v391_v62, %s1081_s25 }
0x116b   : > { %v744_v1 = vpop.permute.xlu0 %743 }
0x116c   : > { %v746_v3 = vmul.f32 %v744_v1, %v1211_v15 }
0x116d   : > { %814 = vperm.xlu1 %989, %v811_v0  }
0x116e   : > { %748 = vrot.lane.b32.xlu2 %v746_v3, %s1081_s25  ;;  %606 = vrot.lane.b32.xlu0 %v604_v2, %s1081_s25 }
0x1175   : > { %464 = vrot.lane.b32.xlu1 %v462_v60, %s1081_s25 }
0x1176   : > { %829 = vrot.lane.b32.xlu2 %v804_v57, %s1083_s5 }
0x117d   : > { %677 = vrot.lane.b32.xlu1 %v675_v4, %s1081_s25 }
0x11c8   : > { %v749_v18 = vpop.permute.xlu2 %748 }
0x11c9   : > { %751 = vst.msk [vmem:[%s1241_s4 + $0x6] sm:$0x1] %vm230_vm0, %v749_v18 }
0x11d0   : > { %v830_v5 = vpop.permute.xlu2 %829 }
0x11d1   : > { %832 = vst.msk [vmem:[#allocation3] sm:$0x1] %vm230_vm0, %v830_v5 }
0x11d7   : > { %v808_v6 = vpop.permute.xlu1 %807 }
0x11d8   : > { %v810_v7 = vmul.f32 %v808_v6, %v791_v44  ;;  %v394_v24 = vpop.permute.xlu0 %393 }
0x11d9   : > { %396 = vst.msk [vmem:[%s1241_s4 + $0x1] sm:$0x1] %vm230_vm0, %v394_v24 }
0x11da   : > { %824 = vrot.lane.b32.xlu1 %v810_v7, %s1081_s25 }
0x11df   : > { %v815_v8 = vpop.permute.xlu1 %814 }
0x11e0   : > { %v817_v48 = vmul.f32 %v815_v8, %v810_v7  ;;  %v607_v9 = vpop.permute.xlu0 %606 }
0x11e1   : > { %609 = vst.msk [vmem:[%s1241_s4 + $0x4] sm:$0x1] %vm230_vm0, %v607_v9 }
0x11e2   : > { %819 = vrot.lane.b32.xlu0 %v817_v48, %s1081_s25 }
0x11e7   : > { %v465_v10 = vpop.permute.xlu1 %464 }
0x11e8   : > { %467 = vst.msk [vmem:[%s1241_s4 + $0x2] sm:$0x1] %vm230_vm0, %v465_v10 }
0x11ef   : > { %v678_v11 = vpop.permute.xlu1 %677 }
0x11f0   : > { %680 = vst.msk [vmem:[%s1241_s4 + $0x5] sm:$0x1] %vm230_vm0, %v678_v11 }
0x124c   : > { %v825_v12 = vpop.permute.xlu1 %824 }
0x124d   : > { %827 = vst.msk [vmem:[#allocation2] sm:$0x1] %vm230_vm0, %v825_v12 }
0x1254   : > { %v820_v13 = vpop.permute.xlu0 %819 }
0x1255   : > { %822 = vst.msk [vmem:[%s1241_s4 + $0x7] sm:$0x1] %vm230_vm0, %v820_v13 }
0x1256 PF: > { %s13_s14 = sadd.s32 1, %s1077_s14   ;;  %s1289_s12 = smov %s1073_s13 }
0x1257   : > { %p10_p5 = scmp.ge.s32.totalorder %s13_s14, 4   ;;  %s1290_s13 = smov %s1292_s15 }
0x1259   :  { %12 = sbr.rel (!%p10_p5) target bundleno = 2 (0x2), region = 69 }

// kernel: lstm_attention_forward.9
= control target key start
LH: loop header
LB: loop body
LE: loop exit
PB: predicated region body
PF: predicated region fallthrough
CT: control target
= control target key end

     0   :  { %s712_s0 = inlined_call_operand.<no memory space> [shape: s32[1], index: 0, kind: input, shape index: {}, may-alias: {0,1}]   ;;  %s713_s1 = inlined_call_operand.<no memory space> [shape: s32[1], index: 1, kind: input, shape index: {}, may-alias: {0,1}]   ;;  %s714_s5 = inlined_call_operand.vmem [shape: bf16[32,128], index: 5, kind: input, shape index: {}]   ;;  %s715_s6 = inlined_call_operand.vmem [shape: f32[1,128], index: 6, kind: input, shape index: {}]   ;;  %s716_s7 = inlined_call_operand.vmem [shape: f32[2,8,1], index: 7, kind: input, shape index: {}]   ;;  %s717_s2 = inlined_call_operand.vmem [shape: f32[2,8,32], index: 2, kind: input, shape index: {}]   ;;  %s718_s3 = inlined_call_operand.vmem [shape: f32[2,8,32], index: 3, kind: input, shape index: {}]   ;;  %s719_s4 = inlined_call_operand.vmem [shape: f32[2,8,32], index: 4, kind: input, shape index: {}]   ;;  %s720_s8 = inlined_call_operand.vmem [shape: f32[2,8,32], index: 8, kind: output, shape index: {}]  }
   0x1   :  { %p77_p0 = scmp.lt.s32.totalorder %s712_s0, 0  ;;  %p83_p1 = scmp.lt.s32.totalorder %s713_s1, 0 }
   0x2   :  { %p527_p2 = scmp.ne.s32.totalorder %s713_s1, 0 }
   0x3   :  { %s78_s30 = scalar_select %p77_p0, %s712_s0, 0 }
   0x4   :  { %s84_s11 = scalar_select %p83_p1, %s713_s1, 0 }
   0x5   :  { %s523_s12 = sshll.u32 %s78_s30, 3  ;;  %112 = sbr.rel (%p527_p2) target bundleno = 17 (0x11), region = 29 }
   0x6   :  { %s632_s15 = scalar_lea.vmem %s717_s2, %s523_s12  ;;  %s524_s16 = sshll.u32 %s84_s11, 3 }
   0x7   :  { %s637_s19 = scalar_lea.vmem %s718_s3, %s524_s16  ;;  %s642_s22 = scalar_lea.vmem %s719_s4, %s524_s16 }
   0x8   :  { %s647_s25 = scalar_lea.vmem %s720_s8, %s523_s12 }
   0xa   :  { %vm113_vm0 = vcmask 7168   ;;  %v568_v0 = vmov -inf   ;;  %vm118_vm1 = vcmask 261120   ;;  %v569_v1 = vmov 0.0  }
   0xb   :  { %114 = vst.msk [vmem:[#allocation2] sm:$0xff] %vm113_vm0, %v568_v0 }
   0xc   :  { %115 = vst.msk [vmem:[#allocation2 + $0x8] sm:$0xff] %vm113_vm0, %v568_v0 }
   0xd   :  { %116 = vst.msk [vmem:[#allocation3] sm:$0xff] %vm113_vm0, %v569_v1 }
   0xe   :  { %117 = vst.msk [vmem:[#allocation3 + $0x8] sm:$0xff] %vm113_vm0, %v569_v1 }
   0xf   :  { %119 = vst.msk [vmem:[#allocation4] sm:$0xff] %vm118_vm1, %v569_v1 }
  0x10   :  { %120 = vst.msk [vmem:[#allocation4 + $0x8] sm:$0xff] %vm118_vm1, %v569_v1 }
  0x11 PF:  { %p528_p3 = scmp.ge.s32.totalorder %s713_s1, %s712_s0 }
  0x13   :  { %124 = sbr.rel (%p528_p3) target bundleno = 556 (0x22c), region = 33 }
  0x18   :  { %v129_v2 = vld [vmem:[%s637_s19] sm:$0xff]  ;;  %vm133_vm2 = vcmask 261120   ;;  %v130_v3 = vld [vmem:[%s637_s19 + $0x8] sm:$0xff]  ;;  %vm174_vm3 = vcmask 64512   ;;  %v570_v18 = vmov 0   ;;  %vm217_vm4 = vcmask 7168  }
  0x19   :  { %v131_v4 = vpack.c.bf16 %v129_v2, %v129_v2  ;;  %v132_v5 = vpack.c.bf16 %v130_v3, %v130_v3  ;;  %v125_v8 = vld [vmem:[%s632_s15] sm:$0xff]  ;;  %v126_v9 = vld [vmem:[%s632_s15 + $0x8] sm:$0xff]  ;;  %542 = vset.pattern.permute.xlu1 %v570_v18  ;;  %543 = vset.pattern.permute.xlu2 %v570_v18  ;;  %vm243_vm5 = vcmask 1043456   ;;  %v205_v49 = vld [vmem:[#allocation3] sm:$0xff] }
  0x1a   :  { %v127_v10 = vpack.c.bf16 %v125_v8, %v125_v8  ;;  %v128_v11 = vpack.c.bf16 %v126_v9, %v126_v9  ;;  %544 = vset.pattern.permute.xlu0 %v570_v18  ;;  %v172_v19 = vld [vmem:[#allocation2] sm:$0xff]  ;;  %v173_v24 = vld [vmem:[#allocation2 + $0x8] sm:$0xff]  ;;  %v206_v53 = vld [vmem:[#allocation3 + $0x8] sm:$0xff] }
  0x1b   :  { %v138_v6 = vsel %vm133_vm2, %v131_v4, 0  ;;  %v157_v7 = vsel %vm133_vm2, %v132_v5, 0  ;;  %v236_v31 = vld [vmem:[%s642_s22] sm:$0xff]  ;;  %v237_v34 = vld [vmem:[%s642_s22 + $0x8] sm:$0xff] }
  0x1c   :  { %147 = vmatpush.bf16.xpose.msra.mxu0 %v138_v6  ;;  %166 = vmatpush.bf16.xpose.msra.mxu1 %v157_v7  ;;  %v238_v32 = vpack.c.bf16 %v236_v31, %v236_v31  ;;  %v239_v35 = vpack.c.bf16 %v237_v34, %v237_v34  ;;  %v220_v58 = vld [vmem:[#allocation4] sm:$0xff]  ;;  %v221_v62 = vld [vmem:[#allocation4 + $0x8] sm:$0xff] }
  0x1e   :  { %v245_v33 = vsel %vm243_vm5, %v238_v32, 0  ;;  %v264_v36 = vsel %vm243_vm5, %v239_v35, 0 }
  0x1f   :  { %254 = vmatpush.bf16.msra.mxu2 %v245_v33  ;;  %273 = vmatpush.bf16.msra.mxu3 %v264_v36 }
  0x23   :  { %529 = vmatmul.msk.bf16.vlgmr.msra.gmra.mxu0 %vm133_vm2, %v127_v10  ;;  %530 = vmatmul.msk.bf16.vlgmr.msra.gmra.mxu1 %vm133_vm2, %v128_v11 }
  0xa0   :  { %v149_v12 = vpop.f32.mrf.mxu0  ;;  %v168_v13 = vpop.f32.mrf.mxu1 }
  0xa1   :  { %v175_v14 = vsel %vm174_vm3, %v149_v12, -inf  ;;  %v178_v15 = vsel %vm174_vm3, %v168_v13, -inf }
  0xa2   :  { %176 = vmax.xlane.f32.xlu0 %v175_v14 }
  0xa8   :  { %v151_v16 = vpop.f32.mrf.mxu0  ;;  %v170_v17 = vpop.f32.mrf.mxu1 }
  0xaa   :  { %179 = vmax.xlane.f32.xlu0 %v178_v15 }
 0x115   :  { %v177_v20 = vpop.xlane.xlu0 %176 }
 0x116   :  { %v181_v21 = vmax.f32 %v172_v19, %v177_v20 }
 0x118   :  { %v183_v22 = vsub.f32 %v172_v19, %v181_v21  ;;  %283 = vst.msk [vmem:[#allocation2] sm:$0xff] %vm217_vm4, %v181_v21  ;;  %191 = vperm.xlu1 %542, %v181_v21  }
 0x11a   :  { %v185_v23 = vmul.f32 1.442695, %v183_v22 }
 0x11c   :  { %545 = vpow2.f32 %v185_v23 }
 0x11d   :  { %v180_v25 = vpop.xlane.xlu0 %179 }
 0x11e   :  { %v182_v26 = vmax.f32 %v173_v24, %v180_v25 }
 0x120   :  { %v184_v27 = vsub.f32 %v173_v24, %v182_v26  ;;  %284 = vst.msk [vmem:[#allocation2 + $0x8] sm:$0xff] %vm217_vm4, %v182_v26  ;;  %196 = vperm.xlu1 %542, %v182_v26  }
 0x122   :  { %v546_v28 = vpop.eup %545  ;;  %v187_v29 = vmul.f32 1.442695, %v184_v27 }
 0x123   :  { %224 = vperm.xlu2 %543, %v546_v28   ;;  %v207_v50 = vmul.f32 %v546_v28, %v205_v49 }
 0x124   :  { %547 = vpow2.f32 %v187_v29 }
 0x12a   :  { %v548_v30 = vpop.eup %547 }
 0x12b   :  { %229 = vperm.xlu2 %543, %v548_v30   ;;  %v208_v54 = vmul.f32 %v548_v30, %v206_v53 }
 0x17d   :  { %v225_v57 = vpop.permute.xlu2 %224 }
 0x17e   :  { %v232_v59 = vmul.f32 %v225_v57, %v220_v58 }
 0x185   :  { %v230_v63 = vpop.permute.xlu2 %229 }
 0x186   :  { %v233_v0 = vmul.f32 %v230_v63, %v221_v62 }
 0x18a   :  { %v192_v37 = vpop.permute.xlu1 %191 }
 0x18b   :  { %v199_v38 = vsub.f32 %v149_v12, %v192_v37 }
 0x18d   :  { %v201_v39 = vmul.f32 1.442695, %v199_v38 }
 0x18f   :  { %549 = vpow2.f32 %v201_v39 }
 0x192   :  { %v197_v40 = vpop.permute.xlu1 %196 }
 0x193   :  { %v200_v41 = vsub.f32 %v168_v13, %v197_v40 }
 0x195   :  { %v550_v42 = vpop.eup %549  ;;  %v203_v43 = vmul.f32 1.442695, %v200_v41 }
 0x196   :  { %v209_v44 = vsel %vm174_vm3, %v550_v42, 0.0  ;;  %v234_v45 = vpack.c.bf16 %v550_v42, %v550_v42 }
 0x197   :  { %551 = vpow2.f32 %v203_v43  ;;  %210 = vadd.xlane.f32.xlu0 %v209_v44 }
 0x198   :  { %531 = vmatmul.msk.bf16.vlgmr.msra.gmra.mxu2 %vm174_vm3, %v234_v45 }
 0x19d   :  { %v552_v46 = vpop.eup %551 }
 0x19e   :  { %v212_v47 = vsel %vm174_vm3, %v552_v46, 0.0  ;;  %v235_v48 = vpack.c.bf16 %v552_v46, %v552_v46 }
 0x19f   :  { %213 = vadd.xlane.f32.xlu1 %v212_v47 }
 0x1a0   :  { %532 = vmatmul.msk.bf16.vlgmr.msra.gmra.mxu3 %vm174_vm3, %v235_v48 }
 0x20a   :  { %v211_v51 = vpop.xlane.xlu0 %210 }
 0x20b   :  { %v215_v52 = vadd.f32 %v211_v51, %v207_v50 }
 0x20d   :  { %218 = vst.msk [vmem:[#allocation3] sm:$0xff] %vm217_vm4, %v215_v52 }
 0x212   :  { %v214_v55 = vpop.xlane.xlu1 %213 }
 0x213   :  { %v216_v56 = vadd.f32 %v214_v55, %v208_v54 }
 0x215   :  { %219 = vst.msk [vmem:[#allocation3 + $0x8] sm:$0xff] %vm217_vm4, %v216_v56 }
 0x21b   :  { %v256_v60 = vpop.f32.mrf.mxu2 }
 0x21c   :  { %v279_v61 = vadd.f32 %v256_v60, %v232_v59 }
 0x21e   :  { %281 = vst.msk [vmem:[#allocation4] sm:$0xff] %vm133_vm2, %v279_v61 }
 0x223   :  { %v258_v1 = vpop.f32.mrf.mxu2  ;;  %v275_v2 = vpop.f32.mrf.mxu3 }
 0x224   :  { %v280_v3 = vadd.f32 %v275_v2, %v233_v0 }
 0x226   :  { %282 = vst.msk [vmem:[#allocation4 + $0x8] sm:$0xff] %vm133_vm2, %v280_v3 }
 0x22b   :  { %v277_v4 = vpop.f32.mrf.mxu3 }
 0x22c PF:  { %p533_p4 = scmp.ne.s32.totalorder %s713_s1, %s712_s0 }
 0x22e   :  { %288 = sbr.rel (%p533_p4) target bundleno = 1206 (0x4b6), region = 37 }
 0x233   :  { %v293_v5 = vld [vmem:[%s637_s19] sm:$0xff]  ;;  %vm297_vm6 = vcmask 261120   ;;  %v294_v6 = vld [vmem:[%s637_s19 + $0x8] sm:$0xff]  ;;  %v336_v15 = vlaneseq  ;;  %vm345_vm8 = vcmask 64512   ;;  %v571_v26 = vmov 0   ;;  %v376_v57 = vld [vmem:[#allocation3] sm:$0xff] }
 0x234   :  { %v295_v7 = vpack.c.bf16 %v293_v5, %v293_v5  ;;  %v296_v8 = vpack.c.bf16 %v294_v6, %v294_v6  ;;  %v289_v11 = vld [vmem:[%s632_s15] sm:$0xff]  ;;  %v290_v12 = vld [vmem:[%s632_s15 + $0x8] sm:$0xff]  ;;  %553 = vset.pattern.permute.xlu1 %v571_v26  ;;  %554 = vset.pattern.permute.xlu0 %v571_v26  ;;  %vm388_vm9 = vcmask 7168   ;;  %vm414_vm10 = vcmask 1043456   ;;  %v377_v61 = vld [vmem:[#allocation3 + $0x8] sm:$0xff] }
 0x235   :  { %v291_v13 = vpack.c.bf16 %v289_v11, %v289_v11  ;;  %v292_v14 = vpack.c.bf16 %v290_v12, %v290_v12  ;;  %v337_v16 = vshrl.u32 %v336_v15, 7  ;;  %v339_v17 = vand.u32 127, %v336_v15  ;;  %555 = vset.pattern.permute.xlu2 %v571_v26  ;;  %v343_v27 = vld [vmem:[#allocation2] sm:$0xff]  ;;  %v344_v32 = vld [vmem:[#allocation2 + $0x8] sm:$0xff] }
 0x236   :  { %v302_v9 = vsel %vm297_vm6, %v295_v7, 0  ;;  %v321_v10 = vsel %vm297_vm6, %v296_v8, 0  ;;  %v407_v39 = vld [vmem:[%s642_s22] sm:$0xff]  ;;  %v408_v42 = vld [vmem:[%s642_s22 + $0x8] sm:$0xff] }
 0x237   :  { %311 = vmatpush.bf16.xpose.msra.mxu0 %v302_v9  ;;  %330 = vmatpush.bf16.xpose.msra.mxu1 %v321_v10  ;;  %vm340_vm7 = vcmp.le.s32.totalorder %v339_v17, %v337_v16  ;;  %v409_v40 = vpack.c.bf16 %v407_v39, %v407_v39  ;;  %v410_v43 = vpack.c.bf16 %v408_v42, %v408_v42  ;;  %v391_v2 = vld [vmem:[#allocation4] sm:$0xff]  ;;  %v392_v9 = vld [vmem:[#allocation4 + $0x8] sm:$0xff] }
 0x239   :  { %v416_v41 = vsel %vm414_vm10, %v409_v40, 0  ;;  %v435_v44 = vsel %vm414_vm10, %v410_v43, 0 }
 0x23a   :  { %425 = vmatpush.bf16.msra.mxu2 %v416_v41  ;;  %444 = vmatpush.bf16.msra.mxu3 %v435_v44 }
 0x23e   :  { %534 = vmatmul.msk.bf16.vlgmr.msra.gmra.mxu0 %vm297_vm6, %v291_v13  ;;  %535 = vmatmul.msk.bf16.vlgmr.msra.gmra.mxu1 %vm297_vm6, %v292_v14 }
 0x2bb   :  { %v313_v18 = vpop.f32.mrf.mxu0  ;;  %v332_v19 = vpop.f32.mrf.mxu1 }
 0x2bc   :  { %v341_v20 = vsel %vm340_vm7, %v313_v18, -1e+30  ;;  %v342_v22 = vsel %vm340_vm7, %v332_v19, -1e+30 }
 0x2bd   :  { %v346_v21 = vsel %vm345_vm8, %v341_v20, -inf  ;;  %v349_v25 = vsel %vm345_vm8, %v342_v22, -inf }
 0x2be   :  { %347 = vmax.xlane.f32.xlu0 %v346_v21 }
 0x2c3   :  { %v315_v23 = vpop.f32.mrf.mxu0  ;;  %v334_v24 = vpop.f32.mrf.mxu1 }
 0x2c6   :  { %350 = vmax.xlane.f32.xlu0 %v349_v25 }
 0x331   :  { %v348_v28 = vpop.xlane.xlu0 %347 }
 0x332   :  { %v352_v29 = vmax.f32 %v343_v27, %v348_v28 }
 0x334   :  { %v354_v30 = vsub.f32 %v343_v27, %v352_v29  ;;  %454 = vst.msk [vmem:[#allocation2] sm:$0xff] %vm388_vm9, %v352_v29  ;;  %362 = vperm.xlu1 %553, %v352_v29  }
 0x336   :  { %v356_v31 = vmul.f32 1.442695, %v354_v30 }
 0x338   :  { %556 = vpow2.f32 %v356_v31 }
 0x339   :  { %v351_v33 = vpop.xlane.xlu0 %350 }
 0x33a   :  { %v353_v34 = vmax.f32 %v344_v32, %v351_v33 }
 0x33c   :  { %v355_v35 = vsub.f32 %v344_v32, %v353_v34  ;;  %455 = vst.msk [vmem:[#allocation2 + $0x8] sm:$0xff] %vm388_vm9, %v353_v34  ;;  %367 = vperm.xlu1 %553, %v353_v34  }
 0x33e   :  { %v557_v36 = vpop.eup %556  ;;  %v358_v37 = vmul.f32 1.442695, %v355_v35 }
 0x33f   :  { %395 = vperm.xlu0 %554, %v557_v36   ;;  %v378_v58 = vmul.f32 %v557_v36, %v376_v57 }
 0x340   :  { %558 = vpow2.f32 %v358_v37 }
 0x346   :  { %v559_v38 = vpop.eup %558 }
 0x347   :  { %400 = vperm.xlu1 %553, %v559_v38   ;;  %v379_v62 = vmul.f32 %v559_v38, %v377_v61 }
 0x3a6   :  { %v363_v45 = vpop.permute.xlu1 %362 }
 0x3a7   :  { %v370_v46 = vsub.f32 %v341_v20, %v363_v45 }
 0x3a9   :  { %v372_v47 = vmul.f32 1.442695, %v370_v46 }
 0x3ab   :  { %560 = vpow2.f32 %v372_v47 }
 0x3ae   :  { %v368_v48 = vpop.permute.xlu1 %367 }
 0x3af   :  { %v371_v49 = vsub.f32 %v342_v22, %v368_v48 }
 0x3b1   :  { %v561_v50 = vpop.eup %560  ;;  %v374_v51 = vmul.f32 1.442695, %v371_v49  ;;  %v396_v3 = vpop.permute.xlu0 %395 }
 0x3b2   :  { %v380_v52 = vsel %vm345_vm8, %v561_v50, 0.0  ;;  %v405_v53 = vpack.c.bf16 %v561_v50, %v561_v50  ;;  %v403_v4 = vmul.f32 %v396_v3, %v391_v2 }
 0x3b3   :  { %562 = vpow2.f32 %v374_v51  ;;  %381 = vadd.xlane.f32.xlu2 %v380_v52 }
 0x3b4   :  { %536 = vmatmul.msk.bf16.vlgmr.msra.gmra.mxu2 %vm345_vm8, %v405_v53 }
 0x3b9   :  { %v563_v54 = vpop.eup %562  ;;  %v401_v10 = vpop.permute.xlu1 %400 }
 0x3ba   :  { %v383_v55 = vsel %vm345_vm8, %v563_v54, 0.0  ;;  %v406_v56 = vpack.c.bf16 %v563_v54, %v563_v54  ;;  %v404_v11 = vmul.f32 %v401_v10, %v392_v9 }
 0x3bb   :  { %384 = vadd.xlane.f32.xlu2 %v383_v55 }
 0x3bc   :  { %537 = vmatmul.msk.bf16.vlgmr.msra.gmra.mxu3 %vm345_vm8, %v406_v56 }
 0x426   :  { %v382_v59 = vpop.xlane.xlu2 %381 }
 0x427   :  { %v386_v60 = vadd.f32 %v382_v59, %v378_v58 }
 0x429   :  { %389 = vst.msk [vmem:[#allocation3] sm:$0xff] %vm388_vm9, %v386_v60 }
 0x42e   :  { %v385_v63 = vpop.xlane.xlu2 %384 }
 0x42f   :  { %v387_v0 = vadd.f32 %v385_v63, %v379_v62 }
 0x430   :  { %v458_v1 = vld [vmem:[#allocation3] sm:$0xff] }
 0x431   :  { %390 = vst.msk [vmem:[#allocation3 + $0x8] sm:$0xff] %vm388_vm9, %v387_v0  ;;  %564 = vrcp.f32 %v458_v1 }
 0x437   :  { %v565_v5 = vpop.eup %564  ;;  %v427_v6 = vpop.f32.mrf.mxu2 }
 0x438   :  { %v450_v7 = vadd.f32 %v427_v6, %v403_v4  ;;  %464 = vperm.xlu2 %555, %v565_v5   ;;  %v459_v8 = vld [vmem:[#allocation3 + $0x8] sm:$0xff] }
 0x439   :  { %566 = vrcp.f32 %v459_v8 }
 0x43a   :  { %452 = vst.msk [vmem:[#allocation4] sm:$0xff] %vm297_vm6, %v450_v7 }
 0x43f   :  { %v567_v12 = vpop.eup %566  ;;  %v429_v13 = vpop.f32.mrf.mxu2 }
 0x440   :  { %v446_v14 = vpop.f32.mrf.mxu3  ;;  %469 = vperm.xlu1 %553, %v567_v12  }
 0x441   :  { %v451_v15 = vadd.f32 %v446_v14, %v404_v11  ;;  %v456_v18 = vld [vmem:[#allocation4] sm:$0xff] }
 0x443   :  { %453 = vst.msk [vmem:[#allocation4 + $0x8] sm:$0xff] %vm297_vm6, %v451_v15 }
 0x448   :  { %v448_v16 = vpop.f32.mrf.mxu3 }
 0x44a   :  { %v457_v20 = vld [vmem:[#allocation4 + $0x8] sm:$0xff] }
 0x492   :  { %v465_v17 = vpop.permute.xlu2 %464 }
 0x493   :  { %v472_v19 = vmul.f32 %v465_v17, %v456_v18 }
 0x495   :  { %474 = vst.msk [vmem:[%s647_s25] sm:$0xff] %vm297_vm6, %v472_v19 }
 0x4b2   :  { %v470_v21 = vpop.permute.xlu1 %469 }
 0x4b3   :  { %v473_v22 = vmul.f32 %v470_v21, %v457_v20 }
 0x4b5   :  { %475 = vst.msk [vmem:[%s647_s25 + $0x8] sm:$0xff] %vm297_vm6, %v473_v22 }
 0x4b6 PF:  {}

// kernel: lstm_attention_forward.11
= control target key start
LH: loop header
LB: loop body
LE: loop exit
PB: predicated region body
PF: predicated region fallthrough
CT: control target
= control target key end

     0   :  { %s854_s0 = inlined_call_operand.<no memory space> [shape: s32[1], index: 0, kind: input, shape index: {}, may-alias: {0,1}]   ;;  %s855_s1 = inlined_call_operand.<no memory space> [shape: s32[1], index: 1, kind: input, shape index: {}, may-alias: {0,1}]   ;;  %s856_s5 = inlined_call_operand.vmem [shape: bf16[32,128], index: 5, kind: input, shape index: {}]   ;;  %s857_s6 = inlined_call_operand.vmem [shape: f32[1,128], index: 6, kind: input, shape index: {}]   ;;  %s858_s2 = inlined_call_operand.vmem [shape: f32[2,8,32], index: 2, kind: input, shape index: {}]   ;;  %s859_s3 = inlined_call_operand.vmem [shape: f32[2,8,32], index: 3, kind: input, shape index: {}]   ;;  %s860_s4 = inlined_call_operand.vmem [shape: f32[2,8,32], index: 4, kind: input, shape index: {}]   ;;  %s861_s7 = inlined_call_operand.vmem [shape: f32[2,8,1], index: 7, kind: input, shape index: {}]   ;;  %s862_s8 = inlined_call_operand.vmem [shape: f32[2,8,128], index: 8, kind: output, shape index: {}]  }
   0x1   :  { %p77_p0 = scmp.lt.s32.totalorder %s854_s0, 0  ;;  %p83_p1 = scmp.lt.s32.totalorder %s855_s1, 0 }
   0x2   :  { %p618_p2 = scmp.ne.s32.totalorder %s855_s1, 0 }
   0x3   :  { %s78_s11 = scalar_select %p77_p0, %s854_s0, 0 }
   0x4   :  { %s84_s14 = scalar_select %p83_p1, %s855_s1, 0 }
   0x5   :  { %s613_s15 = sshll.u32 %s78_s11, 3  ;;  %112 = sbr.rel (%p618_p2) target bundleno = 17 (0x11), region = 29 }
   0x6   :  { %s749_s18 = scalar_lea.vmem %s858_s2, %s613_s15  ;;  %s614_s19 = sshll.u32 %s84_s14, 3 }
   0x7   :  { %s754_s22 = scalar_lea.vmem %s859_s3, %s614_s19  ;;  %s759_s25 = scalar_lea.vmem %s860_s4, %s614_s19 }
   0x8   :  { %s764_s28 = scalar_lea.vmem %s861_s7, %s613_s15  ;;  %s769_s2 = scalar_lea.vmem %s862_s8, %s613_s15 }
   0xa   :  { %vm113_vm0 = vcmask 7168   ;;  %v685_v0 = vmov -inf   ;;  %vm118_vm1 = vcmask 261120   ;;  %v686_v1 = vmov 0.0  }
   0xb   :  { %114 = vst.msk [vmem:[#allocation2] sm:$0xff] %vm113_vm0, %v685_v0 }
   0xc   :  { %115 = vst.msk [vmem:[#allocation2 + $0x8] sm:$0xff] %vm113_vm0, %v685_v0 }
   0xd   :  { %116 = vst.msk [vmem:[#allocation3] sm:$0xff] %vm113_vm0, %v686_v1 }
   0xe   :  { %117 = vst.msk [vmem:[#allocation3 + $0x8] sm:$0xff] %vm113_vm0, %v686_v1 }
   0xf   :  { %119 = vst.msk [vmem:[#allocation4] sm:$0xff] %vm118_vm1, %v686_v1 }
  0x10   :  { %120 = vst.msk [vmem:[#allocation4 + $0x8] sm:$0xff] %vm118_vm1, %v686_v1 }
  0x11 PF:  { %p619_p3 = scmp.ge.s32.totalorder %s855_s1, %s854_s0 }
  0x13   :  { %124 = sbr.rel (%p619_p3) target bundleno = 556 (0x22c), region = 33 }
  0x18   :  { %v129_v2 = vld [vmem:[%s754_s22] sm:$0xff]  ;;  %vm133_vm2 = vcmask 261120   ;;  %v130_v3 = vld [vmem:[%s754_s22 + $0x8] sm:$0xff]  ;;  %vm174_vm3 = vcmask 64512   ;;  %v687_v18 = vmov 0   ;;  %vm217_vm4 = vcmask 7168  }
  0x19   :  { %v131_v4 = vpack.c.bf16 %v129_v2, %v129_v2  ;;  %v132_v5 = vpack.c.bf16 %v130_v3, %v130_v3  ;;  %v125_v8 = vld [vmem:[%s749_s18] sm:$0xff]  ;;  %v126_v9 = vld [vmem:[%s749_s18 + $0x8] sm:$0xff]  ;;  %657 = vset.pattern.permute.xlu1 %v687_v18  ;;  %658 = vset.pattern.permute.xlu2 %v687_v18  ;;  %vm243_vm5 = vcmask 1043456   ;;  %v205_v49 = vld [vmem:[#allocation3] sm:$0xff] }
  0x1a   :  { %v127_v10 = vpack.c.bf16 %v125_v8, %v125_v8  ;;  %v128_v11 = vpack.c.bf16 %v126_v9, %v126_v9  ;;  %659 = vset.pattern.permute.xlu0 %v687_v18  ;;  %v172_v19 = vld [vmem:[#allocation2] sm:$0xff]  ;;  %v173_v24 = vld [vmem:[#allocation2 + $0x8] sm:$0xff]  ;;  %v206_v53 = vld [vmem:[#allocation3 + $0x8] sm:$0xff] }
  0x1b   :  { %v138_v6 = vsel %vm133_vm2, %v131_v4, 0  ;;  %v157_v7 = vsel %vm133_vm2, %v132_v5, 0  ;;  %v236_v31 = vld [vmem:[%s759_s25] sm:$0xff]  ;;  %v237_v34 = vld [vmem:[%s759_s25 + $0x8] sm:$0xff] }
  0x1c   :  { %147 = vmatpush.bf16.xpose.msra.mxu0 %v138_v6  ;;  %166 = vmatpush.bf16.xpose.msra.mxu1 %v157_v7  ;;  %v238_v32 = vpack.c.bf16 %v236_v31, %v236_v31  ;;  %v239_v35 = vpack.c.bf16 %v237_v34, %v237_v34  ;;  %v220_v58 = vld [vmem:[#allocation4] sm:$0xff]  ;;  %v221_v62 = vld [vmem:[#allocation4 + $0x8] sm:$0xff] }
  0x1e   :  { %v245_v33 = vsel %vm243_vm5, %v238_v32, 0  ;;  %v264_v36 = vsel %vm243_vm5, %v239_v35, 0 }
  0x1f   :  { %254 = vmatpush.bf16.msra.mxu2 %v245_v33  ;;  %273 = vmatpush.bf16.msra.mxu3 %v264_v36 }
  0x23   :  { %620 = vmatmul.msk.bf16.vlgmr.msra.gmra.mxu0 %vm133_vm2, %v127_v10  ;;  %621 = vmatmul.msk.bf16.vlgmr.msra.gmra.mxu1 %vm133_vm2, %v128_v11 }
  0xa0   :  { %v149_v12 = vpop.f32.mrf.mxu0  ;;  %v168_v13 = vpop.f32.mrf.mxu1 }
  0xa1   :  { %v175_v14 = vsel %vm174_vm3, %v149_v12, -inf  ;;  %v178_v15 = vsel %vm174_vm3, %v168_v13, -inf }
  0xa2   :  { %176 = vmax.xlane.f32.xlu0 %v175_v14 }
  0xa8   :  { %v151_v16 = vpop.f32.mrf.mxu0  ;;  %v170_v17 = vpop.f32.mrf.mxu1 }
  0xaa   :  { %179 = vmax.xlane.f32.xlu0 %v178_v15 }
 0x115   :  { %v177_v20 = vpop.xlane.xlu0 %176 }
 0x116   :  { %v181_v21 = vmax.f32 %v172_v19, %v177_v20 }
 0x118   :  { %v183_v22 = vsub.f32 %v172_v19, %v181_v21  ;;  %283 = vst.msk [vmem:[#allocation2] sm:$0xff] %vm217_vm4, %v181_v21  ;;  %191 = vperm.xlu1 %657, %v181_v21  }
 0x11a   :  { %v185_v23 = vmul.f32 1.442695, %v183_v22 }
 0x11c   :  { %660 = vpow2.f32 %v185_v23 }
 0x11d   :  { %v180_v25 = vpop.xlane.xlu0 %179 }
 0x11e   :  { %v182_v26 = vmax.f32 %v173_v24, %v180_v25 }
 0x120   :  { %v184_v27 = vsub.f32 %v173_v24, %v182_v26  ;;  %284 = vst.msk [vmem:[#allocation2 + $0x8] sm:$0xff] %vm217_vm4, %v182_v26  ;;  %196 = vperm.xlu1 %657, %v182_v26  }
 0x122   :  { %v661_v28 = vpop.eup %660  ;;  %v187_v29 = vmul.f32 1.442695, %v184_v27 }
 0x123   :  { %224 = vperm.xlu2 %658, %v661_v28   ;;  %v207_v50 = vmul.f32 %v661_v28, %v205_v49 }
 0x124   :  { %662 = vpow2.f32 %v187_v29 }
 0x12a   :  { %v663_v30 = vpop.eup %662 }
 0x12b   :  { %229 = vperm.xlu2 %658, %v663_v30   ;;  %v208_v54 = vmul.f32 %v663_v30, %v206_v53 }
 0x17d   :  { %v225_v57 = vpop.permute.xlu2 %224 }
 0x17e   :  { %v232_v59 = vmul.f32 %v225_v57, %v220_v58 }
 0x185   :  { %v230_v63 = vpop.permute.xlu2 %229 }
 0x186   :  { %v233_v0 = vmul.f32 %v230_v63, %v221_v62 }
 0x18a   :  { %v192_v37 = vpop.permute.xlu1 %191 }
 0x18b   :  { %v199_v38 = vsub.f32 %v149_v12, %v192_v37 }
 0x18d   :  { %v201_v39 = vmul.f32 1.442695, %v199_v38 }
 0x18f   :  { %664 = vpow2.f32 %v201_v39 }
 0x192   :  { %v197_v40 = vpop.permute.xlu1 %196 }
 0x193   :  { %v200_v41 = vsub.f32 %v168_v13, %v197_v40 }
 0x195   :  { %v665_v42 = vpop.eup %664  ;;  %v203_v43 = vmul.f32 1.442695, %v200_v41 }
 0x196   :  { %v209_v44 = vsel %vm174_vm3, %v665_v42, 0.0  ;;  %v234_v45 = vpack.c.bf16 %v665_v42, %v665_v42 }
 0x197   :  { %666 = vpow2.f32 %v203_v43  ;;  %210 = vadd.xlane.f32.xlu0 %v209_v44 }
 0x198   :  { %622 = vmatmul.msk.bf16.vlgmr.msra.gmra.mxu2 %vm174_vm3, %v234_v45 }
 0x19d   :  { %v667_v46 = vpop.eup %666 }
 0x19e   :  { %v212_v47 = vsel %vm174_vm3, %v667_v46, 0.0  ;;  %v235_v48 = vpack.c.bf16 %v667_v46, %v667_v46 }
 0x19f   :  { %213 = vadd.xlane.f32.xlu1 %v212_v47 }
 0x1a0   :  { %623 = vmatmul.msk.bf16.vlgmr.msra.gmra.mxu3 %vm174_vm3, %v235_v48 }
 0x20a   :  { %v211_v51 = vpop.xlane.xlu0 %210 }
 0x20b   :  { %v215_v52 = vadd.f32 %v211_v51, %v207_v50 }
 0x20d   :  { %218 = vst.msk [vmem:[#allocation3] sm:$0xff] %vm217_vm4, %v215_v52 }
 0x212   :  { %v214_v55 = vpop.xlane.xlu1 %213 }
 0x213   :  { %v216_v56 = vadd.f32 %v214_v55, %v208_v54 }
 0x215   :  { %219 = vst.msk [vmem:[#allocation3 + $0x8] sm:$0xff] %vm217_vm4, %v216_v56 }
 0x21b   :  { %v256_v60 = vpop.f32.mrf.mxu2 }
 0x21c   :  { %v279_v61 = vadd.f32 %v256_v60, %v232_v59 }
 0x21e   :  { %281 = vst.msk [vmem:[#allocation4] sm:$0xff] %vm133_vm2, %v279_v61 }
 0x223   :  { %v258_v1 = vpop.f32.mrf.mxu2  ;;  %v275_v2 = vpop.f32.mrf.mxu3 }
 0x224   :  { %v280_v3 = vadd.f32 %v275_v2, %v233_v0 }
 0x226   :  { %282 = vst.msk [vmem:[#allocation4 + $0x8] sm:$0xff] %vm133_vm2, %v280_v3 }
 0x22b   :  { %v277_v4 = vpop.f32.mrf.mxu3 }
 0x22c PF:  { %p624_p4 = scmp.ne.s32.totalorder %s855_s1, %s854_s0 }
 0x22e   :  { %288 = sbr.rel (%p624_p4) target bundleno = 1347 (0x543), region = 37 }
 0x233   :  { %v293_v5 = vld [vmem:[%s754_s22] sm:$0xff]  ;;  %vm297_vm6 = vcmask 261120   ;;  %v294_v6 = vld [vmem:[%s754_s22 + $0x8] sm:$0xff]  ;;  %v336_v15 = vlaneseq  ;;  %vm345_vm8 = vcmask 64512   ;;  %v688_v26 = vmov 0   ;;  %v376_v57 = vld [vmem:[#allocation3] sm:$0xff] }
 0x234   :  { %v295_v7 = vpack.c.bf16 %v293_v5, %v293_v5  ;;  %v296_v8 = vpack.c.bf16 %v294_v6, %v294_v6  ;;  %v289_v11 = vld [vmem:[%s749_s18] sm:$0xff]  ;;  %v290_v12 = vld [vmem:[%s749_s18 + $0x8] sm:$0xff]  ;;  %668 = vset.pattern.permute.xlu1 %v688_v26  ;;  %669 = vset.pattern.permute.xlu0 %v688_v26  ;;  %vm388_vm9 = vcmask 7168   ;;  %vm414_vm10 = vcmask 1043456   ;;  %v377_v61 = vld [vmem:[#allocation3 + $0x8] sm:$0xff] }
 0x235   :  { %v291_v13 = vpack.c.bf16 %v289_v11, %v289_v11  ;;  %v292_v14 = vpack.c.bf16 %v290_v12, %v290_v12  ;;  %v337_v16 = vshrl.u32 %v336_v15, 7  ;;  %v339_v17 = vand.u32 127, %v336_v15  ;;  %670 = vset.pattern.permute.xlu2 %v688_v26  ;;  %v343_v27 = vld [vmem:[#allocation2] sm:$0xff]  ;;  %v344_v32 = vld [vmem:[#allocation2 + $0x8] sm:$0xff] }
 0x236   :  { %v302_v9 = vsel %vm297_vm6, %v295_v7, 0  ;;  %v321_v10 = vsel %vm297_vm6, %v296_v8, 0  ;;  %v407_v39 = vld [vmem:[%s759_s25] sm:$0xff]  ;;  %v408_v42 = vld [vmem:[%s759_s25 + $0x8] sm:$0xff] }
 0x237   :  { %311 = vmatpush.bf16.xpose.msra.mxu0 %v302_v9  ;;  %330 = vmatpush.bf16.xpose.msra.mxu1 %v321_v10  ;;  %vm340_vm7 = vcmp.le.s32.totalorder %v339_v17, %v337_v16  ;;  %v409_v40 = vpack.c.bf16 %v407_v39, %v407_v39  ;;  %v410_v43 = vpack.c.bf16 %v408_v42, %v408_v42  ;;  %v650_v2 = vld [vmem:[%s856_s5 + $0x8] sm:$0xff]  ;;  %v391_v3 = vld [vmem:[#allocation4] sm:$0xff] }
 0x238   :  { %v392_v10 = vld [vmem:[#allocation4 + $0x8] sm:$0xff]  ;;  %v511_v17 = vld [vmem:[%s764_s28] sm:$0xff] }
 0x239   :  { %v416_v41 = vsel %vm414_vm10, %v409_v40, 0  ;;  %v435_v44 = vsel %vm414_vm10, %v410_v43, 0 }
 0x23a   :  { %425 = vmatpush.bf16.msra.mxu2 %v416_v41  ;;  %444 = vmatpush.bf16.msra.mxu3 %v435_v44 }
 0x23e   :  { %625 = vmatmul.msk.bf16.vlgmr.msra.gmra.mxu0 %vm297_vm6, %v291_v13  ;;  %626 = vmatmul.msk.bf16.vlgmr.msra.gmra.mxu1 %vm297_vm6, %v292_v14 }
 0x23f   :  { %504 = vmatpush.bf16.msrb.mxu2 %v650_v2 }
 0x2bb   :  { %v313_v18 = vpop.f32.mrf.mxu0  ;;  %v332_v19 = vpop.f32.mrf.mxu1 }
 0x2bc   :  { %v341_v20 = vsel %vm340_vm7, %v313_v18, -1e+30  ;;  %v342_v22 = vsel %vm340_vm7, %v332_v19, -1e+30  ;;  %v647_v19 = vld [vmem:[%s764_s28 + $0x8] sm:$0xff] }
 0x2bd   :  { %v346_v21 = vsel %vm345_vm8, %v341_v20, -inf  ;;  %v349_v25 = vsel %vm345_vm8, %v342_v22, -inf }
 0x2be   :  { %347 = vmax.xlane.f32.xlu0 %v346_v21  ;;  %v652_v21 = vld [vmem:[%s856_s5 + $0x8] sm:$0xff] }
 0x2bf   :  { %549 = vmatpush.bf16.msrb.mxu3 %v652_v21 }
 0x2c3   :  { %v315_v23 = vpop.f32.mrf.mxu0  ;;  %v334_v24 = vpop.f32.mrf.mxu1 }
 0x2c6   :  { %350 = vmax.xlane.f32.xlu0 %v349_v25 }
 0x331   :  { %v348_v28 = vpop.xlane.xlu0 %347 }
 0x332   :  { %v352_v29 = vmax.f32 %v343_v27, %v348_v28 }
 0x334   :  { %v354_v30 = vsub.f32 %v343_v27, %v352_v29  ;;  %454 = vst.msk [vmem:[#allocation2] sm:$0xff] %vm388_vm9, %v352_v29  ;;  %362 = vperm.xlu1 %668, %v352_v29  }
 0x336   :  { %v356_v31 = vmul.f32 1.442695, %v354_v30 }
 0x338   :  { %673 = vpow2.f32 %v356_v31  ;;  %v671_v31 = vld [vmem:[%s857_s6] ss:$0 sm:$0xff] }
 0x339   :  { %v351_v33 = vpop.xlane.xlu0 %350 }
 0x33a   :  { %v353_v34 = vmax.f32 %v344_v32, %v351_v33 }
 0x33c   :  { %v355_v35 = vsub.f32 %v344_v32, %v353_v34  ;;  %455 = vst.msk [vmem:[#allocation2 + $0x8] sm:$0xff] %vm388_vm9, %v353_v34  ;;  %367 = vperm.xlu1 %668, %v353_v34  }
 0x33e   :  { %v674_v36 = vpop.eup %673  ;;  %v358_v37 = vmul.f32 1.442695, %v355_v35 }
 0x33f   :  { %395 = vperm.xlu0 %669, %v674_v36   ;;  %v378_v58 = vmul.f32 %v674_v36, %v376_v57 }
 0x340   :  { %675 = vpow2.f32 %v358_v37  ;;  %v672_v37 = vld [vmem:[%s857_s6] ss:$0 sm:$0xff] }
 0x346   :  { %v676_v38 = vpop.eup %675 }
 0x347   :  { %400 = vperm.xlu1 %668, %v676_v38   ;;  %v379_v62 = vmul.f32 %v676_v38, %v377_v61 }
 0x3a6   :  { %v363_v45 = vpop.permute.xlu1 %362 }
 0x3a7   :  { %v370_v46 = vsub.f32 %v341_v20, %v363_v45  ;;  %v649_v20 = vld [vmem:[%s856_s5] sm:$0xff] }
 0x3a8   :  { %505 = vmatpush.bf16.msrb.mxu2 %v649_v20 }
 0x3a9   :  { %v372_v47 = vmul.f32 1.442695, %v370_v46 }
 0x3ab   :  { %677 = vpow2.f32 %v372_v47 }
 0x3ae   :  { %v368_v48 = vpop.permute.xlu1 %367 }
 0x3af   :  { %v371_v49 = vsub.f32 %v342_v22, %v368_v48  ;;  %v651_v22 = vld [vmem:[%s856_s5] sm:$0xff] }
 0x3b0   :  { %550 = vmatpush.bf16.msrb.mxu3 %v651_v22 }
 0x3b1   :  { %v678_v50 = vpop.eup %677  ;;  %v374_v51 = vmul.f32 1.442695, %v371_v49  ;;  %v396_v4 = vpop.permute.xlu0 %395 }
 0x3b2   :  { %v380_v52 = vsel %vm345_vm8, %v678_v50, 0.0  ;;  %v405_v53 = vpack.c.bf16 %v678_v50, %v678_v50  ;;  %v403_v5 = vmul.f32 %v396_v4, %v391_v3 }
 0x3b3   :  { %679 = vpow2.f32 %v374_v51  ;;  %381 = vadd.xlane.f32.xlu2 %v380_v52 }
 0x3b4   :  { %627 = vmatmul.msk.bf16.vlgmr.msra.gmra.mxu2 %vm345_vm8, %v405_v53 }
 0x3b9   :  { %v680_v54 = vpop.eup %679  ;;  %v401_v11 = vpop.permute.xlu1 %400 }
 0x3ba   :  { %v383_v55 = vsel %vm345_vm8, %v680_v54, 0.0  ;;  %v406_v56 = vpack.c.bf16 %v680_v54, %v680_v54  ;;  %v404_v12 = vmul.f32 %v401_v11, %v392_v10 }
 0x3bb   :  { %384 = vadd.xlane.f32.xlu2 %v383_v55 }
 0x3bc   :  { %628 = vmatmul.msk.bf16.vlgmr.msra.gmra.mxu3 %vm345_vm8, %v406_v56 }
 0x426   :  { %v382_v59 = vpop.xlane.xlu2 %381 }
 0x427   :  { %v386_v60 = vadd.f32 %v382_v59, %v378_v58 }
 0x429   :  { %389 = vst.msk [vmem:[#allocation3] sm:$0xff] %vm388_vm9, %v386_v60 }
 0x42e   :  { %v385_v63 = vpop.xlane.xlu2 %384 }
 0x42f   :  { %v387_v0 = vadd.f32 %v385_v63, %v379_v62 }
 0x430   :  { %v458_v1 = vld [vmem:[#allocation3] sm:$0xff] }
 0x431   :  { %390 = vst.msk [vmem:[#allocation3 + $0x8] sm:$0xff] %vm388_vm9, %v387_v0  ;;  %681 = vrcp.f32 %v458_v1 }
 0x437   :  { %v682_v6 = vpop.eup %681  ;;  %v427_v7 = vpop.f32.mrf.mxu2 }
 0x438   :  { %v450_v8 = vadd.f32 %v427_v7, %v403_v5  ;;  %464 = vperm.xlu2 %670, %v682_v6   ;;  %v459_v9 = vld [vmem:[#allocation3 + $0x8] sm:$0xff] }
 0x439   :  { %683 = vrcp.f32 %v459_v9 }
 0x43a   :  { %452 = vst.msk [vmem:[#allocation4] sm:$0xff] %vm297_vm6, %v450_v8 }
 0x43f   :  { %v684_v13 = vpop.eup %683  ;;  %v429_v14 = vpop.f32.mrf.mxu2 }
 0x440   :  { %v446_v15 = vpop.f32.mrf.mxu3  ;;  %469 = vperm.xlu1 %668, %v684_v13  }
 0x441   :  { %v451_v16 = vadd.f32 %v446_v15, %v404_v12  ;;  %v456_v24 = vld [vmem:[#allocation4] sm:$0xff] }
 0x443   :  { %453 = vst.msk [vmem:[#allocation4 + $0x8] sm:$0xff] %vm297_vm6, %v451_v16 }
 0x448   :  { %v448_v18 = vpop.f32.mrf.mxu3  ;;  %514 = vperm.xlu1 %668, %v511_v17  }
 0x44a   :  { %v457_v27 = vld [vmem:[#allocation4 + $0x8] sm:$0xff] }
 0x450   :  { %560 = vperm.xlu1 %668, %v647_v19  }
 0x492   :  { %v465_v23 = vpop.permute.xlu2 %464 }
 0x493   :  { %v472_v25 = vmul.f32 %v465_v23, %v456_v24 }
 0x495   :  { %v474_v26 = vpack.c.bf16 %v472_v25, %v472_v25 }
 0x497   :  { %637 = vmatmul.msk.bf16.vlgmr.msrb.gmra.mxu2 %vm297_vm6, %v474_v26 }
 0x4b2   :  { %v470_v28 = vpop.permute.xlu1 %469 }
 0x4b3   :  { %v473_v29 = vmul.f32 %v470_v28, %v457_v27 }
 0x4b5   :  { %v519_v30 = vpack.c.bf16 %v473_v29, %v473_v29 }
 0x4b7   :  { %646 = vmatmul.msk.bf16.vlgmr.msrb.gmra.mxu3 %vm297_vm6, %v519_v30 }
 0x4ba   :  { %v515_v34 = vpop.permute.xlu1 %514 }
 0x4c2   :  { %v561_v40 = vpop.permute.xlu1 %560 }
 0x51a   :  { %v507_v32 = vpop.f32.mrf.mxu2 }
 0x51b   :  { %v508_v33 = vadd.f32 %v671_v31, %v507_v32 }
 0x51d   :  { %v517_v35 = vmul.f32 %v515_v34, %v508_v33 }
 0x51f   :  { %518 = vst [vmem:[%s769_s2] sm:$0xff] %v517_v35 }
 0x522   :  { %v509_v36 = vpop.f32.mrf.mxu2 }
 0x53a   :  { %v552_v38 = vpop.f32.mrf.mxu3 }
 0x53b   :  { %v553_v39 = vadd.f32 %v672_v37, %v552_v38 }
 0x53d   :  { %v563_v41 = vmul.f32 %v561_v40, %v553_v39 }
 0x53f   :  { %648 = vst [vmem:[%s769_s2 + $0x8] sm:$0xff] %v563_v41 }
 0x542   :  { %v554_v42 = vpop.f32.mrf.mxu3 }
 0x543 PF:  {}

</bundles_post_ra>
